<compile_context>
chip_gen: v7x
topology: tpu7x:2x2x1
jax: 0.10.0
libtpu: 0.0.40
codegen_flags: <defaults>
</compile_context>

<pallas_src>
import jax
import jax.numpy as jnp
from jax.experimental import pallas as pl
from jax.experimental.pallas import tpu as pltpu

# ---- small config consistent with the module's constructor ----
IMG = 16
PATCH = 4
IN_CHANS = 4
EMBED = 32
DEPTH = 2
HEADS = 4
MLP_RATIO = 4.0
NUM_CLASSES = 10
NUM_PATCHES = (IMG // PATCH) * (IMG // PATCH)   # 16
NTOK = NUM_PATCHES + 1                          # 17 (cls token + patches)
NTOK_PAD = 24                                   # padded to multiple of 8 sublanes
HEAD_DIM = EMBED // HEADS                       # 8
MLP_HIDDEN = int(EMBED * MLP_RATIO)             # 128
CPP = IN_CHANS * PATCH * PATCH                  # 64 (flattened patch size)


# ---------------- shared math helpers (pure jnp/lax, usable in-kernel) ----------------

def _layernorm(x, w, b, eps):
    mu = jnp.mean(x, axis=-1, keepdims=True)
    var = jnp.mean((x - mu) ** 2, axis=-1, keepdims=True)
    return (x - mu) * jax.lax.rsqrt(var + eps) * w + b


def _gelu_erf(x):
    # exact (erf) GELU — used by the pure-JAX reference (matches torch.nn.GELU)
    return 0.5 * x * (1.0 + jax.lax.erf(x / jnp.sqrt(2.0).astype(x.dtype)))


def _gelu_tanh(x):
    # tanh approximation — routed through the EUP instead of a long VALU erf poly
    c = jnp.sqrt(2.0 / jnp.pi).astype(x.dtype)
    return 0.5 * x * (1.0 + jnp.tanh(c * (x + 0.044715 * x * x * x)))


# ---------------- single fused Pallas kernel (whole ViT forward, one batch per step) ----------------

def vit_kernel(patches_ref, convw_ref, addvec_ref,
               ln1w_ref, ln1b_ref, qkvw_ref, projw_ref, projb_ref,
               ln2w_ref, ln2b_ref, fc1w_ref, fc1b_ref, fc2w_ref, fc2b_ref,
               normw_ref, normb_ref, headw_ref, headb_ref, out_ref):
    scale = HEAD_DIM ** (-0.5)

    # static -inf mask over padded key columns (tokens >= NTOK).  LayerNorm of a
    # zero pad row is NOT zero, so pad keys MUST be masked out of the softmax.
    col = jax.lax.broadcasted_iota(jnp.int32, (1, 1, NTOK_PAD), 2)
    key_mask = jnp.where(col < NTOK, 0.0, -1e30).astype(jnp.float32)

    # --- patch embedding (Conv2d as one 2-D matmul) + cls token + pos embed ---
    # patches: (NTOK_PAD, CPP) with a zero row at token 0 (cls slot) and zero pad
    #          rows at the end; addvec: (NTOK_PAD, E) = pos_embed + [cls | conv_b].
    xp = patches_ref[0].astype(jnp.bfloat16)                               # (Np, CPP)
    x = jnp.dot(xp, convw_ref[...],
                preferred_element_type=jnp.float32) + addvec_ref[...]      # (Np, E) f32

    # --- transformer blocks, statically unrolled over DEPTH ---
    for d in range(DEPTH):
        # Attention(norm1(x))  (qkv_bias=False in the reference module)
        xn = _layernorm(x, ln1w_ref[d], ln1b_ref[d], 1e-6)                 # (Np, E) f32
        qkv = jnp.dot(xn.astype(jnp.bfloat16), qkvw_ref[d],
                      preferred_element_type=jnp.float32)                  # (Np, 3E) f32

        # split heads: torch layout of qkv columns is (qkv, h, d)
        q = qkv[:, 0 * EMBED:1 * EMBED].reshape(NTOK_PAD, HEADS, HEAD_DIM)
        k = qkv[:, 1 * EMBED:2 * EMBED].reshape(NTOK_PAD, HEADS, HEAD_DIM)
        v = qkv[:, 2 * EMBED:3 * EMBED].reshape(NTOK_PAD, HEADS, HEAD_DIM)

        # tiny f32 contractions (hd=8 / N=17): intentionally NOT bf16/padded
        dots = jnp.einsum('nhd,mhd->hnm', q, k,
                          preferred_element_type=jnp.float32) * scale + key_mask
        m = jnp.max(dots, axis=-1, keepdims=True)
        e = jnp.exp(dots - m)
        attn = e * pl.reciprocal(jnp.sum(e, axis=-1, keepdims=True), approx=True)
        o = jnp.einsum('hnm,mhd->nhd', attn, v,
                       preferred_element_type=jnp.float32)                 # (Np, H, hd)

        # concat heads via reshape, single K=E output projection
        o = o.reshape(NTOK_PAD, EMBED)
        x = x + jnp.dot(o.astype(jnp.bfloat16), projw_ref[d],
                        preferred_element_type=jnp.float32) + projb_ref[d]

        # Mlp(norm2(x))
        xn2 = _layernorm(x, ln2w_ref[d], ln2b_ref[d], 1e-6)
        h1 = jnp.dot(xn2.astype(jnp.bfloat16), fc1w_ref[d],
                     preferred_element_type=jnp.float32) + fc1b_ref[d]     # (Np, 128)
        h1 = _gelu_tanh(h1)
        x = x + jnp.dot(h1.astype(jnp.bfloat16), fc2w_ref[d],
                        preferred_element_type=jnp.float32) + fc2b_ref[d]

    # --- final LayerNorm (eps=1e-5 default) + cls pooling + linear head (f32) ---
    cls = x[0:1, :]                                                        # (1, E)
    cls = _layernorm(cls, normw_ref[...], normb_ref[...], 1e-5)
    logits = jnp.dot(cls, headw_ref[...],
                     preferred_element_type=jnp.float32) + headb_ref[...]  # (1, C)
    out_ref[...] = logits.reshape(1, 1, NUM_CLASSES)


# ---------------- wrapper (layout plumbing only; one pallas_call) ----------------

def _im2col(x_img):
    B, C, H, W = x_img.shape
    p = PATCH
    patches = x_img.reshape(B, C, H // p, p, W // p, p)
    patches = patches.transpose(0, 2, 4, 1, 3, 5).reshape(B, NUM_PATCHES, C * p * p)
    return patches


def vit_forward(x_img, params):
    B = x_img.shape[0]

    # Conv2d(kernel=stride=PATCH) == per-patch matmul; im2col done wrapper-side.
    patches = _im2col(x_img)                                               # (B, P, CPP)
    # token 0 = zero "patch" (cls slot, its embedding comes via addvec);
    # tokens NTOK..NTOK_PAD-1 = zero pad rows (masked out of attention in-kernel)
    patches_ext = jnp.concatenate(
        [jnp.zeros((B, 1, CPP), jnp.float32), patches,
         jnp.zeros((B, NTOK_PAD - NTOK, CPP), jnp.float32)], axis=1)       # (B, Np, CPP)

    convw = params['conv_w'].reshape(EMBED, CPP).T.astype(jnp.bfloat16)    # (CPP, E)

    # additive tensor: row 0 -> cls_token + pos[0]; rows 1..NTOK-1 -> conv_b + pos[i];
    # pad rows -> 0.
    addvec_core = params['pos_embed'][0] + jnp.concatenate(
        [params['cls_token'][0],
         jnp.broadcast_to(params['conv_b'][None, :], (NUM_PATCHES, EMBED))], axis=0)
    addvec = jnp.concatenate(
        [addvec_core, jnp.zeros((NTOK_PAD - NTOK, EMBED), jnp.float32)], axis=0)  # (Np, E)

    def stack(name, dtype=jnp.float32):
        return jnp.stack([blk[name] for blk in params['blocks']], axis=0).astype(dtype)

    ln1w, ln1b = stack('ln1w'), stack('ln1b')                              # (D, 1, E)
    ln2w, ln2b = stack('ln2w'), stack('ln2b')
    qkvw = stack('qkvw', jnp.bfloat16)                                     # (D, E, 3E)
    projw = stack('projw', jnp.bfloat16)                                   # (D, E, E)
    projb = stack('projb')                                                 # (D, 1, E)
    fc1w = stack('fc1w', jnp.bfloat16)                                     # (D, E, H)
    fc1b = stack('fc1b')                                                   # (D, 1, H)
    fc2w = stack('fc2w', jnp.bfloat16)                                     # (D, H, E)
    fc2b = stack('fc2b')                                                   # (D, 1, E)

    const = lambda *shape: (lambda b: tuple(0 for _ in shape))
    weight_spec = lambda arr: pl.BlockSpec(arr.shape, const(*arr.shape))

    out = pl.pallas_call(
        vit_kernel,
        out_shape=jax.ShapeDtypeStruct((B, 1, NUM_CLASSES), jnp.float32),
        grid_spec=pltpu.PrefetchScalarGridSpec(
            num_scalar_prefetch=0,
            grid=(B,),
            in_specs=[
                pl.BlockSpec((1, NTOK_PAD, CPP), lambda b: (b, 0, 0)),     # patches
                weight_spec(convw),
                weight_spec(addvec),
                weight_spec(ln1w), weight_spec(ln1b),
                weight_spec(qkvw), weight_spec(projw), weight_spec(projb),
                weight_spec(ln2w), weight_spec(ln2b),
                weight_spec(fc1w), weight_spec(fc1b),
                weight_spec(fc2w), weight_spec(fc2b),
                weight_spec(params['normw']), weight_spec(params['normb']),
                weight_spec(params['headw']), weight_spec(params['headb']),
            ],
            out_specs=pl.BlockSpec((1, 1, NUM_CLASSES), lambda b: (b, 0, 0)),
        ),
        compiler_params=pltpu.CompilerParams(dimension_semantics=("parallel",)),
    )(patches_ext, convw, addvec,
      ln1w, ln1b, qkvw, projw, projb,
      ln2w, ln2b, fc1w, fc1b, fc2w, fc2b,
      params['normw'], params['normb'], params['headw'], params['headb'])

    return out.reshape(B, NUM_CLASSES)


# ---------------- pure-JAX reference (f32, exact erf GELU, for verification) ----------------

def ref_block(x, p):
    xn = _layernorm(x, p['ln1w'], p['ln1b'], 1e-6)
    qkv = xn @ p['qkvw']
    B, N, _ = qkv.shape
    qkv = qkv.reshape(B, N, 3, HEADS, HEAD_DIM).transpose(2, 0, 3, 1, 4)
    q, k, v = qkv[0], qkv[1], qkv[2]
    dots = jnp.einsum('bhid,bhjd->bhij', q, k) * (HEAD_DIM ** -0.5)
    attn = jax.nn.softmax(dots, axis=-1)
    out = jnp.einsum('bhij,bhjd->bhid', attn, v)
    out = out.transpose(0, 2, 1, 3).reshape(B, N, EMBED)
    out = out @ p['projw'] + p['projb']
    x = x + out
    xn2 = _layernorm(x, p['ln2w'], p['ln2b'], 1e-6)
    h1 = _gelu_erf(xn2 @ p['fc1w'] + p['fc1b'])
    return x + (h1 @ p['fc2w'] + p['fc2b'])


def vit_reference(x_img, params):
    B = x_img.shape[0]
    patches = _im2col(x_img)
    w_flat = params['conv_w'].reshape(EMBED, CPP).T
    x = patches @ w_flat + params['conv_b']
    cls = jnp.broadcast_to(params['cls_token'], (B, 1, EMBED))
    x = jnp.concatenate([cls, x], axis=1) + params['pos_embed']
    for blk in params['blocks']:
        x = ref_block(x, blk)
    cls = x[:, 0, :]
    cls = _layernorm(cls, params['normw'], params['normb'], 1e-5)
    return cls @ params['headw'] + params['headb']


# ---------------- deterministic parameter init ----------------

def trunc_normal(key, shape, std=0.02):
    return jax.random.truncated_normal(key, -2.0, 2.0, shape, jnp.float32) * std


def init_params(key):
    ks = jax.random.split(key, 8 + DEPTH)
    params = {
        'conv_w': trunc_normal(ks[0], (EMBED, IN_CHANS, PATCH, PATCH)),
        'conv_b': trunc_normal(ks[1], (EMBED,)),
        'pos_embed': trunc_normal(ks[2], (1, NTOK, EMBED)),
        'cls_token': trunc_normal(ks[3], (1, 1, EMBED)),
        'normw': jnp.ones((1, EMBED), jnp.float32),
        'normb': jnp.zeros((1, EMBED), jnp.float32),
        'headw': trunc_normal(ks[4], (EMBED, NUM_CLASSES)),
        'headb': jnp.zeros((1, NUM_CLASSES), jnp.float32),
        'blocks': [],
    }
    for i in range(DEPTH):
        bk = jax.random.split(ks[8 + i], 4)
        params['blocks'].append({
            'ln1w': jnp.ones((1, EMBED), jnp.float32),
            'ln1b': jnp.zeros((1, EMBED), jnp.float32),
            'qkvw': trunc_normal(bk[0], (EMBED, 3 * EMBED)),
            'projw': trunc_normal(bk[1], (EMBED, EMBED)),
            'projb': jnp.zeros((1, EMBED), jnp.float32),
            'ln2w': jnp.ones((1, EMBED), jnp.float32),
            'ln2b': jnp.zeros((1, EMBED), jnp.float32),
            'fc1w': trunc_normal(bk[2], (EMBED, MLP_HIDDEN)),
            'fc1b': jnp.zeros((1, MLP_HIDDEN), jnp.float32),
            'fc2w': trunc_normal(bk[3], (MLP_HIDDEN, EMBED)),
            'fc2b': jnp.zeros((1, EMBED), jnp.float32),
        })
    return params


if __name__ == "__main__":
    key = jax.random.PRNGKey(0)
    k_x, k_p = jax.random.split(key)
    x_img = jax.random.normal(k_x, (2, IN_CHANS, IMG, IMG), jnp.float32)  # NCHW
    params = init_params(k_p)

    fwd = jax.jit(vit_forward)
    out = jax.block_until_ready(fwd(x_img, params))

    ref = vit_reference(x_img, params)
    assert out.shape == (2, NUM_CLASSES)
    # tolerance loosened for bf16 matmul operands, tanh GELU and the approx
    # softmax reciprocal (residual stream / LN / softmax / head stay f32)
    max_err = float(jnp.max(jnp.abs(out - ref)))
    assert jnp.allclose(out, ref, rtol=5e-2, atol=2e-2), \
        f"mismatch vs reference (max abs err {max_err})"

    print("KERNEL_OK")
</pallas_src>

<mosaic_0001>
module attributes {stable_mosaic.version = 11 : i64} {
  func.func @vit_kernel(%arg0: i32, %arg1: memref<1x24x64xf32, #tpu.memory_space<vmem>>, %arg2: memref<64x32xbf16, #tpu.memory_space<vmem>>, %arg3: memref<24x32xf32, #tpu.memory_space<vmem>>, %arg4: memref<2x1x32xf32, #tpu.memory_space<vmem>>, %arg5: memref<2x1x32xf32, #tpu.memory_space<vmem>>, %arg6: memref<2x32x96xbf16, #tpu.memory_space<vmem>>, %arg7: memref<2x32x32xbf16, #tpu.memory_space<vmem>>, %arg8: memref<2x1x32xf32, #tpu.memory_space<vmem>>, %arg9: memref<2x1x32xf32, #tpu.memory_space<vmem>>, %arg10: memref<2x1x32xf32, #tpu.memory_space<vmem>>, %arg11: memref<2x32x128xbf16, #tpu.memory_space<vmem>>, %arg12: memref<2x1x128xf32, #tpu.memory_space<vmem>>, %arg13: memref<2x128x32xbf16, #tpu.memory_space<vmem>>, %arg14: memref<2x1x32xf32, #tpu.memory_space<vmem>>, %arg15: memref<1x32xf32, #tpu.memory_space<vmem>>, %arg16: memref<1x32xf32, #tpu.memory_space<vmem>>, %arg17: memref<32x10xf32, #tpu.memory_space<vmem>>, %arg18: memref<1x10xf32, #tpu.memory_space<vmem>>, %arg19: memref<1x1x10xf32, #tpu.memory_space<vmem>>) attributes {dimension_semantics = [#tpu.dimension_semantics<parallel>], iteration_bounds = array<i64: 2>, scalar_prefetch = 0 : i64, scratch_operands = 0 : i64, tpu.core_type = #tpu.core_type<tc>, window_params = [{transform_indices = @transform_0, window_bounds = array<i64: 1, 24, 64>}, {pipeline_mode = #tpu.pipeline_mode<synchronous>, transform_indices = @transform_1, window_bounds = array<i64: 64, 32>}, {pipeline_mode = #tpu.pipeline_mode<synchronous>, transform_indices = @transform_2, window_bounds = array<i64: 24, 32>}, {pipeline_mode = #tpu.pipeline_mode<synchronous>, transform_indices = @transform_3, window_bounds = array<i64: 2, 1, 32>}, {pipeline_mode = #tpu.pipeline_mode<synchronous>, transform_indices = @transform_4, window_bounds = array<i64: 2, 1, 32>}, {pipeline_mode = #tpu.pipeline_mode<synchronous>, transform_indices = @transform_5, window_bounds = array<i64: 2, 32, 96>}, {pipeline_mode = #tpu.pipeline_mode<synchronous>, transform_indices = @transform_6, window_bounds = array<i64: 2, 32, 32>}, {pipeline_mode = #tpu.pipeline_mode<synchronous>, transform_indices = @transform_7, window_bounds = array<i64: 2, 1, 32>}, {pipeline_mode = #tpu.pipeline_mode<synchronous>, transform_indices = @transform_8, window_bounds = array<i64: 2, 1, 32>}, {pipeline_mode = #tpu.pipeline_mode<synchronous>, transform_indices = @transform_9, window_bounds = array<i64: 2, 1, 32>}, {pipeline_mode = #tpu.pipeline_mode<synchronous>, transform_indices = @transform_10, window_bounds = array<i64: 2, 32, 128>}, {pipeline_mode = #tpu.pipeline_mode<synchronous>, transform_indices = @transform_11, window_bounds = array<i64: 2, 1, 128>}, {pipeline_mode = #tpu.pipeline_mode<synchronous>, transform_indices = @transform_12, window_bounds = array<i64: 2, 128, 32>}, {pipeline_mode = #tpu.pipeline_mode<synchronous>, transform_indices = @transform_13, window_bounds = array<i64: 2, 1, 32>}, {pipeline_mode = #tpu.pipeline_mode<synchronous>, transform_indices = @transform_14, window_bounds = array<i64: 1, 32>}, {pipeline_mode = #tpu.pipeline_mode<synchronous>, transform_indices = @transform_15, window_bounds = array<i64: 1, 32>}, {pipeline_mode = #tpu.pipeline_mode<synchronous>, transform_indices = @transform_16, window_bounds = array<i64: 32, 10>}, {pipeline_mode = #tpu.pipeline_mode<synchronous>, transform_indices = @transform_17, window_bounds = array<i64: 1, 10>}, {transform_indices = @transform_18, window_bounds = array<i64: 1, 1, 10>}]} {
    %0 = tpu.iota {dimensions = array<i32: 2>} : vector<1x1x24xi32>
    %c17_i32 = arith.constant 17 : i32
    %1 = vector.broadcast %c17_i32 : i32 to vector<1x1x24xi32>
    %2 = arith.cmpi slt, %0, %1 : vector<1x1x24xi32>
    %cst = arith.constant 0.000000e+00 : f32
    %cst_0 = arith.constant -1.000000e+30 : f32
    %3 = vector.broadcast %cst : f32 to vector<1x1x24xf32>
    %4 = vector.broadcast %cst_0 : f32 to vector<1x1x24xf32>
    %5 = arith.select %2, %3, %4 : vector<1x1x24xi1>, vector<1x1x24xf32>
    %c0 = arith.constant 0 : index
    %c0_1 = arith.constant 0 : index
    %c0_2 = arith.constant 0 : index
    %6 = vector.load %arg1[%c0, %c0_1, %c0_2] : memref<1x24x64xf32, #tpu.memory_space<vmem>>, vector<1x24x64xf32>
    %7 = vector.shape_cast %6 : vector<1x24x64xf32> to vector<24x64xf32>
    %8 = arith.truncf %7 : vector<24x64xf32> to vector<24x64xbf16>
    %c0_3 = arith.constant 0 : index
    %c0_4 = arith.constant 0 : index
    %9 = vector.load %arg2[%c0_3, %c0_4] : memref<64x32xbf16, #tpu.memory_space<vmem>>, vector<64x32xbf16>
    %cst_5 = arith.constant dense<0.000000e+00> : vector<24x32xf32>
    %10 = tpu.matmul %8, %9, %cst_5 {dimension_numbers = #tpu.dot_dimension_numbers<[1], [0], [0], [1], [0, 0, 1, 1], [], []>} : vector<24x64xbf16>, vector<64x32xbf16>, vector<24x32xf32> -> vector<24x32xf32>
    %c0_6 = arith.constant 0 : index
    %c0_7 = arith.constant 0 : index
    %11 = vector.load %arg3[%c0_6, %c0_7] : memref<24x32xf32, #tpu.memory_space<vmem>>, vector<24x32xf32>
    %12 = arith.addf %10, %11 : vector<24x32xf32>
    %c0_8 = arith.constant 0 : index
    %c0_9 = arith.constant 0 : index
    %c0_10 = arith.constant 0 : index
    %13 = vector.load %arg4[%c0_8, %c0_9, %c0_10] : memref<2x1x32xf32, #tpu.memory_space<vmem>>, vector<1x1x32xf32>
    %14 = vector.shape_cast %13 : vector<1x1x32xf32> to vector<1x32xf32>
    %c0_11 = arith.constant 0 : index
    %c0_12 = arith.constant 0 : index
    %c0_13 = arith.constant 0 : index
    %15 = vector.load %arg5[%c0_11, %c0_12, %c0_13] : memref<2x1x32xf32, #tpu.memory_space<vmem>>, vector<1x1x32xf32>
    %16 = vector.shape_cast %15 : vector<1x1x32xf32> to vector<1x32xf32>
    %cst_14 = arith.constant dense<0.000000e+00> : vector<24xf32>
    %17 = vector.multi_reduction <add>, %12, %cst_14 [1] : vector<24x32xf32> to vector<24xf32>
    %18 = vector.shape_cast %17 : vector<24xf32> to vector<24x1xf32>
    %cst_15 = arith.constant 3.200000e+01 : f32
    %19 = vector.broadcast %cst_15 : f32 to vector<24x1xf32>
    %20 = arith.divf %18, %19 : vector<24x1xf32>
    %21 = vector.broadcast %20 : vector<24x1xf32> to vector<24x32xf32>
    %22 = arith.subf %12, %21 : vector<24x32xf32>
    %23 = arith.mulf %22, %22 : vector<24x32xf32>
    %cst_16 = arith.constant dense<0.000000e+00> : vector<24xf32>
    %24 = vector.multi_reduction <add>, %23, %cst_16 [1] : vector<24x32xf32> to vector<24xf32>
    %25 = vector.shape_cast %24 : vector<24xf32> to vector<24x1xf32>
    %cst_17 = arith.constant 3.200000e+01 : f32
    %26 = vector.broadcast %cst_17 : f32 to vector<24x1xf32>
    %27 = arith.divf %25, %26 : vector<24x1xf32>
    %28 = vector.broadcast %20 : vector<24x1xf32> to vector<24x32xf32>
    %29 = arith.subf %12, %28 : vector<24x32xf32>
    %cst_18 = arith.constant 9.99999997E-7 : f32
    %30 = vector.broadcast %cst_18 : f32 to vector<24x1xf32>
    %31 = arith.addf %27, %30 : vector<24x1xf32>
    %32 = math.rsqrt %31 : vector<24x1xf32>
    %33 = vector.broadcast %32 : vector<24x1xf32> to vector<24x32xf32>
    %34 = arith.mulf %29, %33 : vector<24x32xf32>
    %35 = vector.broadcast %14 : vector<1x32xf32> to vector<24x32xf32>
    %36 = arith.mulf %34, %35 : vector<24x32xf32>
    %37 = vector.broadcast %16 : vector<1x32xf32> to vector<24x32xf32>
    %38 = arith.addf %36, %37 : vector<24x32xf32>
    %39 = arith.truncf %38 : vector<24x32xf32> to vector<24x32xbf16>
    %c0_19 = arith.constant 0 : index
    %c0_20 = arith.constant 0 : index
    %c0_21 = arith.constant 0 : index
    %40 = vector.load %arg6[%c0_19, %c0_20, %c0_21] : memref<2x32x96xbf16, #tpu.memory_space<vmem>>, vector<1x32x96xbf16>
    %41 = vector.shape_cast %40 : vector<1x32x96xbf16> to vector<32x96xbf16>
    %cst_22 = arith.constant dense<0.000000e+00> : vector<24x96xf32>
    %42 = tpu.matmul %39, %41, %cst_22 {dimension_numbers = #tpu.dot_dimension_numbers<[1], [0], [0], [1], [0, 0, 1, 1], [], []>} : vector<24x32xbf16>, vector<32x96xbf16>, vector<24x96xf32> -> vector<24x96xf32>
    %43 = vector.extract_strided_slice %42 {offsets = [0, 0], sizes = [24, 32], strides = [1, 1]} : vector<24x96xf32> to vector<24x32xf32>
    %44 = vector.shape_cast %43 : vector<24x32xf32> to vector<24x4x8xf32>
    %45 = vector.extract_strided_slice %42 {offsets = [0, 32], sizes = [24, 32], strides = [1, 1]} : vector<24x96xf32> to vector<24x32xf32>
    %46 = vector.shape_cast %45 : vector<24x32xf32> to vector<24x4x8xf32>
    %47 = vector.extract_strided_slice %42 {offsets = [0, 64], sizes = [24, 32], strides = [1, 1]} : vector<24x96xf32> to vector<24x32xf32>
    %48 = vector.shape_cast %47 : vector<24x32xf32> to vector<24x4x8xf32>
    "tpu.trace_start"() <{level = 10 : i32, message = "nhd,mhd->hnm"}> : () -> ()
    %cst_23 = arith.constant dense<0.000000e+00> : vector<4x24x24xf32>
    %49 = tpu.matmul %44, %46, %cst_23 {dimension_numbers = #tpu.dot_dimension_numbers<[2], [2], [0], [0], [0, 1, 0, 0, 1, 0], [1], [1]>} : vector<24x4x8xf32>, vector<24x4x8xf32>, vector<4x24x24xf32> -> vector<4x24x24xf32>
    "tpu.trace_stop"() : () -> ()
    %cst_24 = arith.constant 0.353553385 : f32
    %50 = vector.broadcast %cst_24 : f32 to vector<4x24x24xf32>
    %51 = arith.mulf %49, %50 : vector<4x24x24xf32>
    %52 = vector.broadcast %5 : vector<1x1x24xf32> to vector<4x24x24xf32>
    %53 = arith.addf %51, %52 : vector<4x24x24xf32>
    %cst_25 = arith.constant dense<0xFF800000> : vector<4x24xf32>
    %54 = vector.multi_reduction <maximumf>, %53, %cst_25 [2] : vector<4x24x24xf32> to vector<4x24xf32>
    %55 = vector.shape_cast %54 : vector<4x24xf32> to vector<4x24x1xf32>
    %56 = vector.broadcast %55 : vector<4x24x1xf32> to vector<4x24x24xf32>
    %57 = arith.subf %53, %56 : vector<4x24x24xf32>
    %58 = math.exp %57 : vector<4x24x24xf32>
    %cst_26 = arith.constant dense<0.000000e+00> : vector<4x24xf32>
    %59 = vector.multi_reduction <add>, %58, %cst_26 [2] : vector<4x24x24xf32> to vector<4x24xf32>
    %60 = vector.shape_cast %59 : vector<4x24xf32> to vector<4x24x1xf32>
    %61 = tpu.reciprocal %60 {approx = true} : vector<4x24x1xf32> -> vector<4x24x1xf32>
    %62 = vector.broadcast %61 : vector<4x24x1xf32> to vector<4x24x24xf32>
    %63 = arith.mulf %58, %62 : vector<4x24x24xf32>
    "tpu.trace_start"() <{level = 10 : i32, message = "hnm,mhd->nhd"}> : () -> ()
    %cst_27 = arith.constant dense<0.000000e+00> : vector<4x8x24xf32>
    %64 = tpu.matmul %48, %63, %cst_27 {dimension_numbers = #tpu.dot_dimension_numbers<[0], [2], [2], [1], [0, 1, 0, 2, 1, 1], [1], [0]>} : vector<24x4x8xf32>, vector<4x24x24xf32>, vector<4x8x24xf32> -> vector<4x8x24xf32>
    %65 = tpu.transpose %64, [2, 0, 1] : vector<4x8x24xf32> -> vector<24x4x8xf32>
    "tpu.trace_stop"() : () -> ()
    %66 = vector.shape_cast %65 : vector<24x4x8xf32> to vector<24x32xf32>
    %67 = arith.truncf %66 : vector<24x32xf32> to vector<24x32xbf16>
    %c0_28 = arith.constant 0 : index
    %c0_29 = arith.constant 0 : index
    %c0_30 = arith.constant 0 : index
    %68 = vector.load %arg7[%c0_28, %c0_29, %c0_30] : memref<2x32x32xbf16, #tpu.memory_space<vmem>>, vector<1x32x32xbf16>
    %69 = vector.shape_cast %68 : vector<1x32x32xbf16> to vector<32x32xbf16>
    %cst_31 = arith.constant dense<0.000000e+00> : vector<24x32xf32>
    %70 = tpu.matmul %67, %69, %cst_31 {dimension_numbers = #tpu.dot_dimension_numbers<[1], [0], [0], [1], [0, 0, 1, 1], [], []>} : vector<24x32xbf16>, vector<32x32xbf16>, vector<24x32xf32> -> vector<24x32xf32>
    %71 = arith.addf %12, %70 : vector<24x32xf32>
    %c0_32 = arith.constant 0 : index
    %c0_33 = arith.constant 0 : index
    %c0_34 = arith.constant 0 : index
    %72 = vector.load %arg8[%c0_32, %c0_33, %c0_34] : memref<2x1x32xf32, #tpu.memory_space<vmem>>, vector<1x1x32xf32>
    %73 = vector.shape_cast %72 : vector<1x1x32xf32> to vector<1x32xf32>
    %74 = vector.broadcast %73 : vector<1x32xf32> to vector<24x32xf32>
    %75 = arith.addf %71, %74 : vector<24x32xf32>
    %c0_35 = arith.constant 0 : index
    %c0_36 = arith.constant 0 : index
    %c0_37 = arith.constant 0 : index
    %76 = vector.load %arg9[%c0_35, %c0_36, %c0_37] : memref<2x1x32xf32, #tpu.memory_space<vmem>>, vector<1x1x32xf32>
    %77 = vector.shape_cast %76 : vector<1x1x32xf32> to vector<1x32xf32>
    %c0_38 = arith.constant 0 : index
    %c0_39 = arith.constant 0 : index
    %c0_40 = arith.constant 0 : index
    %78 = vector.load %arg10[%c0_38, %c0_39, %c0_40] : memref<2x1x32xf32, #tpu.memory_space<vmem>>, vector<1x1x32xf32>
    %79 = vector.shape_cast %78 : vector<1x1x32xf32> to vector<1x32xf32>
    %cst_41 = arith.constant dense<0.000000e+00> : vector<24xf32>
    %80 = vector.multi_reduction <add>, %75, %cst_41 [1] : vector<24x32xf32> to vector<24xf32>
    %81 = vector.shape_cast %80 : vector<24xf32> to vector<24x1xf32>
    %cst_42 = arith.constant 3.200000e+01 : f32
    %82 = vector.broadcast %cst_42 : f32 to vector<24x1xf32>
    %83 = arith.divf %81, %82 : vector<24x1xf32>
    %84 = vector.broadcast %83 : vector<24x1xf32> to vector<24x32xf32>
    %85 = arith.subf %75, %84 : vector<24x32xf32>
    %86 = arith.mulf %85, %85 : vector<24x32xf32>
    %cst_43 = arith.constant dense<0.000000e+00> : vector<24xf32>
    %87 = vector.multi_reduction <add>, %86, %cst_43 [1] : vector<24x32xf32> to vector<24xf32>
    %88 = vector.shape_cast %87 : vector<24xf32> to vector<24x1xf32>
    %cst_44 = arith.constant 3.200000e+01 : f32
    %89 = vector.broadcast %cst_44 : f32 to vector<24x1xf32>
    %90 = arith.divf %88, %89 : vector<24x1xf32>
    %91 = vector.broadcast %83 : vector<24x1xf32> to vector<24x32xf32>
    %92 = arith.subf %75, %91 : vector<24x32xf32>
    %cst_45 = arith.constant 9.99999997E-7 : f32
    %93 = vector.broadcast %cst_45 : f32 to vector<24x1xf32>
    %94 = arith.addf %90, %93 : vector<24x1xf32>
    %95 = math.rsqrt %94 : vector<24x1xf32>
    %96 = vector.broadcast %95 : vector<24x1xf32> to vector<24x32xf32>
    %97 = arith.mulf %92, %96 : vector<24x32xf32>
    %98 = vector.broadcast %77 : vector<1x32xf32> to vector<24x32xf32>
    %99 = arith.mulf %97, %98 : vector<24x32xf32>
    %100 = vector.broadcast %79 : vector<1x32xf32> to vector<24x32xf32>
    %101 = arith.addf %99, %100 : vector<24x32xf32>
    %102 = arith.truncf %101 : vector<24x32xf32> to vector<24x32xbf16>
    %c0_46 = arith.constant 0 : index
    %c0_47 = arith.constant 0 : index
    %c0_48 = arith.constant 0 : index
    %103 = vector.load %arg11[%c0_46, %c0_47, %c0_48] : memref<2x32x128xbf16, #tpu.memory_space<vmem>>, vector<1x32x128xbf16>
    %104 = vector.shape_cast %103 : vector<1x32x128xbf16> to vector<32x128xbf16>
    %cst_49 = arith.constant dense<0.000000e+00> : vector<24x128xf32>
    %105 = tpu.matmul %102, %104, %cst_49 {dimension_numbers = #tpu.dot_dimension_numbers<[1], [0], [0], [1], [0, 0, 1, 1], [], []>} : vector<24x32xbf16>, vector<32x128xbf16>, vector<24x128xf32> -> vector<24x128xf32>
    %c0_50 = arith.constant 0 : index
    %c0_51 = arith.constant 0 : index
    %c0_52 = arith.constant 0 : index
    %106 = vector.load %arg12[%c0_50, %c0_51, %c0_52] : memref<2x1x128xf32, #tpu.memory_space<vmem>>, vector<1x1x128xf32>
    %107 = vector.shape_cast %106 : vector<1x1x128xf32> to vector<1x128xf32>
    %108 = vector.broadcast %107 : vector<1x128xf32> to vector<24x128xf32>
    %109 = arith.addf %105, %108 : vector<24x128xf32>
    %cst_53 = arith.constant 0.636619746 : f32
    %110 = math.sqrt %cst_53 : f32
    %cst_54 = arith.constant 5.000000e-01 : f32
    %111 = vector.broadcast %cst_54 : f32 to vector<24x128xf32>
    %112 = arith.mulf %111, %109 : vector<24x128xf32>
    %cst_55 = arith.constant 4.471500e-02 : f32
    %113 = vector.broadcast %cst_55 : f32 to vector<24x128xf32>
    %114 = arith.mulf %113, %109 : vector<24x128xf32>
    %115 = arith.mulf %114, %109 : vector<24x128xf32>
    %116 = arith.mulf %115, %109 : vector<24x128xf32>
    %117 = arith.addf %109, %116 : vector<24x128xf32>
    %118 = vector.broadcast %110 : f32 to vector<24x128xf32>
    %119 = arith.mulf %118, %117 : vector<24x128xf32>
    %120 = math.tanh %119 : vector<24x128xf32>
    %cst_56 = arith.constant 1.000000e+00 : f32
    %121 = vector.broadcast %cst_56 : f32 to vector<24x128xf32>
    %122 = arith.addf %121, %120 : vector<24x128xf32>
    %123 = arith.mulf %112, %122 : vector<24x128xf32>
    %124 = arith.truncf %123 : vector<24x128xf32> to vector<24x128xbf16>
    %c0_57 = arith.constant 0 : index
    %c0_58 = arith.constant 0 : index
    %c0_59 = arith.constant 0 : index
    %125 = vector.load %arg13[%c0_57, %c0_58, %c0_59] : memref<2x128x32xbf16, #tpu.memory_space<vmem>>, vector<1x128x32xbf16>
    %126 = vector.shape_cast %125 : vector<1x128x32xbf16> to vector<128x32xbf16>
    %cst_60 = arith.constant dense<0.000000e+00> : vector<24x32xf32>
    %127 = tpu.matmul %124, %126, %cst_60 {dimension_numbers = #tpu.dot_dimension_numbers<[1], [0], [0], [1], [0, 0, 1, 1], [], []>} : vector<24x128xbf16>, vector<128x32xbf16>, vector<24x32xf32> -> vector<24x32xf32>
    %128 = arith.addf %75, %127 : vector<24x32xf32>
    %c0_61 = arith.constant 0 : index
    %c0_62 = arith.constant 0 : index
    %c0_63 = arith.constant 0 : index
    %129 = vector.load %arg14[%c0_61, %c0_62, %c0_63] : memref<2x1x32xf32, #tpu.memory_space<vmem>>, vector<1x1x32xf32>
    %130 = vector.shape_cast %129 : vector<1x1x32xf32> to vector<1x32xf32>
    %131 = vector.broadcast %130 : vector<1x32xf32> to vector<24x32xf32>
    %132 = arith.addf %128, %131 : vector<24x32xf32>
    %c1 = arith.constant 1 : index
    %c0_64 = arith.constant 0 : index
    %c0_65 = arith.constant 0 : index
    %133 = vector.load %arg4[%c1, %c0_64, %c0_65] : memref<2x1x32xf32, #tpu.memory_space<vmem>>, vector<1x1x32xf32>
    %134 = vector.shape_cast %133 : vector<1x1x32xf32> to vector<1x32xf32>
    %c1_66 = arith.constant 1 : index
    %c0_67 = arith.constant 0 : index
    %c0_68 = arith.constant 0 : index
    %135 = vector.load %arg5[%c1_66, %c0_67, %c0_68] : memref<2x1x32xf32, #tpu.memory_space<vmem>>, vector<1x1x32xf32>
    %136 = vector.shape_cast %135 : vector<1x1x32xf32> to vector<1x32xf32>
    %cst_69 = arith.constant dense<0.000000e+00> : vector<24xf32>
    %137 = vector.multi_reduction <add>, %132, %cst_69 [1] : vector<24x32xf32> to vector<24xf32>
    %138 = vector.shape_cast %137 : vector<24xf32> to vector<24x1xf32>
    %cst_70 = arith.constant 3.200000e+01 : f32
    %139 = vector.broadcast %cst_70 : f32 to vector<24x1xf32>
    %140 = arith.divf %138, %139 : vector<24x1xf32>
    %141 = vector.broadcast %140 : vector<24x1xf32> to vector<24x32xf32>
    %142 = arith.subf %132, %141 : vector<24x32xf32>
    %143 = arith.mulf %142, %142 : vector<24x32xf32>
    %cst_71 = arith.constant dense<0.000000e+00> : vector<24xf32>
    %144 = vector.multi_reduction <add>, %143, %cst_71 [1] : vector<24x32xf32> to vector<24xf32>
    %145 = vector.shape_cast %144 : vector<24xf32> to vector<24x1xf32>
    %cst_72 = arith.constant 3.200000e+01 : f32
    %146 = vector.broadcast %cst_72 : f32 to vector<24x1xf32>
    %147 = arith.divf %145, %146 : vector<24x1xf32>
    %148 = vector.broadcast %140 : vector<24x1xf32> to vector<24x32xf32>
    %149 = arith.subf %132, %148 : vector<24x32xf32>
    %cst_73 = arith.constant 9.99999997E-7 : f32
    %150 = vector.broadcast %cst_73 : f32 to vector<24x1xf32>
    %151 = arith.addf %147, %150 : vector<24x1xf32>
    %152 = math.rsqrt %151 : vector<24x1xf32>
    %153 = vector.broadcast %152 : vector<24x1xf32> to vector<24x32xf32>
    %154 = arith.mulf %149, %153 : vector<24x32xf32>
    %155 = vector.broadcast %134 : vector<1x32xf32> to vector<24x32xf32>
    %156 = arith.mulf %154, %155 : vector<24x32xf32>
    %157 = vector.broadcast %136 : vector<1x32xf32> to vector<24x32xf32>
    %158 = arith.addf %156, %157 : vector<24x32xf32>
    %159 = arith.truncf %158 : vector<24x32xf32> to vector<24x32xbf16>
    %c1_74 = arith.constant 1 : index
    %c0_75 = arith.constant 0 : index
    %c0_76 = arith.constant 0 : index
    %160 = vector.load %arg6[%c1_74, %c0_75, %c0_76] : memref<2x32x96xbf16, #tpu.memory_space<vmem>>, vector<1x32x96xbf16>
    %161 = vector.shape_cast %160 : vector<1x32x96xbf16> to vector<32x96xbf16>
    %cst_77 = arith.constant dense<0.000000e+00> : vector<24x96xf32>
    %162 = tpu.matmul %159, %161, %cst_77 {dimension_numbers = #tpu.dot_dimension_numbers<[1], [0], [0], [1], [0, 0, 1, 1], [], []>} : vector<24x32xbf16>, vector<32x96xbf16>, vector<24x96xf32> -> vector<24x96xf32>
    %163 = vector.extract_strided_slice %162 {offsets = [0, 0], sizes = [24, 32], strides = [1, 1]} : vector<24x96xf32> to vector<24x32xf32>
    %164 = vector.shape_cast %163 : vector<24x32xf32> to vector<24x4x8xf32>
    %165 = vector.extract_strided_slice %162 {offsets = [0, 32], sizes = [24, 32], strides = [1, 1]} : vector<24x96xf32> to vector<24x32xf32>
    %166 = vector.shape_cast %165 : vector<24x32xf32> to vector<24x4x8xf32>
    %167 = vector.extract_strided_slice %162 {offsets = [0, 64], sizes = [24, 32], strides = [1, 1]} : vector<24x96xf32> to vector<24x32xf32>
    %168 = vector.shape_cast %167 : vector<24x32xf32> to vector<24x4x8xf32>
    "tpu.trace_start"() <{level = 10 : i32, message = "nhd,mhd->hnm"}> : () -> ()
    %cst_78 = arith.constant dense<0.000000e+00> : vector<4x24x24xf32>
    %169 = tpu.matmul %164, %166, %cst_78 {dimension_numbers = #tpu.dot_dimension_numbers<[2], [2], [0], [0], [0, 1, 0, 0, 1, 0], [1], [1]>} : vector<24x4x8xf32>, vector<24x4x8xf32>, vector<4x24x24xf32> -> vector<4x24x24xf32>
    "tpu.trace_stop"() : () -> ()
    %cst_79 = arith.constant 0.353553385 : f32
    %170 = vector.broadcast %cst_79 : f32 to vector<4x24x24xf32>
    %171 = arith.mulf %169, %170 : vector<4x24x24xf32>
    %172 = vector.broadcast %5 : vector<1x1x24xf32> to vector<4x24x24xf32>
    %173 = arith.addf %171, %172 : vector<4x24x24xf32>
    %cst_80 = arith.constant dense<0xFF800000> : vector<4x24xf32>
    %174 = vector.multi_reduction <maximumf>, %173, %cst_80 [2] : vector<4x24x24xf32> to vector<4x24xf32>
    %175 = vector.shape_cast %174 : vector<4x24xf32> to vector<4x24x1xf32>
    %176 = vector.broadcast %175 : vector<4x24x1xf32> to vector<4x24x24xf32>
    %177 = arith.subf %173, %176 : vector<4x24x24xf32>
    %178 = math.exp %177 : vector<4x24x24xf32>
    %cst_81 = arith.constant dense<0.000000e+00> : vector<4x24xf32>
    %179 = vector.multi_reduction <add>, %178, %cst_81 [2] : vector<4x24x24xf32> to vector<4x24xf32>
    %180 = vector.shape_cast %179 : vector<4x24xf32> to vector<4x24x1xf32>
    %181 = tpu.reciprocal %180 {approx = true} : vector<4x24x1xf32> -> vector<4x24x1xf32>
    %182 = vector.broadcast %181 : vector<4x24x1xf32> to vector<4x24x24xf32>
    %183 = arith.mulf %178, %182 : vector<4x24x24xf32>
    "tpu.trace_start"() <{level = 10 : i32, message = "hnm,mhd->nhd"}> : () -> ()
    %cst_82 = arith.constant dense<0.000000e+00> : vector<4x8x24xf32>
    %184 = tpu.matmul %168, %183, %cst_82 {dimension_numbers = #tpu.dot_dimension_numbers<[0], [2], [2], [1], [0, 1, 0, 2, 1, 1], [1], [0]>} : vector<24x4x8xf32>, vector<4x24x24xf32>, vector<4x8x24xf32> -> vector<4x8x24xf32>
    %185 = tpu.transpose %184, [2, 0, 1] : vector<4x8x24xf32> -> vector<24x4x8xf32>
    "tpu.trace_stop"() : () -> ()
    %186 = vector.shape_cast %185 : vector<24x4x8xf32> to vector<24x32xf32>
    %187 = arith.truncf %186 : vector<24x32xf32> to vector<24x32xbf16>
    %c1_83 = arith.constant 1 : index
    %c0_84 = arith.constant 0 : index
    %c0_85 = arith.constant 0 : index
    %188 = vector.load %arg7[%c1_83, %c0_84, %c0_85] : memref<2x32x32xbf16, #tpu.memory_space<vmem>>, vector<1x32x32xbf16>
    %189 = vector.shape_cast %188 : vector<1x32x32xbf16> to vector<32x32xbf16>
    %cst_86 = arith.constant dense<0.000000e+00> : vector<24x32xf32>
    %190 = tpu.matmul %187, %189, %cst_86 {dimension_numbers = #tpu.dot_dimension_numbers<[1], [0], [0], [1], [0, 0, 1, 1], [], []>} : vector<24x32xbf16>, vector<32x32xbf16>, vector<24x32xf32> -> vector<24x32xf32>
    %191 = arith.addf %132, %190 : vector<24x32xf32>
    %c1_87 = arith.constant 1 : index
    %c0_88 = arith.constant 0 : index
    %c0_89 = arith.constant 0 : index
    %192 = vector.load %arg8[%c1_87, %c0_88, %c0_89] : memref<2x1x32xf32, #tpu.memory_space<vmem>>, vector<1x1x32xf32>
    %193 = vector.shape_cast %192 : vector<1x1x32xf32> to vector<1x32xf32>
    %194 = vector.broadcast %193 : vector<1x32xf32> to vector<24x32xf32>
    %195 = arith.addf %191, %194 : vector<24x32xf32>
    %c1_90 = arith.constant 1 : index
    %c0_91 = arith.constant 0 : index
    %c0_92 = arith.constant 0 : index
    %196 = vector.load %arg9[%c1_90, %c0_91, %c0_92] : memref<2x1x32xf32, #tpu.memory_space<vmem>>, vector<1x1x32xf32>
    %197 = vector.shape_cast %196 : vector<1x1x32xf32> to vector<1x32xf32>
    %c1_93 = arith.constant 1 : index
    %c0_94 = arith.constant 0 : index
    %c0_95 = arith.constant 0 : index
    %198 = vector.load %arg10[%c1_93, %c0_94, %c0_95] : memref<2x1x32xf32, #tpu.memory_space<vmem>>, vector<1x1x32xf32>
    %199 = vector.shape_cast %198 : vector<1x1x32xf32> to vector<1x32xf32>
    %cst_96 = arith.constant dense<0.000000e+00> : vector<24xf32>
    %200 = vector.multi_reduction <add>, %195, %cst_96 [1] : vector<24x32xf32> to vector<24xf32>
    %201 = vector.shape_cast %200 : vector<24xf32> to vector<24x1xf32>
    %cst_97 = arith.constant 3.200000e+01 : f32
    %202 = vector.broadcast %cst_97 : f32 to vector<24x1xf32>
    %203 = arith.divf %201, %202 : vector<24x1xf32>
    %204 = vector.broadcast %203 : vector<24x1xf32> to vector<24x32xf32>
    %205 = arith.subf %195, %204 : vector<24x32xf32>
    %206 = arith.mulf %205, %205 : vector<24x32xf32>
    %cst_98 = arith.constant dense<0.000000e+00> : vector<24xf32>
    %207 = vector.multi_reduction <add>, %206, %cst_98 [1] : vector<24x32xf32> to vector<24xf32>
    %208 = vector.shape_cast %207 : vector<24xf32> to vector<24x1xf32>
    %cst_99 = arith.constant 3.200000e+01 : f32
    %209 = vector.broadcast %cst_99 : f32 to vector<24x1xf32>
    %210 = arith.divf %208, %209 : vector<24x1xf32>
    %211 = vector.broadcast %203 : vector<24x1xf32> to vector<24x32xf32>
    %212 = arith.subf %195, %211 : vector<24x32xf32>
    %cst_100 = arith.constant 9.99999997E-7 : f32
    %213 = vector.broadcast %cst_100 : f32 to vector<24x1xf32>
    %214 = arith.addf %210, %213 : vector<24x1xf32>
    %215 = math.rsqrt %214 : vector<24x1xf32>
    %216 = vector.broadcast %215 : vector<24x1xf32> to vector<24x32xf32>
    %217 = arith.mulf %212, %216 : vector<24x32xf32>
    %218 = vector.broadcast %197 : vector<1x32xf32> to vector<24x32xf32>
    %219 = arith.mulf %217, %218 : vector<24x32xf32>
    %220 = vector.broadcast %199 : vector<1x32xf32> to vector<24x32xf32>
    %221 = arith.addf %219, %220 : vector<24x32xf32>
    %222 = arith.truncf %221 : vector<24x32xf32> to vector<24x32xbf16>
    %c1_101 = arith.constant 1 : index
    %c0_102 = arith.constant 0 : index
    %c0_103 = arith.constant 0 : index
    %223 = vector.load %arg11[%c1_101, %c0_102, %c0_103] : memref<2x32x128xbf16, #tpu.memory_space<vmem>>, vector<1x32x128xbf16>
    %224 = vector.shape_cast %223 : vector<1x32x128xbf16> to vector<32x128xbf16>
    %cst_104 = arith.constant dense<0.000000e+00> : vector<24x128xf32>
    %225 = tpu.matmul %222, %224, %cst_104 {dimension_numbers = #tpu.dot_dimension_numbers<[1], [0], [0], [1], [0, 0, 1, 1], [], []>} : vector<24x32xbf16>, vector<32x128xbf16>, vector<24x128xf32> -> vector<24x128xf32>
    %c1_105 = arith.constant 1 : index
    %c0_106 = arith.constant 0 : index
    %c0_107 = arith.constant 0 : index
    %226 = vector.load %arg12[%c1_105, %c0_106, %c0_107] : memref<2x1x128xf32, #tpu.memory_space<vmem>>, vector<1x1x128xf32>
    %227 = vector.shape_cast %226 : vector<1x1x128xf32> to vector<1x128xf32>
    %228 = vector.broadcast %227 : vector<1x128xf32> to vector<24x128xf32>
    %229 = arith.addf %225, %228 : vector<24x128xf32>
    %cst_108 = arith.constant 0.636619746 : f32
    %230 = math.sqrt %cst_108 : f32
    %cst_109 = arith.constant 5.000000e-01 : f32
    %231 = vector.broadcast %cst_109 : f32 to vector<24x128xf32>
    %232 = arith.mulf %231, %229 : vector<24x128xf32>
    %cst_110 = arith.constant 4.471500e-02 : f32
    %233 = vector.broadcast %cst_110 : f32 to vector<24x128xf32>
    %234 = arith.mulf %233, %229 : vector<24x128xf32>
    %235 = arith.mulf %234, %229 : vector<24x128xf32>
    %236 = arith.mulf %235, %229 : vector<24x128xf32>
    %237 = arith.addf %229, %236 : vector<24x128xf32>
    %238 = vector.broadcast %230 : f32 to vector<24x128xf32>
    %239 = arith.mulf %238, %237 : vector<24x128xf32>
    %240 = math.tanh %239 : vector<24x128xf32>
    %cst_111 = arith.constant 1.000000e+00 : f32
    %241 = vector.broadcast %cst_111 : f32 to vector<24x128xf32>
    %242 = arith.addf %241, %240 : vector<24x128xf32>
    %243 = arith.mulf %232, %242 : vector<24x128xf32>
    %244 = arith.truncf %243 : vector<24x128xf32> to vector<24x128xbf16>
    %c1_112 = arith.constant 1 : index
    %c0_113 = arith.constant 0 : index
    %c0_114 = arith.constant 0 : index
    %245 = vector.load %arg13[%c1_112, %c0_113, %c0_114] : memref<2x128x32xbf16, #tpu.memory_space<vmem>>, vector<1x128x32xbf16>
    %246 = vector.shape_cast %245 : vector<1x128x32xbf16> to vector<128x32xbf16>
    %cst_115 = arith.constant dense<0.000000e+00> : vector<24x32xf32>
    %247 = tpu.matmul %244, %246, %cst_115 {dimension_numbers = #tpu.dot_dimension_numbers<[1], [0], [0], [1], [0, 0, 1, 1], [], []>} : vector<24x128xbf16>, vector<128x32xbf16>, vector<24x32xf32> -> vector<24x32xf32>
    %248 = arith.addf %195, %247 : vector<24x32xf32>
    %c1_116 = arith.constant 1 : index
    %c0_117 = arith.constant 0 : index
    %c0_118 = arith.constant 0 : index
    %249 = vector.load %arg14[%c1_116, %c0_117, %c0_118] : memref<2x1x32xf32, #tpu.memory_space<vmem>>, vector<1x1x32xf32>
    %250 = vector.shape_cast %249 : vector<1x1x32xf32> to vector<1x32xf32>
    %251 = vector.broadcast %250 : vector<1x32xf32> to vector<24x32xf32>
    %252 = arith.addf %248, %251 : vector<24x32xf32>
    %253 = vector.extract_strided_slice %252 {offsets = [0, 0], sizes = [1, 32], strides = [1, 1]} : vector<24x32xf32> to vector<1x32xf32>
    %c0_119 = arith.constant 0 : index
    %c0_120 = arith.constant 0 : index
    %254 = vector.load %arg15[%c0_119, %c0_120] : memref<1x32xf32, #tpu.memory_space<vmem>>, vector<1x32xf32>
    %c0_121 = arith.constant 0 : index
    %c0_122 = arith.constant 0 : index
    %255 = vector.load %arg16[%c0_121, %c0_122] : memref<1x32xf32, #tpu.memory_space<vmem>>, vector<1x32xf32>
    %cst_123 = arith.constant dense<0.000000e+00> : vector<1xf32>
    %256 = vector.multi_reduction <add>, %253, %cst_123 [1] : vector<1x32xf32> to vector<1xf32>
    %257 = vector.shape_cast %256 : vector<1xf32> to vector<1x1xf32>
    %cst_124 = arith.constant 3.200000e+01 : f32
    %258 = vector.broadcast %cst_124 : f32 to vector<1x1xf32>
    %259 = arith.divf %257, %258 : vector<1x1xf32>
    %260 = vector.broadcast %259 : vector<1x1xf32> to vector<1x32xf32>
    %261 = arith.subf %253, %260 : vector<1x32xf32>
    %262 = arith.mulf %261, %261 : vector<1x32xf32>
    %cst_125 = arith.constant dense<0.000000e+00> : vector<1xf32>
    %263 = vector.multi_reduction <add>, %262, %cst_125 [1] : vector<1x32xf32> to vector<1xf32>
    %264 = vector.shape_cast %263 : vector<1xf32> to vector<1x1xf32>
    %cst_126 = arith.constant 3.200000e+01 : f32
    %265 = vector.broadcast %cst_126 : f32 to vector<1x1xf32>
    %266 = arith.divf %264, %265 : vector<1x1xf32>
    %267 = vector.broadcast %259 : vector<1x1xf32> to vector<1x32xf32>
    %268 = arith.subf %253, %267 : vector<1x32xf32>
    %cst_127 = arith.constant 9.99999974E-6 : f32
    %269 = vector.broadcast %cst_127 : f32 to vector<1x1xf32>
    %270 = arith.addf %266, %269 : vector<1x1xf32>
    %271 = math.rsqrt %270 : vector<1x1xf32>
    %272 = vector.broadcast %271 : vector<1x1xf32> to vector<1x32xf32>
    %273 = arith.mulf %268, %272 : vector<1x32xf32>
    %274 = arith.mulf %273, %254 : vector<1x32xf32>
    %275 = arith.addf %274, %255 : vector<1x32xf32>
    %c0_128 = arith.constant 0 : index
    %c0_129 = arith.constant 0 : index
    %276 = vector.load %arg17[%c0_128, %c0_129] : memref<32x10xf32, #tpu.memory_space<vmem>>, vector<32x10xf32>
    %cst_130 = arith.constant dense<0.000000e+00> : vector<1x10xf32>
    %277 = tpu.matmul %275, %276, %cst_130 {dimension_numbers = #tpu.dot_dimension_numbers<[1], [0], [0], [1], [0, 0, 1, 1], [], []>} : vector<1x32xf32>, vector<32x10xf32>, vector<1x10xf32> -> vector<1x10xf32>
    %c0_131 = arith.constant 0 : index
    %c0_132 = arith.constant 0 : index
    %278 = vector.load %arg18[%c0_131, %c0_132] : memref<1x10xf32, #tpu.memory_space<vmem>>, vector<1x10xf32>
    %279 = arith.addf %277, %278 : vector<1x10xf32>
    %280 = vector.shape_cast %279 : vector<1x10xf32> to vector<1x1x10xf32>
    %c0_133 = arith.constant 0 : index
    %c0_134 = arith.constant 0 : index
    %c0_135 = arith.constant 0 : index
    %281 = vector.load %arg19[%c0_133, %c0_134, %c0_135] : memref<1x1x10xf32, #tpu.memory_space<vmem>>, vector<1x1x10xf32>
    tpu.vector_store %arg19[%c0_133, %c0_134, %c0_135], %280 {strides = array<i32>} : memref<1x1x10xf32, #tpu.memory_space<vmem>>, vector<1x1x10xf32>,
    return
  }
  func.func @transform_0(%arg0: i32) -> (i32, i32, i32) {
    %c0_i32 = arith.constant 0 : i32
    %c0_i32_0 = arith.constant 0 : i32
    %c0_i32_1 = arith.constant 0 : i32
    return %arg0, %c0_i32, %c0_i32_0 : i32, i32, i32
  }
  func.func @transform_1(%arg0: i32) -> (i32, i32) {
    %c0_i32 = arith.constant 0 : i32
    %c0_i32_0 = arith.constant 0 : i32
    %c0_i32_1 = arith.constant 0 : i32
    return %c0_i32, %c0_i32_0 : i32, i32
  }
  func.func @transform_2(%arg0: i32) -> (i32, i32) {
    %c0_i32 = arith.constant 0 : i32
    %c0_i32_0 = arith.constant 0 : i32
    %c0_i32_1 = arith.constant 0 : i32
    return %c0_i32, %c0_i32_0 : i32, i32
  }
  func.func @transform_3(%arg0: i32) -> (i32, i32, i32) {
    %c0_i32 = arith.constant 0 : i32
    %c0_i32_0 = arith.constant 0 : i32
    %c0_i32_1 = arith.constant 0 : i32
    %c0_i32_2 = arith.constant 0 : i32
    return %c0_i32, %c0_i32_0, %c0_i32_1 : i32, i32, i32
  }
  func.func @transform_4(%arg0: i32) -> (i32, i32, i32) {
    %c0_i32 = arith.constant 0 : i32
    %c0_i32_0 = arith.constant 0 : i32
    %c0_i32_1 = arith.constant 0 : i32
    %c0_i32_2 = arith.constant 0 : i32
    return %c0_i32, %c0_i32_0, %c0_i32_1 : i32, i32, i32
  }
  func.func @transform_5(%arg0: i32) -> (i32, i32, i32) {
    %c0_i32 = arith.constant 0 : i32
    %c0_i32_0 = arith.constant 0 : i32
    %c0_i32_1 = arith.constant 0 : i32
    %c0_i32_2 = arith.constant 0 : i32
    return %c0_i32, %c0_i32_0, %c0_i32_1 : i32, i32, i32
  }
  func.func @transform_6(%arg0: i32) -> (i32, i32, i32) {
    %c0_i32 = arith.constant 0 : i32
    %c0_i32_0 = arith.constant 0 : i32
    %c0_i32_1 = arith.constant 0 : i32
    %c0_i32_2 = arith.constant 0 : i32
    return %c0_i32, %c0_i32_0, %c0_i32_1 : i32, i32, i32
  }
  func.func @transform_7(%arg0: i32) -> (i32, i32, i32) {
    %c0_i32 = arith.constant 0 : i32
    %c0_i32_0 = arith.constant 0 : i32
    %c0_i32_1 = arith.constant 0 : i32
    %c0_i32_2 = arith.constant 0 : i32
    return %c0_i32, %c0_i32_0, %c0_i32_1 : i32, i32, i32
  }
  func.func @transform_8(%arg0: i32) -> (i32, i32, i32) {
    %c0_i32 = arith.constant 0 : i32
    %c0_i32_0 = arith.constant 0 : i32
    %c0_i32_1 = arith.constant 0 : i32
    %c0_i32_2 = arith.constant 0 : i32
    return %c0_i32, %c0_i32_0, %c0_i32_1 : i32, i32, i32
  }
  func.func @transform_9(%arg0: i32) -> (i32, i32, i32) {
    %c0_i32 = arith.constant 0 : i32
    %c0_i32_0 = arith.constant 0 : i32
    %c0_i32_1 = arith.constant 0 : i32
    %c0_i32_2 = arith.constant 0 : i32
    return %c0_i32, %c0_i32_0, %c0_i32_1 : i32, i32, i32
  }
  func.func @transform_10(%arg0: i32) -> (i32, i32, i32) {
    %c0_i32 = arith.constant 0 : i32
    %c0_i32_0 = arith.constant 0 : i32
    %c0_i32_1 = arith.constant 0 : i32
    %c0_i32_2 = arith.constant 0 : i32
    return %c0_i32, %c0_i32_0, %c0_i32_1 : i32, i32, i32
  }
  func.func @transform_11(%arg0: i32) -> (i32, i32, i32) {
    %c0_i32 = arith.constant 0 : i32
    %c0_i32_0 = arith.constant 0 : i32
    %c0_i32_1 = arith.constant 0 : i32
    %c0_i32_2 = arith.constant 0 : i32
    return %c0_i32, %c0_i32_0, %c0_i32_1 : i32, i32, i32
  }
  func.func @transform_12(%arg0: i32) -> (i32, i32, i32) {
    %c0_i32 = arith.constant 0 : i32
    %c0_i32_0 = arith.constant 0 : i32
    %c0_i32_1 = arith.constant 0 : i32
    %c0_i32_2 = arith.constant 0 : i32
    return %c0_i32, %c0_i32_0, %c0_i32_1 : i32, i32, i32
  }
  func.func @transform_13(%arg0: i32) -> (i32, i32, i32) {
    %c0_i32 = arith.constant 0 : i32
    %c0_i32_0 = arith.constant 0 : i32
    %c0_i32_1 = arith.constant 0 : i32
    %c0_i32_2 = arith.constant 0 : i32
    return %c0_i32, %c0_i32_0, %c0_i32_1 : i32, i32, i32
  }
  func.func @transform_14(%arg0: i32) -> (i32, i32) {
    %c0_i32 = arith.constant 0 : i32
    %c0_i32_0 = arith.constant 0 : i32
    %c0_i32_1 = arith.constant 0 : i32
    return %c0_i32, %c0_i32_0 : i32, i32
  }
  func.func @transform_15(%arg0: i32) -> (i32, i32) {
    %c0_i32 = arith.constant 0 : i32
    %c0_i32_0 = arith.constant 0 : i32
    %c0_i32_1 = arith.constant 0 : i32
    return %c0_i32, %c0_i32_0 : i32, i32
  }
  func.func @transform_16(%arg0: i32) -> (i32, i32) {
    %c0_i32 = arith.constant 0 : i32
    %c0_i32_0 = arith.constant 0 : i32
    %c0_i32_1 = arith.constant 0 : i32
    return %c0_i32, %c0_i32_0 : i32, i32
  }
  func.func @transform_17(%arg0: i32) -> (i32, i32) {
    %c0_i32 = arith.constant 0 : i32
    %c0_i32_0 = arith.constant 0 : i32
    %c0_i32_1 = arith.constant 0 : i32
    return %c0_i32, %c0_i32_0 : i32, i32
  }
  func.func @transform_18(%arg0: i32) -> (i32, i32, i32) {
    %c0_i32 = arith.constant 0 : i32
    %c0_i32_0 = arith.constant 0 : i32
    %c0_i32_1 = arith.constant 0 : i32
    return %arg0, %c0_i32, %c0_i32_0 : i32, i32, i32
  }
}

</mosaic_0001>

<bundles_post_ra>
// kernel: vit_forward.1
= control target key start
LH: loop header
LB: loop body
LE: loop exit
PB: predicated region body
PF: predicated region fallthrough
CT: control target
= control target key end

     0   :  { %s7526_s0 = inlined_call_operand.vmem [shape: f32[2,24,64], index: 0, kind: input, shape index: {}]   ;;  %s7527_s1 = inlined_call_operand.vmem [shape: bf16[64,32], index: 1, kind: input, shape index: {}]   ;;  %s7528_s2 = inlined_call_operand.vmem [shape: f32[24,32], index: 2, kind: input, shape index: {}]   ;;  %s7529_s3 = inlined_call_operand.vmem [shape: f32[2,1,32], index: 3, kind: input, shape index: {}]   ;;  %s7530_s4 = inlined_call_operand.vmem [shape: f32[2,1,32], index: 4, kind: input, shape index: {}]   ;;  %s7531_s5 = inlined_call_operand.vmem [shape: bf16[2,32,96], index: 5, kind: input, shape index: {}]   ;;  %s7532_s6 = inlined_call_operand.vmem [shape: bf16[2,32,32], index: 6, kind: input, shape index: {}]   ;;  %s7533_s7 = inlined_call_operand.vmem [shape: f32[2,1,32], index: 7, kind: input, shape index: {}]   ;;  %s7534_s8 = inlined_call_operand.vmem [shape: f32[2,1,32], index: 8, kind: input, shape index: {}]   ;;  %s7535_s9 = inlined_call_operand.vmem [shape: f32[2,1,32], index: 9, kind: input, shape index: {}]   ;;  %s7536_s10 = inlined_call_operand.vmem [shape: bf16[2,32,128], index: 10, kind: input, shape index: {}]   ;;  %s7537_s11 = inlined_call_operand.vmem [shape: f32[2,1,128], index: 11, kind: input, shape index: {}]   ;;  %s7538_s12 = inlined_call_operand.vmem [shape: bf16[2,128,32], index: 12, kind: input, shape index: {}]   ;;  %s7539_s13 = inlined_call_operand.vmem [shape: f32[2,1,32], index: 13, kind: input, shape index: {}]   ;;  %s7540_s14 = inlined_call_operand.vmem [shape: f32[1,32], index: 14, kind: input, shape index: {}]   ;;  %s7541_s15 = inlined_call_operand.vmem [shape: f32[1,32], index: 15, kind: input, shape index: {}]   ;;  %s7542_s16 = inlined_call_operand.vmem [shape: f32[32,10], index: 16, kind: input, shape index: {}]   ;;  %s7543_s17 = inlined_call_operand.vmem [shape: f32[1,10], index: 17, kind: input, shape index: {}]   ;;  %s7544_s18 = inlined_call_operand.hbm [shape: f32[2,1,10], index: 18, kind: output, shape index: {}]  }
   0x1   :  { %7565 = sst [smem:[#allocation11_spill]] %s7526_s0 }
   0x2   :  { %7566 = sst [smem:[#allocation12_spill]] %s7527_s1 }
   0x3   :  { %7567 = sst [smem:[#allocation13_spill]] %s7528_s2 }
   0x4   :  { %7568 = sst [smem:[#allocation14_spill]] %s7544_s18 }
   0x5   :  { %23 = vsyncpa [#allocation3], 0 }
   0x6   :  { %25 = vsyncpa [#allocation3 + $0x1], 0  ;;  %s6405_s27 = smov 0   ;;  %s6407_s28 = smov 0  }
   0x7   :  { %s6409_s29 = smov 0   ;;  %s6411_s30 = smov 0  }
   0x8 LB: > { %7569 = sst [smem:[#allocation5_spill]] %s6281_s27  ;;  %s6426_s0 = sadd.s32 4294967295, %s6293_s30   ;;  %s6293_s30 = sphi %s6411_s30, %s7591_s30   ;;  %s6289_s29 = sphi %s6409_s29, %s7593_s29   ;;  %s6285_s28 = sphi %s6407_s28, %s7595_s28   ;;  %s6281_s27 = sphi %s6405_s27, %s7594_s27  }
   0x9   : > { %7570 = sst [smem:[#allocation6_spill]] %s6289_s29  ;;  %s5381_s19 = sadd.s32 4294967294, %s6293_s30  }
   0xa   : > { %7571 = sst [smem:[#allocation7_spill]] %s6293_s30  ;;  %s6430_s1 = sadd.s32 1, %s6293_s30  }
   0xb   : > { %7572 = sst [smem:[#allocation8_spill]] %s6430_s1  ;;  %s421_s20 = sadd.s32 1, %s6289_s29 }
   0xc   : > { %s418_s21 = ssub.s32 %s6293_s30, %s6430_s1  ;;  %p431_p0 = scmp.ne.s32.totalorder %s6289_s29, %s6285_s28 }
   0xd   : > { %p419_p1 = scmp.eq.s32.totalorder %s418_s21, 0  ;;  %p432_p2 = scmp.eq.s32.totalorder %s6426_s0, 1 }
   0xe   : > { %p437_p3 = scmp.ne.s32.totalorder %s6285_s28, %s6281_s27  ;;  %p438_p4 = scmp.eq.s32.totalorder %s5381_s19, 1 }
   0xf   : > { %s6441_s22 = scalar_select %p419_p1, %s6289_s29, %s421_s20  }
  0x10   : > { %p6443_p5 = por %p432_p2, %p431_p0  ;;  %p6447_p6 = por %p438_p4, %p437_p3 }
  0x11   : > { %7573 = sst [smem:[#allocation9_spill]] %s6441_s22  ;;  %p5384_p7 = scmp.ge.s32.totalorder %s6293_s30, 1 }
  0x12   : > { %s7575_s23 = scalar_select %p6447_p6, 1, 0 }
  0x13   : > { %p515_p8 = scmp.lt.s32.totalorder %s6293_s30, 3 }
  0x14   : > { %7576 = sst [smem:[#allocation10_spill]] %s7575_s23 }
  0x15   : > { %p516_p9 = pnand %p5384_p7, %p515_p8 }
  0x16   : > { %s7577_s26 = sld [smem:[#allocation12_spill]] (!%p516_p9)  ;;  %p568_p10 = scmp.lt.s32.totalorder (!%p516_p9), %s6426_s0, 1  ;;  %vm618_vm0 = vcmask (!%p516_p9), 523264   ;;  %vm675_vm1 = vcmask (!%p516_p9), 261120   ;;  %v6069_v37 = vld [vmem:[%s7531_s5] sm:$0xff] (!%p516_p9)   ;;  %v6070_v38 = vld [vmem:[%s7531_s5 + $0x8] sm:$0xff] (!%p516_p9)  }
  0x17   : > { %519 = sbr.rel (%p516_p9) target bundleno = 7040 (0x1b80), region = 92  ;;  %s7578_s24 = sld [smem:[#allocation11_spill]] (!%p516_p9)  ;;  %v5392_v50 = vld [vmem:[%s7529_s3] ss:$0 sm:$0xff] (!%p516_p9)  ;;  %vm6300_vm2 = vmmov (!%p516_p9), 0   ;;  %vm991_vm3 = vcmask (!%p516_p9), 64512  }
  0x18   : > { %v5393_v56 = vld [vmem:[%s7530_s4] ss:$0 sm:$0xff] (!%p516_p9)  ;;  %s6295_s23 = smov (!%p516_p9), 120   ;;  %s6296_s18 = smov (!%p516_p9), 104   ;;  %vm1360_vm5 = vcmask (!%p516_p9), 195584   ;;  %vm2560_vm7 = vcmask (!%p516_p9), 130048  }
  0x19   : > { %s6297_s30 = smov (!%p516_p9), 112   ;;  %s7562_s19 = smov (!%p516_p9), 96   ;;  %vm6791_vm6 = vmpackc.low (!%p516_p9), %vm1360_vm5, %vm1360_vm5  ;;  %vm5217_vm8 = vcmask (!%p516_p9), 253952   ;;  %vm5311_vm9 = vcmask (!%p516_p9), 73728  }
  0x1a   : > { %s7560_s20 = smov (!%p516_p9), 64   ;;  %s7558_s22 = smov (!%p516_p9), 16  }
  0x1b   : > { %s7585_s27 = smov (!%p516_p9), 8   ;;  %s5550_s29 = sshll.u32 (!%p516_p9), %s6426_s0, 4 }
  0x1c   : > { %v6065_v0 = vld [vmem:[%s7577_s26] sm:$0xff] (!%p516_p9)   ;;  %v6066_v1 = vld [vmem:[%s7577_s26 + $0x8] sm:$0xff] (!%p516_p9)   ;;  %v6067_v2 = vld [vmem:[%s7577_s26 + $0x10] sm:$0xff] (!%p516_p9)  }
  0x1d   : > { %5672 = vmatprep.subr.bf16.mxu0 (!%p516_p9), %v6065_v0  ;;  %v6068_v3 = vld [vmem:[%s7577_s26 + $0x18] sm:$0xff] (!%p516_p9)  }
  0x1e   : > { %s569_s21 = scalar_select %p568_p10, %s6426_s0, 1  ;;  %5673 = vmatpush3.bf16.msra.mxu0 %v6065_v0 }
  0x1f   : > { %5674 = vmatprep.subr.bf16.mxu0 %v6066_v1  ;;  %s6309_s0 = smov [#allocation2]  }
  0x20   : > { %s5981_s1 = smul.u32 24, %s569_s21  ;;  %s7554_s21 = smov 24  }
  0x22   : > { %s572_s25 = scalar_lea.vmem %s7578_s24, %s5981_s1  ;;  %5675 = vmatpush3.bf16.msra.mxu0 %v6066_v1  ;;  %s7579_s1 = sld [smem:[#allocation13_spill]] }
  0x23   : > { %v578_v4 = vld [vmem:[%s572_s25] sm:$0xff]  ;;  %v579_v5 = vld [vmem:[%s572_s25 + $0x8] sm:$0xff]  ;;  %5676 = vmatprep.subr.bf16.mxu0 %v6067_v2  ;;  %v580_v7 = vld [vmem:[%s572_s25 + $0x10] sm:$0xff]  ;;  %s7556_s25 = smov 8   ;;  %s6235_s24 = sshll.u32 %s6309_s0, 4  ;;  %s6236_s24 = int_to_ptr.vmem [resolvable:$false] %s6235_s24 }
  0x24   : > { %v581_v6 = vpack.c.bf16 %v579_v5, %v578_v4  ;;  %v582_v8 = vpack.c.bf16 %v580_v7, %v580_v7 }
  0x26   : > { %5680 = vmatprep.mubr.msk.bf16.mxu0 %vm618_vm0, %v581_v6  ;;  %5677 = vmatpush3.bf16.msra.mxu0 %v6067_v2 }
  0x27   : > { %5678 = vmatprep.subr.bf16.mxu0 %v6068_v3 }
  0x28   : > { %v593_v9 = vld [vmem:[%s7579_s1 + $0x10] sm:$0xff]  ;;  %v591_v10 = vld [vmem:[%s7579_s1] sm:$0xff]  ;;  %v592_v14 = vld [vmem:[%s7579_s1 + $0x8] sm:$0xff]  ;;  %s6237_s1 = scalar_lea.vmem %s6236_s24, 32 }
  0x2a   : > { %5679 = vmatpush3.bf16.msra.mxu0 %v6068_v3 }
  0x2b   : > { %5684 = vmatprep.subr.bf16.mxu0 %v6069_v37 }
  0x2d   : > { %5681 = vmatmul.mubr.msk.bf16.vlgmr.msra.gmra.mrb[0].mxu0 %vm618_vm0, %v582_v8 }
  0x2e   : > { %5685 = vmatpush3.bf16.msra.mxu0 %v6069_v37  ;;  %v574_v37 = vlaneseq }
  0x2f   : > { %5686 = vmatprep.subr.bf16.mxu0 %v6070_v38 }
  0x32   : > { %5687 = vmatpush3.bf16.msra.mxu0 %v6070_v38  ;;  %v575_v38 = vand.u32 127, %v574_v37 }
  0x34   : > { %vm576_vm4 = vcmp.lt.s32.totalorder %v575_v38, 17 }
 0x100   : > { %v5682_v11 = vpop.f32.mrb[0].mxu0 }
 0x101   : > { %v6476_v12 = vadd.f32 %v5682_v11, %v593_v9  ;;  %v659_v13 = vpop.f32.mrb[1].mxu0 }
 0x102   : > { %v6481_v15 = vadd.f32 %v659_v13, %v591_v10  ;;  %v5683_v16 = vpop.f32.mrb[2].mxu0 }
 0x103   : > { %v662_v17 = vpop.f32.mrb[3].mxu0  ;;  %v682_v18 = vsel %vm675_vm1, %v6476_v12, 0.0 }
 0x104   : > { %v6485_v19 = vadd.f32 %v662_v17, %v592_v14  ;;  %683 = vadd.xlane.f32.xlu1 %v682_v18  ;;  %v676_v20 = vsel %vm675_vm1, %v6481_v15, 0.0  ;;  %v6299_v14 = vmov 0.0  }
 0x105   : > { %677 = vadd.xlane.f32.xlu0 %v676_v20  ;;  %5692 = vmatprep.subr.mxu1 %v6299_v14 }
 0x106   : > { %v679_v21 = vsel %vm675_vm1, %v6485_v19, 0.0  ;;  %5703 = vmatprep.subr.mxu0 %v6299_v14  ;;  %5694 = vmatprep.mubr.msk.f32.mxu1 %vm6300_vm2, %v6299_v14 }
 0x109   : > { %680 = vadd.xlane.f32.xlu0 %v679_v21 }
 0x191   : > { %v684_v22 = vpop.xlane.xlu1 %683 }
 0x192   : > { %v688_v23 = vmul.f32 0.03125, %v684_v22  ;;  %v678_v24 = vpop.xlane.xlu0 %677 }
 0x193   : > { %v686_v25 = vmul.f32 0.03125, %v678_v24 }
 0x194   : > { %v691_v26 = vsub.f32 %v6476_v12, %v688_v23 }
 0x195   : > { %v689_v27 = vsub.f32 %v6481_v15, %v686_v25 }
 0x196   : > { %v681_v28 = vpop.xlane.xlu0 %680  ;;  %v694_v33 = vmul.f32 %v691_v26, %v691_v26 }
 0x197   : > { %v687_v29 = vmul.f32 0.03125, %v681_v28  ;;  %v692_v30 = vmul.f32 %v689_v27, %v689_v27 }
 0x198   : > { %v701_v35 = vsel %vm675_vm1, %v694_v33, 0.0 }
 0x199   : > { %v690_v31 = vsub.f32 %v6485_v19, %v687_v29  ;;  %v695_v32 = vsel %vm675_vm1, %v692_v30, 0.0 }
 0x19a   : > { %696 = vadd.xlane.f32.xlu1 %v695_v32 }
 0x19b   : > { %v693_v34 = vmul.f32 %v690_v31, %v690_v31 }
 0x19d   : > { %v698_v36 = vsel %vm675_vm1, %v693_v34, 0.0 }
 0x19e   : > { %702 = vadd.xlane.f32.xlu1 %v701_v35  ;;  %699 = vadd.xlane.f32.xlu0 %v698_v36 }
 0x227   : > { %v697_v39 = vpop.xlane.xlu1 %696 }
 0x228   : > { %v704_v40 = vmul.f32 0.03125, %v697_v39 }
 0x22a   : > { %v707_v41 = vadd.f32 1e-06, %v704_v40  ;;  %v6302_v40 = vmov -1e+30  }
 0x22b   : > { %v703_v42 = vpop.xlane.xlu1 %702  ;;  %v700_v43 = vpop.xlane.xlu0 %699 }
 0x22c   : > { %6097 = vrsqrt.f32 %v707_v41  ;;  %v706_v44 = vmul.f32 0.03125, %v703_v42  ;;  %v705_v45 = vmul.f32 0.03125, %v700_v43  ;;  %v6644_v41 = vsel %vm576_vm4, 0.0, %v6302_v40 }
 0x22e   : > { %v709_v46 = vadd.f32 1e-06, %v706_v44  ;;  %v708_v47 = vadd.f32 1e-06, %v705_v45 }
 0x230   : > { %6099 = vrsqrt.f32 %v709_v46 }
 0x231   : > { %6101 = vrsqrt.f32 %v708_v47 }
 0x236   : > { %v6098_v48 = vpop.eup %6097 }
 0x237   : > { %v713_v49 = vmul.f32 %v6098_v48, %v689_v27 }
 0x239   : > { %v722_v55 = vmul.f32 %v5392_v50, %v713_v49 }
 0x23a   : > { %v6100_v51 = vpop.eup %6099 }
 0x23b   : > { %v6102_v52 = vpop.eup %6101  ;;  %v715_v53 = vmul.f32 %v6100_v51, %v691_v26  ;;  %v731_v60 = vadd.f32 %v5393_v56, %v722_v55 }
 0x23c   : > { %v714_v54 = vmul.f32 %v6102_v52, %v690_v31 }
 0x23d   : > { %v724_v57 = vmul.f32 %v5392_v50, %v715_v53 }
 0x23e   : > { %v723_v58 = vmul.f32 %v5392_v50, %v714_v54 }
 0x23f   : > { %v733_v59 = vadd.f32 %v5393_v56, %v724_v57 }
 0x240   : > { %v732_v61 = vadd.f32 %v5393_v56, %v723_v58 }
 0x241   : > { %v735_v62 = vpack.c.bf16 %v733_v59, %v733_v59 }
 0x242   : > { %v734_v63 = vpack.c.bf16 %v732_v61, %v731_v60 }
 0x244   : > { %5688 = vmatprep.mubr.msk.bf16.mxu0 %vm675_vm1, %v734_v63 }
 0x245   : > { %5689 = vmatmul.mubr.msk.bf16.vlgmr.msra.gmra.mrb[4].mxu0 %vm675_vm1, %v735_v62 }
 0x246   : > { %5705 = vmatprep.mubr.msk.f32.mxu0 %vm6300_vm2, %v6299_v14 }
 0x318   : > { %v6511_v0 = vpop.f32.mrb[4].mxu0 }
 0x319   : > { %v6513_v1 = vpop.f32.mrb[5].mxu0 }
 0x31a   : > { %809 = vrot.lane.b32.xlu0 %v6513_v1, %s6295_s23  ;;  %v5691_v2 = vpop.f32.mrb[6].mxu0 }
 0x31b   : > { %v6517_v3 = vpop.f32.mrb[7].mxu0 }
 0x31c   : > { %811 = vrot.lane.b32.xlu1 %v6517_v3, %s6295_s23 }
 0x31e   : > { %821 = vrot.lane.b32.xlu0 %v6513_v1, %s6296_s18 }
 0x320   : > { %813 = vrot.lane.b32.xlu1 %v6511_v0, %s6295_s23 }
 0x322   : > { %823 = vrot.lane.b32.xlu0 %v6517_v3, %s6296_s18 }
 0x324   : > { %815 = vrot.lane.b32.xlu1 %v6513_v1, %s6297_s30 }
 0x326   : > { %825 = vrot.lane.b32.xlu0 %v6511_v0, %s6296_s18 }
 0x328   : > { %817 = vrot.lane.b32.xlu1 %v6517_v3, %s6297_s30 }
 0x32c   : > { %819 = vrot.lane.b32.xlu1 %v6511_v0, %s6297_s30 }
 0x330   : > { %827 = vrot.lane.b32.xlu1 %v6513_v1, %s7562_s19 }
 0x334   : > { %831 = vrot.lane.b32.xlu1 %v6511_v0, %s7562_s19 }
 0x338   : > { %829 = vrot.lane.b32.xlu1 %v6517_v3, %s7562_s19 }
 0x38c   : > { %v6541_v4 = vpop.permute.xlu0 %809 }
 0x38d   : > { %833 = vrot.lane.b32.xlu0 %v6541_v4, %s7562_s19 }
 0x38e   : > { %v6545_v5 = vpop.permute.xlu1 %811 }
 0x390   : > { %v6551_v7 = vpop.permute.xlu0 %821 }
 0x391   : > { %835 = vrot.lane.b32.xlu0 %v6545_v5, %s7562_s19 }
 0x392   : > { %v6549_v6 = vpop.permute.xlu1 %813 }
 0x394   : > { %v6561_v9 = vpop.permute.xlu0 %823 }
 0x395   : > { %837 = vrot.lane.b32.xlu0 %v6549_v6, %s7562_s19 }
 0x396   : > { %v6555_v8 = vpop.permute.xlu1 %815 }
 0x397   : > { %839 = vrot.lane.b32.xlu1 %v6555_v8, %s7562_s19 }
 0x398   : > { %v6571_v13 = vpop.permute.xlu0 %825 }
 0x399   : > { %845 = vrot.lane.b32.xlu0 %v6551_v7, %s7562_s19 }
 0x39a   : > { %v6563_v10 = vpop.permute.xlu1 %817 }
 0x39d   : > { %847 = vrot.lane.b32.xlu0 %v6561_v9, %s7562_s19 }
 0x39e   : > { %v6567_v11 = vpop.permute.xlu1 %819 }
 0x39f   : > { %843 = vrot.lane.b32.xlu1 %v6567_v11, %s7562_s19 }
 0x3a1   : > { %849 = vrot.lane.b32.xlu0 %v6571_v13, %s7562_s19 }
 0x3a2   : > { %v828_v16 = vpop.permute.xlu1 %827 }
 0x3a3   : > { %841 = vrot.lane.b32.xlu1 %v6563_v10, %s7562_s19 }
 0x3a6   : > { %v832_v17 = vpop.permute.xlu1 %831 }
 0x3aa   : > { %v830_v18 = vpop.permute.xlu1 %829 }
 0x3cc   : > { %863 = vxpose.xlu1.b32.start [1/3] (short) (narrow) %v828_v16, 8 }
 0x3d0   : > { %864 = vxpose.xlu1.b32.cont [2/3] (short) (narrow) %v830_v18, 8 }
 0x3d4   : > { %865 = vxpose.xlu1.b32.end [3/3] (short) (narrow) %v832_v17, 8 }
 0x3ff   : > { %v834_v20 = vpop.permute.xlu0 %833 }
 0x400   : > { %895 = vxpose.xlu0.b32.start [1/3] (short) (narrow) %v834_v20, 8 }
 0x403   : > { %v836_v21 = vpop.permute.xlu0 %835 }
 0x404   : > { %896 = vxpose.xlu0.b32.cont [2/3] (short) (narrow) %v836_v21, 8 }
 0x407   : > { %v838_v22 = vpop.permute.xlu0 %837 }
 0x408   : > { %897 = vxpose.xlu0.b32.end [3/3] (short) (narrow) %v838_v22, 8 }
 0x409   : > { %v840_v23 = vpop.permute.xlu1 %839 }
 0x40b   : > { %v846_v24 = vpop.permute.xlu0 %845 }
 0x40c   : > { %959 = vxpose.xlu1.b32.start [1/3] (short) (narrow) %v846_v24, 8  ;;  %927 = vxpose.xlu0.b32.start [1/3] (short) (narrow) %v840_v23, 8 }
 0x40f   : > { %v848_v25 = vpop.permute.xlu0 %847 }
 0x410   : > { %960 = vxpose.xlu1.b32.cont [2/3] (short) (narrow) %v848_v25, 8 }
 0x411   : > { %v844_v26 = vpop.permute.xlu1 %843 }
 0x413   : > { %v850_v27 = vpop.permute.xlu0 %849 }
 0x414   : > { %961 = vxpose.xlu1.b32.end [3/3] (short) (narrow) %v850_v27, 8 }
 0x415   : > { %v842_v28 = vpop.permute.xlu1 %841 }
 0x416   : > { %928 = vxpose.xlu0.b32.cont [2/3] (short) (narrow) %v842_v28, 8 }
 0x41a   : > { %929 = vxpose.xlu0.b32.end [3/3] (short) (narrow) %v844_v26, 8 }
 0x432   : > { %1493 = vrot.lane.b32.xlu1 %v6513_v1, %s7560_s20 }
 0x436   : > { %1495 = vrot.lane.b32.xlu1 %v6517_v3, %s7560_s20 }
 0x43a   : > { %1501 = vrot.lane.b32.xlu1 %v6545_v5, %s7560_s20 }
 0x43e   : > { %1497 = vrot.lane.b32.xlu1 %v6511_v0, %s7560_s20 }
 0x44c   : > { %v879_v29 = vpop.trf.xlu1 }
 0x44d   : > { %5693 = vmatpush3.msra.mxu1 %v879_v29 }
 0x44e   : > { %5695 = vmatmul.mubr.msk.f32.vlgmr.msra.gmra.mrb[0].mxu1 %vm991_vm3, %v6513_v1  ;;  %5714 = vmatprep.subr.mxu1 %v6299_v14 }
 0x44f   : > { %5697 = vmatprep.mubr.msk.f32.mxu1 %vm6300_vm2, %v6299_v14 }
 0x452   : > { %5698 = vmatmul.mubr.msk.f32.gmra.mrb[2].mxu1 %vm991_vm3, %v6517_v3 }
 0x453   : > { %5700 = vmatprep.mubr.msk.f32.mxu1 %vm6300_vm2, %v6299_v14 }
 0x456   : > { %5701 = vmatmul.mubr.msk.f32.gmra.mrb[4].mxu1 %vm991_vm3, %v6511_v0 }
 0x457   : > { %5716 = vmatprep.mubr.msk.f32.mxu1 %vm6300_vm2, %v6299_v14 }
 0x480   : > { %v911_v30 = vpop.trf.xlu0 }
 0x481   : > { %5704 = vmatpush3.msra.mxu0 %v911_v30 }
 0x482   : > { %5706 = vmatmul.mubr.msk.f32.vlgmr.msra.gmra.mrb[8].mxu0 %vm991_vm3, %v6541_v4  ;;  %5725 = vmatprep.subr.mxu0 %v6299_v14 }
 0x483   : > { %5708 = vmatprep.mubr.msk.f32.mxu0 %vm6300_vm2, %v6299_v14 }
 0x486   : > { %5709 = vmatmul.mubr.msk.f32.gmra.mrb[10].mxu0 %vm991_vm3, %v6545_v5 }
 0x487   : > { %5711 = vmatprep.mubr.msk.f32.mxu0 %vm6300_vm2, %v6299_v14 }
 0x48a   : > { %5712 = vmatmul.mubr.msk.f32.gmra.mrb[12].mxu0 %vm991_vm3, %v6549_v6 }
 0x48b   : > { %5727 = vmatprep.mubr.msk.f32.mxu0 %vm6300_vm2, %v6299_v14 }
 0x48c   : > { %v975_v31 = vpop.trf.xlu1 }
 0x48d   : > { %5726 = vmatpush3.msra.mxu0 %v975_v31 }
 0x48e   : > { %5728 = vmatmul.mubr.msk.f32.vlgmr.msra.gmra.mrb[14].mxu0 %vm991_vm3, %v6551_v7 }
 0x48f   : > { %5730 = vmatprep.mubr.msk.f32.mxu0 %vm6300_vm2, %v6299_v14 }
 0x492   : > { %v943_v32 = vpop.trf.xlu0  ;;  %5731 = vmatmul.mubr.msk.f32.gmra.mrb[16].mxu0 %vm991_vm3, %v6561_v9 }
 0x493   : > { %5715 = vmatpush3.msra.mxu1 %v943_v32  ;;  %5733 = vmatprep.mubr.msk.f32.mxu0 %vm6300_vm2, %v6299_v14 }
 0x494   : > { %5717 = vmatmul.mubr.msk.f32.vlgmr.msra.gmra.mrb[6].mxu1 %vm991_vm3, %v6555_v8 }
 0x495   : > { %5719 = vmatprep.mubr.msk.f32.mxu1 %vm6300_vm2, %v6299_v14 }
 0x496   : > { %5734 = vmatmul.mubr.msk.f32.gmra.mrb[18].mxu0 %vm991_vm3, %v6571_v13 }
 0x497   : > { %5751 = vmatprep.mubr.msk.f32.mxu0 %vm6300_vm2, %v6299_v14 }
 0x498   : > { %5720 = vmatmul.mubr.msk.f32.gmra.mrb[8].mxu1 %vm991_vm3, %v6563_v10 }
 0x499   : > { %5722 = vmatprep.mubr.msk.f32.mxu1 %vm6300_vm2, %v6299_v14 }
 0x49c   : > { %5723 = vmatmul.mubr.msk.f32.gmra.mrb[10].mxu1 %vm991_vm3, %v6567_v11 }
 0x49d   : > { %5742 = vmatprep.mubr.msk.f32.mxu1 %vm6300_vm2, %v6299_v14 }
 0x4a4   : > { %v1494_v33 = vpop.permute.xlu1 %1493 }
 0x4a5   : > { %1529 = vxpose.xlu0.b32.start [1/3] (short) (narrow) %v1494_v33, 8 }
 0x4a8   : > { %v1496_v34 = vpop.permute.xlu1 %1495 }
 0x4a9   : > { %1530 = vxpose.xlu0.b32.cont [2/3] (short) (narrow) %v1496_v34, 8 }
 0x4ac   : > { %v6641_v35 = vpop.permute.xlu1 %1501 }
 0x4b0   : > { %v1498_v36 = vpop.permute.xlu1 %1497 }
 0x4b1   : > { %1531 = vxpose.xlu0.b32.end [3/3] (short) (narrow) %v1498_v36, 8 }
 0x521   : > { %v1064_v39 = vpop.f32.mrb[0].mxu1 }
 0x522   : > { %v1336_v42 = vmul.f32 0.35355338, %v1064_v39  ;;  %v5696_v43 = vpop.f32.mrb[1].mxu1 }
 0x524   : > { %v6647_v44 = vadd.f32 %v1336_v42, %v6644_v41 }
 0x525   : > { %v1069_v45 = vpop.f32.mrb[2].mxu1 }
 0x526   : > { %v1337_v46 = vmul.f32 0.35355338, %v1069_v45  ;;  %v5699_v47 = vpop.f32.mrb[3].mxu1  ;;  %v1361_v48 = vsel %vm1360_vm5, %v6647_v44, -inf }
 0x527   : > { %1362 = vmax.xlane.f32.xlu0 %v1361_v48 }
 0x528   : > { %v6652_v49 = vadd.f32 %v1337_v46, %v6644_v41 }
 0x529   : > { %v1074_v50 = vpop.f32.mrb[4].mxu1 }
 0x52a   : > { %v1338_v51 = vmul.f32 0.35355338, %v1074_v50  ;;  %v5702_v52 = vpop.f32.mrb[5].mxu1  ;;  %v1364_v53 = vsel %vm1360_vm5, %v6652_v49, -inf }
 0x52b   : > { %1365 = vmax.xlane.f32.xlu1 %v1364_v53 }
 0x52c   : > { %v6657_v54 = vadd.f32 %v1338_v51, %v6644_v41 }
 0x52e   : > { %v1367_v55 = vsel %vm1360_vm5, %v6657_v54, -inf }
 0x52f   : > { %1368 = vmax.xlane.f32.xlu1 %v1367_v55 }
 0x555   : > { %v1150_v56 = vpop.f32.mrb[8].mxu0 }
 0x556   : > { %v1339_v57 = vmul.f32 0.35355338, %v1150_v56  ;;  %v5707_v58 = vpop.f32.mrb[9].mxu0 }
 0x558   : > { %v6662_v59 = vadd.f32 %v1339_v57, %v6644_v41 }
 0x559   : > { %v1155_v60 = vpop.f32.mrb[10].mxu0 }
 0x55a   : > { %v1340_v61 = vmul.f32 0.35355338, %v1155_v60  ;;  %v5710_v62 = vpop.f32.mrb[11].mxu0  ;;  %v1370_v63 = vsel %vm1360_vm5, %v6662_v59, -inf }
 0x55b   : > { %1371 = vmax.xlane.f32.xlu0 %v1370_v63 }
 0x55c   : > { %v6667_v0 = vadd.f32 %v1340_v61, %v6644_v41 }
 0x55d   : > { %v1160_v1 = vpop.f32.mrb[12].mxu0 }
 0x55e   : > { %v1341_v2 = vmul.f32 0.35355338, %v1160_v1  ;;  %v5713_v3 = vpop.f32.mrb[13].mxu0  ;;  %v1373_v5 = vsel %vm1360_vm5, %v6667_v0, -inf }
 0x55f   : > { %1374 = vmax.xlane.f32.xlu0 %v1373_v5 }
 0x560   : > { %v6672_v16 = vadd.f32 %v1341_v2, %v6644_v41 }
 0x561   : > { %v1322_v17 = vpop.f32.mrb[14].mxu0 }
 0x562   : > { %v5729_v18 = vpop.f32.mrb[15].mxu0  ;;  %v1376_v20 = vsel %vm1360_vm5, %v6672_v16, -inf  ;;  %v1345_v36 = vmul.f32 0.35355338, %v1322_v17 }
 0x563   : > { %1377 = vmax.xlane.f32.xlu0 %v1376_v20 }
 0x564   : > { %v6692_v45 = vadd.f32 %v1345_v36, %v6644_v41 }
 0x565   : > { %v1327_v21 = vpop.f32.mrb[16].mxu0 }
 0x566   : > { %v5732_v22 = vpop.f32.mrb[17].mxu0  ;;  %v1388_v46 = vsel %vm1360_vm5, %v6692_v45, -inf  ;;  %v1346_v47 = vmul.f32 0.35355338, %v1327_v21 }
 0x567   : > { %v1236_v23 = vpop.f32.mrb[6].mxu1 }
 0x568   : > { %v1342_v24 = vmul.f32 0.35355338, %v1236_v23  ;;  %v5718_v25 = vpop.f32.mrb[7].mxu1  ;;  %v6709_v50 = vadd.f32 %v1346_v47, %v6644_v41 }
 0x569   : > { %v1332_v26 = vpop.f32.mrb[18].mxu0  ;;  %v6303_v25 = vmov 0.0|0.0  }
 0x56a   : > { %v5735_v27 = vpop.f32.mrb[19].mxu0  ;;  %v6677_v28 = vadd.f32 %v1342_v24, %v6644_v41  ;;  %v1347_v48 = vmul.f32 0.35355338, %v1332_v26  ;;  %5943 = vmatprep.subr.bf16.mxu1 %v6303_v25  ;;  %5947 = vmatprep.subr.bf16.mxu0 %v6303_v25 }
 0x56b   : > { %v1241_v29 = vpop.f32.mrb[8].mxu1 }
 0x56c   : > { %v1343_v30 = vmul.f32 0.35355338, %v1241_v29  ;;  %v5721_v31 = vpop.f32.mrb[9].mxu1  ;;  %v1379_v32 = vsel %vm1360_vm5, %v6677_v28, -inf }
 0x56d   : > { %1380 = vmax.xlane.f32.xlu1 %v1379_v32 }
 0x56e   : > { %v6682_v33 = vadd.f32 %v1343_v30, %v6644_v41 }
 0x56f   : > { %v1246_v34 = vpop.f32.mrb[10].mxu1 }
 0x570   : > { %v1344_v38 = vmul.f32 0.35355338, %v1246_v34  ;;  %v5724_v39 = vpop.f32.mrb[11].mxu1  ;;  %v1382_v40 = vsel %vm1360_vm5, %v6682_v33, -inf }
 0x571   : > { %1383 = vmax.xlane.f32.xlu0 %v1382_v40 }
 0x572   : > { %v6687_v42 = vadd.f32 %v1344_v38, %v6644_v41 }
 0x574   : > { %v1385_v43 = vsel %vm1360_vm5, %v6687_v42, -inf }
 0x575   : > { %1386 = vmax.xlane.f32.xlu1 %v1385_v43 }
 0x579   : > { %1389 = vmax.xlane.f32.xlu1 %v1388_v46 }
 0x587   : > { %1499 = vrot.lane.b32.xlu0 %v6541_v4, %s7560_s20  ;;  %v1391_v4 = vsel %vm1360_vm5, %v6709_v50, -inf }
 0x58a   : > { %1505 = vrot.lane.b32.xlu1 %v6555_v8, %s7560_s20  ;;  %v6714_v8 = vadd.f32 %v1347_v48, %v6644_v41 }
 0x58b   : > { %1503 = vrot.lane.b32.xlu0 %v6549_v6, %s7560_s20 }
 0x58c   : > { %v1394_v6 = vsel %vm1360_vm5, %v6714_v8, -inf }
 0x58e   : > { %1507 = vrot.lane.b32.xlu1 %v6563_v10, %s7560_s20 }
 0x592   : > { %1513 = vrot.lane.b32.xlu1 %v6561_v9, %s7560_s20  ;;  %v6718_v9 = vpop.trf.xlu0 }
 0x596   : > { %1509 = vrot.lane.b32.xlu1 %v6567_v11, %s7560_s20 }
 0x5aa   : > { %1392 = vmax.xlane.f32.xlu0 %v1391_v4 }
 0x5ae   : > { %1395 = vmax.xlane.f32.xlu0 %v1394_v6 }
 0x5b4   : > { %v1363_v10 = vpop.xlane.xlu0 %1362 }
 0x5b5   : > { %v1397_v11 = vsub.f32 %v6647_v44, %v1363_v10 }
 0x5b7   : > { %v1409_v51 = vmul.f32 1.442695, %v1397_v11 }
 0x5b8   : > { %v1366_v52 = vpop.xlane.xlu1 %1365 }
 0x5b9   : > { %6103 = vpow2.f32 %v1409_v51  ;;  %v1398_v61 = vsub.f32 %v6652_v49, %v1366_v52 }
 0x5bc   : > { %v1369_v53 = vpop.xlane.xlu1 %1368 }
 0x5bd   : > { %v1399_v55 = vsub.f32 %v6657_v54, %v1369_v53  ;;  %v1411_v54 = vmul.f32 1.442695, %v1398_v61 }
 0x5bf   : > { %v1413_v56 = vmul.f32 1.442695, %v1399_v55 }
 0x5c1   : > { %6105 = vpow2.f32 %v1413_v56 }
 0x5c2   : > { %6107 = vpow2.f32 %v1411_v54 }
 0x5c3   : > { %v6722_v57 = vpop.eup %6103 }
 0x5c4   : > { %1511 = vrot.lane.b32.xlu0 %v6551_v7, %s7560_s20  ;;  %v1433_v58 = vsel %vm1360_vm5, %v6722_v57, 0.0 }
 0x5c5   : > { %1434 = vadd.xlane.f32.xlu1 %v1433_v58 }
 0x5cb   : > { %v6728_v60 = vpop.eup %6105 }
 0x5cc   : > { %v1439_v44 = vsel %vm1360_vm5, %v6728_v60, 0.0  ;;  %v6733_v62 = vpop.eup %6107 }
 0x5cd   : > { %1440 = vadd.xlane.f32.xlu1 %v1439_v44  ;;  %v1436_v63 = vsel %vm1360_vm5, %v6733_v62, 0.0 }
 0x5e3   : > { %1437 = vadd.xlane.f32.xlu0 %v1436_v63 }
 0x5e8   : > { %v1372_v7 = vpop.xlane.xlu0 %1371 }
 0x5e9   : > { %v1400_v1 = vsub.f32 %v6662_v59, %v1372_v7 }
 0x5eb   : > { %v1415_v2 = vmul.f32 1.442695, %v1400_v1 }
 0x5ec   : > { %v1375_v3 = vpop.xlane.xlu0 %1374 }
 0x5ed   : > { %6109 = vpow2.f32 %v1415_v2  ;;  %v1401_v17 = vsub.f32 %v6667_v0, %v1375_v3 }
 0x5ef   : > { %v1417_v22 = vmul.f32 1.442695, %v1401_v17 }
 0x5f0   : > { %v1378_v18 = vpop.xlane.xlu0 %1377 }
 0x5f1   : > { %v1402_v26 = vsub.f32 %v6672_v16, %v1378_v18 }
 0x5f3   : > { %v1419_v30 = vmul.f32 1.442695, %v1402_v26 }
 0x5f7   : > { %v6738_v5 = vpop.eup %6109 }
 0x5f8   : > { %v1442_v49 = vsel %vm1360_vm5, %v6738_v5, 0.0 }
 0x5f9   : > { %1443 = vadd.xlane.f32.xlu1 %v1442_v49 }
 0x5fa   : > { %v1381_v20 = vpop.xlane.xlu1 %1380 }
 0x5fb   : > { %v1403_v21 = vsub.f32 %v6677_v28, %v1381_v20 }
 0x5fd   : > { %v1421_v23 = vmul.f32 1.442695, %v1403_v21 }
 0x5fe   : > { %v1384_v24 = vpop.xlane.xlu0 %1383 }
 0x5ff   : > { %6111 = vpow2.f32 %v1421_v23  ;;  %v1404_v59 = vsub.f32 %v6682_v33, %v1384_v24 }
 0x600   : > { %6113 = vpow2.f32 %v1417_v22 }
 0x601   : > { %v1423_v0 = vmul.f32 1.442695, %v1404_v59 }
 0x602   : > { %v1387_v27 = vpop.xlane.xlu1 %1386  ;;  %v1500_v4 = vpop.permute.xlu0 %1499 }
 0x603   : > { %v1405_v29 = vsub.f32 %v6687_v42, %v1387_v27  ;;  %6115 = vpow2.f32 %v1423_v0 }
 0x605   : > { %v1425_v28 = vmul.f32 1.442695, %v1405_v29 }
 0x606   : > { %v1390_v31 = vpop.xlane.xlu1 %1389  ;;  %v1504_v6 = vpop.permute.xlu0 %1503 }
 0x607   : > { %6117 = vpow2.f32 %v1425_v28  ;;  %v1406_v32 = vsub.f32 %v6692_v45, %v1390_v31 }
 0x608   : > { %6119 = vpow2.f32 %v1419_v30 }
 0x609   : > { %v6750_v34 = vpop.eup %6111  ;;  %v1427_v36 = vmul.f32 1.442695, %v1406_v32 }
 0x60a   : > { %v1451_v33 = vsel %vm1360_vm5, %v6750_v34, 0.0  ;;  %v6754_v38 = vpop.eup %6113  ;;  %v1506_v55 = vpop.permute.xlu1 %1505 }
 0x60b   : > { %6121 = vpow2.f32 %v1427_v36  ;;  %1452 = vadd.xlane.f32.xlu0 %v1451_v33  ;;  %v1445_v16 = vsel %vm1360_vm5, %v6754_v38, 0.0 }
 0x60d   : > { %v6758_v39 = vpop.eup %6115 }
 0x60e   : > { %v1454_v42 = vsel %vm1360_vm5, %v6758_v39, 0.0  ;;  %v1508_v58 = vpop.permute.xlu1 %1507 }
 0x60f   : > { %1446 = vadd.xlane.f32.xlu0 %v1445_v16 }
 0x611   : > { %v6760_v40 = vpop.eup %6117 }
 0x612   : > { %v1457_v43 = vsel %vm1360_vm5, %v6760_v40, 0.0  ;;  %v6766_v45 = vpop.eup %6119  ;;  %v1514_v61 = vpop.permute.xlu1 %1513 }
 0x613   : > { %1455 = vadd.xlane.f32.xlu0 %v1454_v42  ;;  %1458 = vadd.xlane.f32.xlu1 %v1457_v43  ;;  %v1448_v47 = vsel %vm1360_vm5, %v6766_v45, 0.0 }
 0x615   : > { %v6768_v46 = vpop.eup %6121 }
 0x616   : > { %v1460_v48 = vsel %vm1360_vm5, %v6768_v46, 0.0  ;;  %v1510_v54 = vpop.permute.xlu1 %1509 }
 0x617   : > { %1449 = vadd.xlane.f32.xlu0 %v1448_v47  ;;  %1461 = vadd.xlane.f32.xlu1 %v1460_v48 }
 0x637   : > { %v1393_v10 = vpop.xlane.xlu0 %1392 }
 0x638   : > { %v1407_v11 = vsub.f32 %v6709_v50, %v1393_v10 }
 0x63a   : > { %v1429_v51 = vmul.f32 1.442695, %v1407_v11 }
 0x63b   : > { %v1396_v56 = vpop.xlane.xlu0 %1395 }
 0x63c   : > { %6123 = vpow2.f32 %v1429_v51  ;;  %v1408_v50 = vsub.f32 %v6714_v8, %v1396_v56 }
 0x63e   : > { %v1431_v63 = vmul.f32 1.442695, %v1408_v50 }
 0x63f   : > { %v1512_v44 = vpop.permute.xlu0 %1511 }
 0x640   : > { %6125 = vpow2.f32 %v1431_v63 }
 0x646   : > { %v6775_v52 = vpop.eup %6123 }
 0x647   : > { %v1463_v53 = vsel %vm1360_vm5, %v6775_v52, 0.0 }
 0x648   : > { %1464 = vadd.xlane.f32.xlu0 %v1463_v53 }
 0x64a   : > { %1561 = vxpose.xlu1.b32.start [1/3] (short) (narrow) %v1500_v4, 8  ;;  %v6783_v2 = vpop.eup %6125 }
 0x64e   : > { %1562 = vxpose.xlu1.b32.cont [2/3] (short) (narrow) %v6641_v35, 8 }
 0x652   : > { %1563 = vxpose.xlu1.b32.end [3/3] (short) (narrow) %v1504_v6, 8  ;;  %v1435_v7 = vpop.xlane.xlu1 %1434 }
 0x653   : > { %6127 = vrcp.f32 %v1435_v7 }
 0x656   : > { %1625 = vxpose.xlu1.b32.start [1/3] (short) (narrow) %v1512_v44, 8 }
 0x65a   : > { %1626 = vxpose.xlu1.b32.cont [2/3] (short) (narrow) %v1514_v61, 8  ;;  %v1441_v35 = vpop.xlane.xlu1 %1440 }
 0x65d   : > { %v6128_v3 = vpop.eup %6127 }
 0x65e   : > { %1515 = vrot.lane.b32.xlu0 %v6571_v13, %s7560_s20  ;;  %v1481_v17 = vmul.f32 %v6128_v3, %v6722_v57  ;;  %v1466_v13 = vsel %vm1360_vm5, %v6783_v2, 0.0  ;;  %v6304_v3 = vmov 1983009808  }
 0x670   : > { %v1438_v1 = vpop.xlane.xlu0 %1437 }
 0x671   : > { %6129 = vrcp.f32 %v1438_v1 }
 0x672   : > { %6131 = vrcp.f32 %v1441_v35 }
 0x67b   : > { %v6130_v49 = vpop.eup %6129 }
 0x67c   : > { %v1482_v18 = vmul.f32 %v6130_v49, %v6733_v62  ;;  %v6132_v21 = vpop.eup %6131  ;;  %v2116_v49 = vunpack.c.l.s4 %v6304_v3 }
 0x67d   : > { %1467 = vadd.xlane.f32.xlu0 %v1466_v13  ;;  %v1483_v57 = vmul.f32 %v6132_v21, %v6728_v60  ;;  %v2119_v21 = vshrl.u32 %v574_v37, 7 }
 0x67e   : > { %v5944_v20 = vpack.c.bf16 %v1482_v18, %v1481_v17  ;;  %v6305_v17 = vmov 1934713408  }
 0x67f   : > { %v2148_v18 = vunpack.c.l.s4 %v6305_v17 }
 0x680   : > { %5946 = vmatpush3.bf16.xpose.msk.msra.mxu1 %vm6791_vm6, %v5944_v20  ;;  %v2117_v20 = vunpack.c.0.s8 %v2116_v49 }
 0x681   : > { %5740 = vmatprep.subr.mxu1 %v6299_v14 }
 0x686   : > { %v1444_v62 = vpop.xlane.xlu1 %1443 }
 0x687   : > { %6133 = vrcp.f32 %v1444_v62  ;;  %v2149_v62 = vunpack.c.0.s8 %v2148_v18 }
 0x688   : > { %5741 = vmatpush3.xpose.msk.msra.mxu1 %vm1360_vm5, %v1483_v57 }
 0x689   : > { %5951 = vmatprep.subr.bf16.mxu1 %v6303_v25 }
 0x68b   : > { %5743 = vmatmul.mubr.msk.f32.vlgmr.msra.gmra.mrb[12].mxu1 %vm1360_vm5, %v6718_v9 }
 0x68c   : > { %5760 = vmatprep.mubr.msk.f32.mxu1 %vm6300_vm2, %v6299_v14 }
 0x691   : > { %v6134_v60 = vpop.eup %6133 }
 0x692   : > { %v1484_v27 = vmul.f32 %v6134_v60, %v6738_v5 }
 0x698   : > { %v1453_v22 = vpop.xlane.xlu0 %1452 }
 0x69c   : > { %v1447_v23 = vpop.xlane.xlu0 %1446 }
 0x69d   : > { %6135 = vrcp.f32 %v1447_v23 }
 0x69e   : > { %6137 = vrcp.f32 %v1453_v22  ;;  %v6833_v22 = vsub.s32 %v2117_v20, %v2119_v21 }
 0x6a0   : > { %v1456_v24 = vpop.xlane.xlu0 %1455  ;;  %v1459_v26 = vpop.xlane.xlu1 %1458 }
 0x6a1   : > { %6139 = vrcp.f32 %v1456_v24 }
 0x6a4   : > { %v1450_v59 = vpop.xlane.xlu0 %1449  ;;  %v1462_v16 = vpop.xlane.xlu1 %1461 }
 0x6a5   : > { %6141 = vrcp.f32 %v1450_v59 }
 0x6a6   : > { %6143 = vrcp.f32 %v1459_v26 }
 0x6a7   : > { %v6136_v0 = vpop.eup %6135  ;;  %6145 = vrcp.f32 %v1462_v16 }
 0x6a8   : > { %v1485_v9 = vmul.f32 %v6136_v0, %v6754_v38  ;;  %v6138_v29 = vpop.eup %6137 }
 0x6a9   : > { %v1487_v31 = vmul.f32 %v6138_v29, %v6750_v34 }
 0x6aa   : > { %1593 = vxpose.xlu0.b32.start [1/3] (short) (narrow) %v1506_v55, 8  ;;  %v5948_v30 = vpack.c.bf16 %v1485_v9, %v1484_v27  ;;  %v6835_v27 = vsub.s32 %v2149_v62, %v2119_v21 }
 0x6ab   : > { %v6140_v28 = vpop.eup %6139 }
 0x6ac   : > { %v1488_v32 = vmul.f32 %v6140_v28, %v6758_v39  ;;  %5950 = vmatpush3.bf16.xpose.msk.msra.mxu0 %vm6791_vm6, %v5948_v30 }
 0x6ad   : > { %5749 = vmatprep.subr.mxu0 %v6299_v14 }
 0x6ae   : > { %1594 = vxpose.xlu0.b32.cont [2/3] (short) (narrow) %v1508_v58, 8  ;;  %v5952_v36 = vpack.c.bf16 %v1488_v32, %v1487_v31 }
 0x6af   : > { %v6142_v33 = vpop.eup %6141 }
 0x6b0   : > { %5954 = vmatpush3.bf16.xpose.msk.msra.mxu1 %vm6791_vm6, %v5952_v36  ;;  %v1486_v5 = vmul.f32 %v6142_v33, %v6766_v45  ;;  %v6144_v38 = vpop.eup %6143 }
 0x6b1   : > { %5758 = vmatprep.subr.mxu1 %v6299_v14  ;;  %v1489_v34 = vmul.f32 %v6144_v38, %v6760_v40  ;;  %v6146_v45 = vpop.eup %6145 }
 0x6b2   : > { %1595 = vxpose.xlu0.b32.end [3/3] (short) (narrow) %v1510_v54, 8  ;;  %v1490_v48 = vmul.f32 %v6146_v45, %v6768_v46 }
 0x6b4   : > { %5750 = vmatpush3.xpose.msk.msra.mxu0 %vm1360_vm5, %v1486_v5 }
 0x6b5   : > { %5955 = vmatprep.subr.bf16.mxu0 %v6303_v25 }
 0x6b8   : > { %5759 = vmatpush3.xpose.msk.msra.mxu1 %vm1360_vm5, %v1489_v34 }
 0x6ca   : > { %v1577_v39 = vpop.trf.xlu1 }
 0x6cb   : > { %5752 = vmatmul.mubr.msk.f32.vlgmr.msra.gmra.mrb[20].mxu0 %vm1360_vm5, %v1577_v39 }
 0x6cc   : > { %5769 = vmatprep.mubr.msk.f32.mxu0 %vm6300_vm2, %v6299_v14 }
 0x6d5   : > { %v1465_v42 = vpop.xlane.xlu0 %1464 }
 0x6d6   : > { %6147 = vrcp.f32 %v1465_v42 }
 0x6d9   : > { %v1516_v43 = vpop.permute.xlu0 %1515 }
 0x6da   : > { %1627 = vxpose.xlu1.b32.end [3/3] (short) (narrow) %v1516_v43, 8 }
 0x6e0   : > { %v6148_v47 = vpop.eup %6147 }
 0x6e1   : > { %v1491_v40 = vmul.f32 %v6148_v47, %v6775_v52 }
 0x6e3   : > { %v5956_v4 = vpack.c.bf16 %v1491_v40, %v1490_v48 }
 0x6e5   : > { %5958 = vmatpush3.bf16.xpose.msk.msra.mxu0 %vm6791_vm6, %v5956_v4 }
 0x6e6   : > { %5767 = vmatprep.subr.mxu0 %v6299_v14 }
 0x70a   : > { %v1468_v6 = vpop.xlane.xlu0 %1467 }
 0x70b   : > { %6149 = vrcp.f32 %v1468_v6 }
 0x715   : > { %v6150_v10 = vpop.eup %6149 }
 0x716   : > { %v1492_v11 = vmul.f32 %v6150_v10, %v6783_v2 }
 0x718   : > { %5768 = vmatpush3.xpose.msk.msra.mxu0 %vm1360_vm5, %v1492_v11 }
 0x72a   : > { %v1609_v51 = vpop.trf.xlu0 }
 0x72b   : > { %5761 = vmatmul.mubr.msk.f32.vlgmr.msra.gmra.mrb[14].mxu1 %vm1360_vm5, %v1609_v51 }
 0x752   : > { %v1641_v53 = vpop.trf.xlu1 }
 0x753   : > { %5770 = vmatmul.mubr.msk.f32.vlgmr.msra.gmra.mrb[22].mxu0 %vm1360_vm5, %v1641_v53 }
 0x75e   : > { %v1735_v46 = vpop.f32.mrb[12].mxu1 }
 0x75f   : > { %1985 = vxpose.xlu0.b32.start.end [1/1] (short) (narrow) %v1735_v46, 24  ;;  %v5744_v52 = vpop.f32.mrb[13].mxu1 }
 0x79e   : > { %v1817_v55 = vpop.f32.mrb[20].mxu0 }
 0x79f   : > { %2017 = vxpose.xlu0.b32.start.end [1/1] (short) (narrow) %v1817_v55, 24  ;;  %v5753_v56 = vpop.f32.mrb[21].mxu0 }
 0x7df   : > { %v2001_v54 = vpop.trf.xlu0 }
 0x7e3   : > { %v2002_v63 = vpop.trf.xlu0 }
 0x7e7   : > { %v2003_v7 = vpop.trf.xlu0 }
 0x7fe   : > { %v1899_v58 = vpop.f32.mrb[14].mxu1 }
 0x7ff   : > { %2049 = vxpose.xlu1.b32.start.end [1/1] (short) (narrow) %v1899_v58, 24  ;;  %v5762_v44 = vpop.f32.mrb[15].mxu1 }
 0x81f   : > { %v2033_v1 = vpop.trf.xlu0 }
 0x823   : > { %v2034_v35 = vpop.trf.xlu0 }
 0x826   : > { %v1981_v61 = vpop.f32.mrb[22].mxu0 }
 0x827   : > { %2081 = vxpose.xlu0.b32.start.end [1/1] (short) (narrow) %v1981_v61, 24  ;;  %v5771_v50 = vpop.f32.mrb[23].mxu0  ;;  %v2035_v13 = vpop.trf.xlu0 }
 0x87f   : > { %v2065_v2 = vpop.trf.xlu1 }
 0x880   : > { %v2113_v23 = vcombine.low %v2001_v54, %v2065_v2  ;;  %v2114_v24 = vcombine.high %v2001_v54, %v2065_v2 }
 0x882   : > { %v2121_v30 = vrot.slane %v2113_v23, %v6833_v22  ;;  %v2128_v28 = vrot.slane %v2114_v24, %v6833_v22 }
 0x883   : > { %v2066_v57 = vpop.trf.xlu1 }
 0x884   : > { %v2181_v9 = vcombine.low %v2002_v63, %v2066_v57  ;;  %v2182_v29 = vcombine.high %v2002_v63, %v2066_v57 }
 0x886   : > { %v2189_v39 = vrot.slane %v2181_v9, %v6833_v22  ;;  %v2196_v42 = vrot.slane %v2182_v29, %v6833_v22 }
 0x887   : > { %v2067_v60 = vpop.trf.xlu1 }
 0x888   : > { %v2249_v32 = vcombine.low %v2003_v7, %v2067_v60  ;;  %v2250_v36 = vcombine.high %v2003_v7, %v2067_v60 }
 0x88a   : > { %v2257_v6 = vrot.slane %v2249_v32, %v6833_v22  ;;  %v2264_v10 = vrot.slane %v2250_v36, %v6833_v22 }
 0x8a7   : > { %v2097_v59 = vpop.trf.xlu0 }
 0x8a8   : > { %v2129_v26 = vcombine.low %v2033_v1, %v2097_v59  ;;  %v2130_v0 = vcombine.high %v2033_v1, %v2097_v59 }
 0x8aa   : > { %v2137_v37 = vrot.slane %v2129_v26, %v6833_v22  ;;  %v2144_v31 = vrot.slane %v2130_v0, %v6833_v22 }
 0x8ab   : > { %v2098_v33 = vpop.trf.xlu0 }
 0x8ac   : > { %v2145_v5 = vcombine.low %v2121_v30, %v2137_v37  ;;  %v2146_v38 = vcombine.high %v2121_v30, %v2137_v37  ;;  %v2161_v34 = vcombine.low %v2128_v28, %v2144_v31  ;;  %v2162_v16 = vcombine.high %v2128_v28, %v2144_v31 }
 0x8ad   : > { %v2197_v43 = vcombine.low %v2034_v35, %v2098_v33  ;;  %v2198_v45 = vcombine.high %v2034_v35, %v2098_v33 }
 0x8ae   : > { %v2153_v47 = vrot.slane %v2145_v5, %v6835_v27  ;;  %v2160_v48 = vrot.slane %v2146_v38, %v6835_v27  ;;  %v2169_v40 = vrot.slane %v2161_v34, %v6835_v27  ;;  %v2176_v4 = vrot.slane %v2162_v16, %v6835_v27 }
 0x8af   : > { %v2205_v11 = vrot.slane %v2197_v43, %v6833_v22  ;;  %v2212_v51 = vrot.slane %v2198_v45, %v6833_v22  ;;  %v2099_v53 = vpop.trf.xlu0 }
 0x8b0   : > { %v2317_v46 = vcombine.low %v2153_v47, %v2160_v48  ;;  %v5426_v52 = vcombine.high %v2153_v47, %v2160_v48  ;;  %v2333_v55 = vcombine.low %v2169_v40, %v2176_v4  ;;  %v5427_v56 = vcombine.high %v2169_v40, %v2176_v4 }
 0x8b1   : > { %v2213_v58 = vcombine.low %v2189_v39, %v2205_v11  ;;  %v2214_v44 = vcombine.high %v2189_v39, %v2205_v11  ;;  %v2229_v61 = vcombine.low %v2196_v42, %v2212_v51  ;;  %v2230_v50 = vcombine.high %v2196_v42, %v2212_v51 }
 0x8b2   : > { %v2265_v54 = vcombine.low %v2035_v13, %v2099_v53  ;;  %v2266_v63 = vcombine.high %v2035_v13, %v2099_v53  ;;  %v2324_v7 = vrot.slane %v2317_v46, %v6833_v22  ;;  %v2332_v1 = vrot.slane %v5426_v52, %v6833_v22 }
 0x8b3   : > { %v2221_v35 = vrot.slane %v2213_v58, %v6835_v27  ;;  %v2228_v2 = vrot.slane %v2214_v44, %v6835_v27  ;;  %v2237_v3 = vrot.slane %v2229_v61, %v6835_v27  ;;  %v2244_v49 = vrot.slane %v2230_v50, %v6835_v27 }
 0x8b4   : > { %v2273_v17 = vrot.slane %v2265_v54, %v6833_v22  ;;  %v2280_v18 = vrot.slane %v2266_v63, %v6833_v22  ;;  %v2340_v20 = vrot.slane %v2333_v55, %v6833_v22  ;;  %v2348_v13 = vrot.slane %v5427_v56, %v6833_v22 }
 0x8b5   : > { %v2385_v21 = vcombine.low %v2221_v35, %v2228_v2  ;;  %v5428_v57 = vcombine.high %v2221_v35, %v2228_v2  ;;  %v2401_v62 = vcombine.low %v2237_v3, %v2244_v49  ;;  %v5429_v23 = vcombine.high %v2237_v3, %v2244_v49 }
 0x8b6   : > { %v2281_v24 = vcombine.low %v2257_v6, %v2273_v17  ;;  %v2282_v59 = vcombine.high %v2257_v6, %v2273_v17  ;;  %v2297_v60 = vcombine.low %v2264_v10, %v2280_v18  ;;  %v2298_v26 = vcombine.high %v2264_v10, %v2280_v18 }
 0x8b7   : > { %v2349_v0 = vcombine.low %v2324_v7, %v2332_v1  ;;  %v2365_v9 = vcombine.low %v2340_v20, %v2348_v13  ;;  %v2392_v29 = vrot.slane %v2385_v21, %v6833_v22  ;;  %v2400_v30 = vrot.slane %v5428_v57, %v6833_v22 }
 0x8b8   : > { %v2289_v28 = vrot.slane %v2281_v24, %v6835_v27  ;;  %v2296_v37 = vrot.slane %v2282_v59, %v6835_v27  ;;  %v2305_v31 = vrot.slane %v2297_v60, %v6835_v27  ;;  %v2312_v32 = vrot.slane %v2298_v26, %v6835_v27 }
 0x8b9   : > { %v6868_v36 = vrot.slane %v2349_v0, %v6835_v27  ;;  %v6871_v33 = vrot.slane %v2365_v9, %v6835_v27  ;;  %v2408_v5 = vrot.slane %v2401_v62, %v6833_v22  ;;  %v2416_v38 = vrot.slane %v5429_v23, %v6833_v22 }
 0x8ba   : > { %v2453_v34 = vcombine.low %v2289_v28, %v2296_v37  ;;  %v5430_v16 = vcombine.high %v2289_v28, %v2296_v37  ;;  %v2469_v39 = vcombine.low %v2305_v31, %v2312_v32  ;;  %v5431_v42 = vcombine.high %v2305_v31, %v2312_v32 }
 0x8bb   : > { %v2381_v43 = vcombine.low %v6868_v36, %v6871_v33  ;;  %v2382_v45 = vcombine.high %v6868_v36, %v6871_v33  ;;  %v2417_v47 = vcombine.low %v2392_v29, %v2400_v30  ;;  %v2433_v48 = vcombine.low %v2408_v5, %v2416_v38 }
 0x8bc   : > { %v2460_v40 = vrot.slane %v2453_v34, %v6833_v22  ;;  %v2468_v4 = vrot.slane %v5430_v16, %v6833_v22  ;;  %v2476_v6 = vrot.slane %v2469_v39, %v6833_v22  ;;  %v2484_v10 = vrot.slane %v5431_v42, %v6833_v22 }
 0x8bd   : > { %v2425_v11 = vrot.slane %v2417_v47, %v6835_v27  ;;  %v2441_v51 = vrot.slane %v2433_v48, %v6835_v27  ;;  %v2350_v53 = vcombine.high %v2324_v7, %v2332_v1  ;;  %v2366_v46 = vcombine.high %v2340_v20, %v2348_v13  ;;  %v6071_v1 = vld [vmem:[%s7532_s6] sm:$0xff]   ;;  %v6072_v13 = vld [vmem:[%s7532_s6 + $0x8] sm:$0xff]  }
 0x8be   : > { %v2485_v52 = vcombine.low %v2460_v40, %v2468_v4  ;;  %v2501_v55 = vcombine.low %v2476_v6, %v2484_v10  ;;  %v2418_v56 = vcombine.high %v2392_v29, %v2400_v30  ;;  %v2434_v58 = vcombine.high %v2408_v5, %v2416_v38  ;;  %5772 = vmatprep.subr.bf16.mxu1 %v6071_v1 }
 0x8bf   : > { %v2450_v44 = vcombine.high %v2425_v11, %v2441_v51  ;;  %v2449_v61 = vcombine.low %v2425_v11, %v2441_v51  ;;  %v2364_v50 = vrot.slane %v2350_v53, %v6835_v27  ;;  %v2380_v54 = vrot.slane %v2366_v46, %v6835_v27  ;;  %5773 = vmatpush3.bf16.msra.mxu1 %v6071_v1  ;;  %v5436_v53 = vld [vmem:[%s7533_s7] ss:$0 sm:$0xff] }
 0x8c0   : > { %v2493_v63 = vrot.slane %v2485_v52, %v6835_v27  ;;  %v2509_v35 = vrot.slane %v2501_v55, %v6835_v27  ;;  %v2432_v2 = vrot.slane %v2418_v56, %v6835_v27  ;;  %v2448_v3 = vrot.slane %v2434_v58, %v6835_v27  ;;  %5774 = vmatprep.subr.bf16.mxu1 %v6072_v13 }
 0x8c1   : > { %v6035_v7 = vpack.i.bf16 %v2450_v44, %v2382_v45  ;;  %v2383_v18 = vcombine.low %v2364_v50, %v2380_v54  ;;  %v2486_v62 = vcombine.high %v2460_v40, %v2468_v4  ;;  %v2502_v23 = vcombine.high %v2476_v6, %v2484_v10 }
 0x8c2   : > { %v2518_v49 = vcombine.high %v2493_v63, %v2509_v35  ;;  %v2451_v17 = vcombine.low %v2432_v2, %v2448_v3  ;;  %v2517_v20 = vcombine.low %v2493_v63, %v2509_v35  ;;  %v2452_v57 = vcombine.high %v2432_v2, %v2448_v3 }
 0x8c3   : > { %6036 = vrot.lane.b32.xlu1 %v6035_v7, %s7556_s25  ;;  %v2384_v24 = vcombine.high %v2364_v50, %v2380_v54  ;;  %5775 = vmatpush3.bf16.msra.mxu1 %v6072_v13  ;;  %v2500_v60 = vrot.slane %v2486_v62, %v6835_v27  ;;  %v2516_v26 = vrot.slane %v2502_v23, %v6835_v27 }
 0x8c4   : > { %2528 = vrot.lane.b32.xlu0 %v2518_v49, %s7556_s25  ;;  %v6040_v21 = vpack.i.bf16 %v2451_v17, %v2383_v18  ;;  %s7582_s25 = smov 96  }
 0x8c5   : > { %v6045_v59 = vpack.i.bf16 %v2452_v57, %v2384_v24  ;;  %v2519_v0 = vcombine.low %v2500_v60, %v2516_v26  ;;  %v2520_v9 = vcombine.high %v2500_v60, %v2516_v26  ;;  %v6073_v24 = vld [vmem:[%s7536_s10] sm:$0xff]  }
 0x8c6   : > { %5780 = vmatprep.subr.bf16.mxu0 %v6073_v24 }
 0x8c7   : > { %6041 = vrot.lane.b32.xlu1 %v6040_v21, %s7558_s22  ;;  %5781 = vmatpush3.bf16.msra.mxu0 %v6073_v24 }
 0x8cb   : > { %6046 = vrot.lane.b32.xlu1 %v6045_v59, %s7554_s21  ;;  %v6074_v59 = vld [vmem:[%s7536_s10 + $0x8] sm:$0xff]  }
 0x8cc   : > { %5782 = vmatprep.subr.bf16.mxu0 %v6074_v59 }
 0x8cd   : > { %5783 = vmatpush3.bf16.msra.mxu0 %v6074_v59 }
 0x8cf   : > { %2540 = vrot.lane.b32.xlu1 %v2519_v0, %s7558_s22  ;;  %s7584_s22 = smov 16  }
 0x8d3   : > { %2552 = vrot.lane.b32.xlu1 %v2520_v9, %s7554_s21  ;;  %s7586_s21 = smov 24  }
 0x935   : > { %v6037_v29 = vpop.permute.xlu1 %6036 }
 0x936   : > { %v6039_v28 = vunpack.i.h.bf16 %v6037_v29  ;;  %v6038_v37 = vunpack.i.l.bf16 %v6037_v29  ;;  %v2529_v40 = vpop.permute.xlu0 %2528 }
 0x937   : > { %v2559_v10 = vsel %vm991_vm3, %v2517_v20, %v2529_v40 }
 0x938   : > { %v2558_v38 = vsel %vm991_vm3, %v2449_v61, %v6039_v28  ;;  %v2557_v34 = vsel %vm991_vm3, %v2381_v43, %v6038_v37 }
 0x939   : > { %v6042_v30 = vpop.permute.xlu1 %6041 }
 0x93a   : > { %v6044_v31 = vunpack.i.h.bf16 %v6042_v30  ;;  %v6043_v32 = vunpack.i.l.bf16 %v6042_v30 }
 0x93c   : > { %v2561_v42 = vsel %vm2560_vm7, %v2557_v34, %v6043_v32  ;;  %v2562_v45 = vsel %vm2560_vm7, %v2558_v38, %v6044_v31 }
 0x93d   : > { %v6047_v5 = vpop.permute.xlu1 %6046 }
 0x93e   : > { %v6049_v16 = vunpack.i.h.bf16 %v6047_v5  ;;  %v6048_v39 = vunpack.i.l.bf16 %v6047_v5  ;;  %v5437_v5 = vld [vmem:[%s7534_s8] ss:$0 sm:$0xff] }
 0x940   : > { %v2564_v47 = vsel %vm1360_vm5, %v2561_v42, %v6048_v39  ;;  %v2565_v48 = vsel %vm1360_vm5, %v2562_v45, %v6049_v16  ;;  %v5438_v42 = vld [vmem:[%s7535_s9] ss:$0 sm:$0xff] }
 0x941   : > { %v2567_v4 = vpack.c.bf16 %v2565_v48, %v2564_v47  ;;  %v2541_v6 = vpop.permute.xlu1 %2540 }
 0x942   : > { %v2563_v36 = vsel %vm2560_vm7, %v2559_v10, %v2541_v6 }
 0x943   : > { %5776 = vmatprep.mubr.msk.bf16.mxu1 %vm675_vm1, %v2567_v4 }
 0x945   : > { %v2553_v33 = vpop.permute.xlu1 %2552 }
 0x946   : > { %v2566_v43 = vsel %vm1360_vm5, %v2563_v36, %v2553_v33 }
 0x947   : > { %v2568_v11 = vpack.c.bf16 %v2566_v43, %v2566_v43  ;;  %v6075_v43 = vld [vmem:[%s7538_s12] sm:$0xff]  }
 0x948   : > { %5788 = vmatprep.subr.bf16.mxu1 %v6075_v43 }
 0x949   : > { %5777 = vmatmul.mubr.msk.bf16.vlgmr.msra.gmra.mrb[16].mxu1 %vm675_vm1, %v2568_v11  ;;  %v6076_v11 = vld [vmem:[%s7538_s12 + $0x8] sm:$0xff]  }
 0x94a   : > { %5789 = vmatpush3.bf16.msra.mxu1 %v6075_v43 }
 0x94b   : > { %5790 = vmatprep.subr.bf16.mxu1 %v6076_v11 }
 0x94e   : > { %5791 = vmatpush3.bf16.msra.mxu1 %v6076_v11 }
 0xa1c   : > { %v5778_v51 = vpop.f32.mrb[16].mxu1 }
 0xa1d   : > { %v2625_v46 = vpop.f32.mrb[17].mxu1  ;;  %v2641_v58 = vadd.f32 %v5778_v51, %v6476_v12  ;;  %v6077_v51 = vld [vmem:[%s7538_s12 + $0x10] sm:$0xff]  }
 0xa1e   : > { %v2639_v52 = vadd.f32 %v2625_v46, %v6481_v15  ;;  %v5779_v55 = vpop.f32.mrb[18].mxu1  ;;  %5792 = vmatprep.subr.bf16.mxu1 %v6077_v51  ;;  %v6079_v46 = vld [vmem:[%s7538_s12 + $0x20] sm:$0xff]  }
 0xa1f   : > { %v2628_v56 = vpop.f32.mrb[19].mxu1  ;;  %v6931_v63 = vadd.f32 %v5436_v53, %v2641_v58  ;;  %5793 = vmatpush3.bf16.msra.mxu1 %v6077_v51  ;;  %v6081_v55 = vld [vmem:[%s7538_s12 + $0x30] sm:$0xff]   ;;  %v5439_v58 = vld [vmem:[%s7537_s11] ss:$0 sm:$0xff] }
 0xa20   : > { %v6924_v44 = vadd.f32 %v5436_v53, %v2639_v52  ;;  %v2640_v61 = vadd.f32 %v2628_v56, %v6485_v19  ;;  %v6080_v52 = vld [vmem:[%s7538_s12 + $0x28] sm:$0xff]   ;;  %v6082_v56 = vld [vmem:[%s7538_s12 + $0x38] sm:$0xff]  }
 0xa21   : > { %v2660_v15 = vsel %vm675_vm1, %v6931_v63, 0.0 }
 0xa22   : > { %v6927_v50 = vadd.f32 %v5436_v53, %v2640_v61  ;;  %v2654_v54 = vsel %vm675_vm1, %v6924_v44, 0.0  ;;  %v6078_v53 = vld [vmem:[%s7538_s12 + $0x18] sm:$0xff]  }
 0xa23   : > { %2655 = vadd.xlane.f32.xlu1 %v2654_v54  ;;  %5794 = vmatprep.subr.bf16.mxu1 %v6078_v53 }
 0xa24   : > { %v2657_v35 = vsel %vm675_vm1, %v6927_v50, 0.0  ;;  %5795 = vmatpush3.bf16.msra.mxu1 %v6078_v53 }
 0xa25   : > { %2658 = vadd.xlane.f32.xlu0 %v2657_v35  ;;  %5796 = vmatprep.subr.bf16.mxu1 %v6079_v46 }
 0xa28   : > { %5797 = vmatpush3.bf16.msra.mxu1 %v6079_v46 }
 0xa29   : > { %2661 = vadd.xlane.f32.xlu0 %v2660_v15  ;;  %5798 = vmatprep.subr.bf16.mxu1 %v6080_v52 }
 0xa2c   : > { %5799 = vmatpush3.bf16.msra.mxu1 %v6080_v52 }
 0xa2d   : > { %5800 = vmatprep.subr.bf16.mxu1 %v6081_v55 }
 0xa30   : > { %5801 = vmatpush3.bf16.msra.mxu1 %v6081_v55 }
 0xa31   : > { %5802 = vmatprep.subr.bf16.mxu1 %v6082_v56 }
 0xa34   : > { %5803 = vmatpush3.bf16.msra.mxu1 %v6082_v56 }
 0xa35   : > { %5838 = vmatprep.subr.mxu1 %v6299_v14 }
 0xab0   : > { %v2656_v12 = vpop.xlane.xlu1 %2655 }
 0xab1   : > { %v2663_v2 = vmul.f32 0.03125, %v2656_v12 }
 0xab2   : > { %v2659_v3 = vpop.xlane.xlu0 %2658 }
 0xab3   : > { %v2666_v19 = vsub.f32 %v6924_v44, %v2663_v2  ;;  %v2664_v7 = vmul.f32 0.03125, %v2659_v3 }
 0xab5   : > { %v2667_v1 = vsub.f32 %v6927_v50, %v2664_v7  ;;  %v2669_v49 = vmul.f32 %v2666_v19, %v2666_v19 }
 0xab6   : > { %v2662_v17 = vpop.xlane.xlu0 %2661 }
 0xab7   : > { %v2665_v18 = vmul.f32 0.03125, %v2662_v17  ;;  %v2672_v20 = vsel %vm675_vm1, %v2669_v49, 0.0  ;;  %v2670_v13 = vmul.f32 %v2667_v1, %v2667_v1 }
 0xab8   : > { %2673 = vadd.xlane.f32.xlu1 %v2672_v20 }
 0xab9   : > { %v2668_v21 = vsub.f32 %v6931_v63, %v2665_v18  ;;  %v2675_v57 = vsel %vm675_vm1, %v2670_v13, 0.0 }
 0xaba   : > { %2676 = vadd.xlane.f32.xlu0 %v2675_v57 }
 0xabb   : > { %v2671_v62 = vmul.f32 %v2668_v21, %v2668_v21 }
 0xabd   : > { %v2678_v23 = vsel %vm675_vm1, %v2671_v62, 0.0 }
 0xabe   : > { %2679 = vadd.xlane.f32.xlu1 %v2678_v23 }
 0xb45   : > { %v2674_v60 = vpop.xlane.xlu1 %2673 }
 0xb46   : > { %v2681_v26 = vmul.f32 0.03125, %v2674_v60 }
 0xb47   : > { %v2677_v0 = vpop.xlane.xlu0 %2676 }
 0xb48   : > { %v2684_v9 = vadd.f32 1e-06, %v2681_v26  ;;  %v2682_v29 = vmul.f32 0.03125, %v2677_v0 }
 0xb4a   : > { %6151 = vrsqrt.f32 %v2684_v9  ;;  %v2685_v30 = vadd.f32 1e-06, %v2682_v29 }
 0xb4b   : > { %v2680_v28 = vpop.xlane.xlu1 %2679 }
 0xb4c   : > { %6153 = vrsqrt.f32 %v2685_v30  ;;  %v2683_v37 = vmul.f32 0.03125, %v2680_v28 }
 0xb4e   : > { %v2686_v31 = vadd.f32 1e-06, %v2683_v37 }
 0xb50   : > { %6155 = vrsqrt.f32 %v2686_v31 }
 0xb54   : > { %v6152_v32 = vpop.eup %6151 }
 0xb55   : > { %v2690_v38 = vmul.f32 %v6152_v32, %v2666_v19 }
 0xb56   : > { %v6154_v34 = vpop.eup %6153 }
 0xb57   : > { %v2691_v16 = vmul.f32 %v6154_v34, %v2667_v1  ;;  %v2699_v39 = vmul.f32 %v5437_v5, %v2690_v38 }
 0xb59   : > { %v2700_v45 = vmul.f32 %v5437_v5, %v2691_v16  ;;  %v2708_v40 = vadd.f32 %v5438_v42, %v2699_v39 }
 0xb5a   : > { %v6156_v47 = vpop.eup %6155 }
 0xb5b   : > { %v2692_v48 = vmul.f32 %v6156_v47, %v2668_v21  ;;  %v2709_v4 = vadd.f32 %v5438_v42, %v2700_v45  ;;  %v5452_v45 = vld [vmem:[%s7539_s13] ss:$0 sm:$0xff] }
 0xb5d   : > { %v2711_v6 = vpack.c.bf16 %v2709_v4, %v2708_v40  ;;  %v2701_v10 = vmul.f32 %v5437_v5, %v2692_v48 }
 0xb5f   : > { %5784 = vmatprep.mubr.msk.bf16.mxu0 %vm675_vm1, %v2711_v6  ;;  %v2710_v36 = vadd.f32 %v5438_v42, %v2701_v10 }
 0xb61   : > { %v2712_v33 = vpack.c.bf16 %v2710_v36, %v2710_v36 }
 0xb63   : > { %5785 = vmatmul.mubr.msk.bf16.vlgmr.msra.gmra.mrb[24].mxu0 %vm675_vm1, %v2712_v33 }
 0xc36   : > { %v5786_v61 = vpop.f32.mrb[24].mxu0 }
 0xc37   : > { %v2785_v54 = vadd.f32 %v5786_v61, %v5439_v58  ;;  %v2776_v35 = vpop.f32.mrb[25].mxu0 }
 0xc38   : > { %v2777_v15 = vadd.f32 %v5439_v58, %v2776_v35  ;;  %v5787_v12 = vpop.f32.mrb[26].mxu0 }
 0xc39   : > { %v2795_v2 = vmul.f32 0.044715, %v2785_v54  ;;  %v2779_v3 = vpop.f32.mrb[27].mxu0  ;;  %v2792_v28 = vmul.f32 0.5, %v2785_v54 }
 0xc3a   : > { %v2793_v19 = vmul.f32 0.044715, %v2777_v15  ;;  %v2780_v7 = vadd.f32 %v5439_v58, %v2779_v3  ;;  %v2790_v37 = vmul.f32 0.5, %v2777_v15 }
 0xc3b   : > { %v2798_v1 = vmul.f32 %v2795_v2, %v2785_v54 }
 0xc3c   : > { %v2796_v49 = vmul.f32 %v2793_v19, %v2777_v15  ;;  %v2794_v17 = vmul.f32 0.044715, %v2780_v7  ;;  %v2791_v31 = vmul.f32 0.5, %v2780_v7  ;;  %v6083_v19 = vld [vmem:[%s7531_s5 + $0x10] sm:$0xff]  }
 0xc3d   : > { %v2801_v18 = vmul.f32 %v2798_v1, %v2785_v54  ;;  %5808 = vmatprep.subr.bf16.mxu0 %v6083_v19 }
 0xc3e   : > { %v2799_v20 = vmul.f32 %v2796_v49, %v2777_v15  ;;  %v2797_v13 = vmul.f32 %v2794_v17, %v2780_v7  ;;  %5809 = vmatpush3.bf16.msra.mxu0 %v6083_v19 }
 0xc3f   : > { %v2804_v21 = vadd.f32 %v2801_v18, %v2785_v54 }
 0xc40   : > { %v2800_v57 = vmul.f32 %v2797_v13, %v2780_v7  ;;  %v2802_v62 = vadd.f32 %v2799_v20, %v2777_v15 }
 0xc41   : > { %v2807_v23 = vmul.f32 0.7978845, %v2804_v21 }
 0xc42   : > { %v2803_v24 = vadd.f32 %v2800_v57, %v2780_v7  ;;  %v2805_v59 = vmul.f32 0.7978845, %v2802_v62  ;;  %v6084_v7 = vld [vmem:[%s7531_s5 + $0x18] sm:$0xff]  }
 0xc43   : > { %6157 = vtanh.f32 %v2807_v23  ;;  %5810 = vmatprep.subr.bf16.mxu0 %v6084_v7 }
 0xc44   : > { %v2806_v60 = vmul.f32 0.7978845, %v2803_v24  ;;  %6159 = vtanh.f32 %v2805_v59  ;;  %5811 = vmatpush3.bf16.msra.mxu0 %v6084_v7  ;;  %v5455_v24 = vld [vmem:[%s7529_s3 + $0x1] ss:$0 sm:$0xff] }
 0xc45   : > { %5816 = vmatprep.subr.mxu0 %v6299_v14 }
 0xc46   : > { %6161 = vtanh.f32 %v2806_v60 }
 0xc4d   : > { %v6158_v26 = vpop.eup %6157 }
 0xc4e   : > { %v6160_v0 = vpop.eup %6159  ;;  %v2813_v9 = vadd.f32 1.0, %v6158_v26 }
 0xc4f   : > { %v2811_v29 = vadd.f32 1.0, %v6160_v0 }
 0xc50   : > { %v6162_v30 = vpop.eup %6161  ;;  %v2816_v5 = vmul.f32 %v2813_v9, %v2792_v28 }
 0xc51   : > { %v2812_v32 = vadd.f32 1.0, %v6162_v30  ;;  %v2814_v38 = vmul.f32 %v2811_v29, %v2790_v37  ;;  %v5456_v29 = vld [vmem:[%s7530_s4 + $0x1] ss:$0 sm:$0xff] }
 0xc52   : > { %v2818_v39 = vpack.c.bf16 %v2816_v5, %v2816_v5 }
 0xc53   : > { %v2815_v34 = vmul.f32 %v2812_v32, %v2791_v31 }
 0xc55   : > { %v2817_v16 = vpack.c.bf16 %v2815_v34, %v2814_v38 }
 0xc57   : > { %5804 = vmatprep.mubr.bf16.mxu1 %v2817_v16 }
 0xc58   : > { %5805 = vmatmul.mubr.bf16.vlgmr.msra.gmra.mrb[20].mxu1 %v2818_v39 }
 0xc59   : > { %5840 = vmatprep.mubr.msk.f32.mxu1 %vm6300_vm2, %v6299_v14 }
 0xd2b   : > { %v5806_v42 = vpop.f32.mrb[20].mxu1 }
 0xd2c   : > { %v2917_v47 = vpop.f32.mrb[21].mxu1  ;;  %v2933_v48 = vadd.f32 %v5806_v42, %v6931_v63 }
 0xd2d   : > { %v2931_v40 = vadd.f32 %v2917_v47, %v6924_v44  ;;  %v5807_v4 = vpop.f32.mrb[22].mxu1 }
 0xd2e   : > { %v2920_v6 = vpop.f32.mrb[23].mxu1  ;;  %v6995_v33 = vadd.f32 %v5452_v45, %v2933_v48 }
 0xd2f   : > { %v6992_v10 = vadd.f32 %v5452_v45, %v2931_v40  ;;  %v2932_v36 = vadd.f32 %v2920_v6, %v6927_v50 }
 0xd30   : > { %v2954_v44 = vsel %vm675_vm1, %v6995_v33, 0.0 }
 0xd31   : > { %v6997_v43 = vadd.f32 %v5452_v45, %v2932_v36  ;;  %v2948_v11 = vsel %vm675_vm1, %v6992_v10, 0.0 }
 0xd32   : > { %2949 = vadd.xlane.f32.xlu0 %v2948_v11 }
 0xd33   : > { %v2951_v51 = vsel %vm675_vm1, %v6997_v43, 0.0 }
 0xd34   : > { %2952 = vadd.xlane.f32.xlu1 %v2951_v51 }
 0xd36   : > { %2955 = vadd.xlane.f32.xlu0 %v2954_v44 }
 0xdbf   : > { %v2950_v63 = vpop.xlane.xlu0 %2949 }
 0xdc0   : > { %v2957_v53 = vmul.f32 0.03125, %v2950_v63 }
 0xdc1   : > { %v2953_v46 = vpop.xlane.xlu1 %2952 }
 0xdc2   : > { %v2960_v50 = vsub.f32 %v6992_v10, %v2957_v53  ;;  %v2958_v52 = vmul.f32 0.03125, %v2953_v46 }
 0xdc3   : > { %v2956_v55 = vpop.xlane.xlu0 %2955 }
 0xdc4   : > { %v2961_v56 = vsub.f32 %v6997_v43, %v2958_v52  ;;  %v2959_v58 = vmul.f32 0.03125, %v2956_v55  ;;  %v2963_v61 = vmul.f32 %v2960_v50, %v2960_v50 }
 0xdc6   : > { %v2962_v54 = vsub.f32 %v6995_v33, %v2959_v58  ;;  %v2966_v35 = vsel %vm675_vm1, %v2963_v61, 0.0  ;;  %v2964_v15 = vmul.f32 %v2961_v56, %v2961_v56 }
 0xdc7   : > { %2967 = vadd.xlane.f32.xlu1 %v2966_v35 }
 0xdc8   : > { %v2969_v12 = vsel %vm675_vm1, %v2964_v15, 0.0  ;;  %v2965_v2 = vmul.f32 %v2962_v54, %v2962_v54 }
 0xdc9   : > { %2970 = vadd.xlane.f32.xlu0 %v2969_v12 }
 0xdca   : > { %v2972_v3 = vsel %vm675_vm1, %v2965_v2, 0.0 }
 0xdcb   : > { %2973 = vadd.xlane.f32.xlu1 %v2972_v3 }
 0xe54   : > { %v2968_v1 = vpop.xlane.xlu1 %2967 }
 0xe55   : > { %v2975_v49 = vmul.f32 0.03125, %v2968_v1 }
 0xe56   : > { %v2971_v17 = vpop.xlane.xlu0 %2970 }
 0xe57   : > { %v2978_v18 = vadd.f32 1e-06, %v2975_v49  ;;  %v2976_v20 = vmul.f32 0.03125, %v2971_v17 }
 0xe58   : > { %v2974_v13 = vpop.xlane.xlu1 %2973 }
 0xe59   : > { %6163 = vrsqrt.f32 %v2978_v18  ;;  %v2979_v21 = vadd.f32 1e-06, %v2976_v20  ;;  %v2977_v57 = vmul.f32 0.03125, %v2974_v13 }
 0xe5b   : > { %6165 = vrsqrt.f32 %v2979_v21  ;;  %v2980_v62 = vadd.f32 1e-06, %v2977_v57 }
 0xe5d   : > { %6167 = vrsqrt.f32 %v2980_v62 }
 0xe63   : > { %v6164_v23 = vpop.eup %6163 }
 0xe64   : > { %v2984_v59 = vmul.f32 %v6164_v23, %v2960_v50 }
 0xe65   : > { %v6166_v60 = vpop.eup %6165 }
 0xe66   : > { %v2985_v26 = vmul.f32 %v6166_v60, %v2961_v56  ;;  %v2993_v0 = vmul.f32 %v5455_v24, %v2984_v59 }
 0xe67   : > { %v6168_v9 = vpop.eup %6167 }
 0xe68   : > { %v2986_v30 = vmul.f32 %v6168_v9, %v2962_v54  ;;  %v2994_v28 = vmul.f32 %v5455_v24, %v2985_v26  ;;  %v3002_v37 = vadd.f32 %v5456_v29, %v2993_v0 }
 0xe6a   : > { %v3003_v31 = vadd.f32 %v5456_v29, %v2994_v28  ;;  %v2995_v32 = vmul.f32 %v5455_v24, %v2986_v30 }
 0xe6c   : > { %v3005_v5 = vpack.c.bf16 %v3003_v31, %v3002_v37  ;;  %v3004_v38 = vadd.f32 %v5456_v29, %v2995_v32 }
 0xe6e   : > { %5812 = vmatprep.mubr.msk.bf16.mxu0 %vm675_vm1, %v3005_v5  ;;  %v3006_v34 = vpack.c.bf16 %v3004_v38, %v3004_v38 }
 0xe70   : > { %5813 = vmatmul.mubr.msk.bf16.vlgmr.msra.gmra.mrb[28].mxu0 %vm675_vm1, %v3006_v34 }
 0xe71   : > { %5818 = vmatprep.mubr.msk.f32.mxu0 %vm6300_vm2, %v6299_v14 }
 0xf43   : > { %v7028_v16 = vpop.f32.mrb[28].mxu0 }
 0xf44   : > { %v7030_v39 = vpop.f32.mrb[29].mxu0 }
 0xf45   : > { %3081 = vrot.lane.b32.xlu0 %v7030_v39, %s6295_s23  ;;  %v5815_v42 = vpop.f32.mrb[30].mxu0 }
 0xf46   : > { %v7034_v45 = vpop.f32.mrb[31].mxu0 }
 0xf47   : > { %3083 = vrot.lane.b32.xlu1 %v7034_v45, %s6295_s23 }
 0xf49   : > { %3087 = vrot.lane.b32.xlu0 %v7030_v39, %s6297_s30 }
 0xf4b   : > { %3085 = vrot.lane.b32.xlu1 %v7028_v16, %s6295_s23  ;;  %s7583_s23 = smov 64  }
 0xf4d   : > { %3089 = vrot.lane.b32.xlu0 %v7034_v45, %s6297_s30 }
 0xf4f   : > { %3093 = vrot.lane.b32.xlu1 %v7030_v39, %s6296_s18 }
 0xf51   : > { %3091 = vrot.lane.b32.xlu0 %v7028_v16, %s6297_s30 }
 0xf53   : > { %3095 = vrot.lane.b32.xlu1 %v7034_v45, %s6296_s18 }
 0xf55   : > { %3099 = vrot.lane.b32.xlu0 %v7030_v39, %s7582_s25 }
 0xf57   : > { %3097 = vrot.lane.b32.xlu1 %v7028_v16, %s6296_s18 }
 0xf59   : > { %3103 = vrot.lane.b32.xlu0 %v7028_v16, %s7582_s25 }
 0xf5b   : > { %3101 = vrot.lane.b32.xlu1 %v7034_v45, %s7582_s25 }
 0xfb7   : > { %v3082_v47 = vpop.permute.xlu0 %3081 }
 0xfb8   : > { %3105 = vrot.lane.b32.xlu1 %v3082_v47, %s7582_s25 }
 0xfb9   : > { %v3084_v48 = vpop.permute.xlu1 %3083 }
 0xfba   : > { %3107 = vrot.lane.b32.xlu0 %v3084_v48, %s7582_s25 }
 0xfbb   : > { %v7060_v40 = vpop.permute.xlu0 %3087 }
 0xfbd   : > { %v3086_v4 = vpop.permute.xlu1 %3085 }
 0xfbe   : > { %3111 = vrot.lane.b32.xlu0 %v7060_v40, %s7582_s25  ;;  %3109 = vrot.lane.b32.xlu1 %v3086_v4, %s7582_s25 }
 0xfbf   : > { %v7065_v6 = vpop.permute.xlu0 %3089 }
 0xfc1   : > { %v7067_v36 = vpop.permute.xlu1 %3093 }
 0xfc2   : > { %3117 = vrot.lane.b32.xlu1 %v7067_v36, %s7582_s25 }
 0xfc3   : > { %v7071_v11 = vpop.permute.xlu0 %3091 }
 0xfc4   : > { %3115 = vrot.lane.b32.xlu0 %v7071_v11, %s7582_s25 }
 0xfc5   : > { %v7075_v51 = vpop.permute.xlu1 %3095 }
 0xfc7   : > { %v3100_v63 = vpop.permute.xlu0 %3099 }
 0xfc8   : > { %3113 = vrot.lane.b32.xlu0 %v7065_v6, %s7582_s25 }
 0xfc9   : > { %v7079_v44 = vpop.permute.xlu1 %3097 }
 0xfca   : > { %3121 = vrot.lane.b32.xlu1 %v7079_v44, %s7582_s25 }
 0xfcb   : > { %v3104_v46 = vpop.permute.xlu0 %3103 }
 0xfcd   : > { %v3102_v53 = vpop.permute.xlu1 %3101 }
 0xfce   : > { %3119 = vrot.lane.b32.xlu1 %v7075_v51, %s7582_s25 }
 0xfe6   : > { %3135 = vxpose.xlu0.b32.start [1/3] (short) (narrow) %v3100_v63, 8 }
 0xfea   : > { %3136 = vxpose.xlu0.b32.cont [2/3] (short) (narrow) %v3102_v53, 8 }
 0xfee   : > { %3137 = vxpose.xlu0.b32.end [3/3] (short) (narrow) %v3104_v46, 8 }
0x102a   : > { %v3106_v50 = vpop.permute.xlu1 %3105 }
0x102b   : > { %3167 = vxpose.xlu1.b32.start [1/3] (short) (narrow) %v3106_v50, 8 }
0x102c   : > { %v3108_v52 = vpop.permute.xlu0 %3107 }
0x102f   : > { %3168 = vxpose.xlu1.b32.cont [2/3] (short) (narrow) %v3108_v52, 8 }
0x1030   : > { %v3112_v55 = vpop.permute.xlu0 %3111  ;;  %v3110_v56 = vpop.permute.xlu1 %3109 }
0x1031   : > { %3199 = vxpose.xlu0.b32.start [1/3] (short) (narrow) %v3112_v55, 8 }
0x1033   : > { %3169 = vxpose.xlu1.b32.end [3/3] (short) (narrow) %v3110_v56, 8 }
0x1034   : > { %v3118_v54 = vpop.permute.xlu1 %3117 }
0x1036   : > { %v3116_v58 = vpop.permute.xlu0 %3115 }
0x103a   : > { %v3114_v61 = vpop.permute.xlu0 %3113 }
0x103b   : > { %3200 = vxpose.xlu0.b32.cont [2/3] (short) (narrow) %v3114_v61, 8 }
0x103c   : > { %v3122_v35 = vpop.permute.xlu1 %3121 }
0x103f   : > { %3201 = vxpose.xlu0.b32.end [3/3] (short) (narrow) %v3116_v58, 8 }
0x1040   : > { %v3120_v15 = vpop.permute.xlu1 %3119 }
0x1043   : > { %3231 = vxpose.xlu0.b32.start [1/3] (short) (narrow) %v3118_v54, 8 }
0x1047   : > { %3232 = vxpose.xlu0.b32.cont [2/3] (short) (narrow) %v3120_v15, 8 }
0x104b   : > { %3233 = vxpose.xlu0.b32.end [3/3] (short) (narrow) %v3122_v35, 8 }
0x1051   : > { %3763 = vrot.lane.b32.xlu1 %v7030_v39, %s7583_s23 }
0x1055   : > { %3765 = vrot.lane.b32.xlu1 %v7034_v45, %s7583_s23 }
0x1059   : > { %3771 = vrot.lane.b32.xlu1 %v3084_v48, %s7583_s23 }
0x105d   : > { %3773 = vrot.lane.b32.xlu1 %v3086_v4, %s7583_s23 }
0x1066   : > { %v3151_v12 = vpop.trf.xlu0 }
0x1067   : > { %5817 = vmatpush3.msra.mxu0 %v3151_v12 }
0x1068   : > { %5819 = vmatmul.mubr.msk.f32.vlgmr.msra.gmra.mrb[32].mxu0 %vm991_vm3, %v7030_v39  ;;  %5827 = vmatprep.subr.mxu0 %v6299_v14 }
0x1069   : > { %5821 = vmatprep.mubr.msk.f32.mxu0 %vm6300_vm2, %v6299_v14 }
0x106c   : > { %5822 = vmatmul.mubr.msk.f32.gmra.mrb[34].mxu0 %vm991_vm3, %v7034_v45 }
0x106d   : > { %5824 = vmatprep.mubr.msk.f32.mxu0 %vm6300_vm2, %v6299_v14 }
0x1070   : > { %5825 = vmatmul.mubr.msk.f32.gmra.mrb[36].mxu0 %vm991_vm3, %v7028_v16 }
0x1071   : > { %5829 = vmatprep.mubr.msk.f32.mxu0 %vm6300_vm2, %v6299_v14 }
0x1074   : > { %3769 = vrot.lane.b32.xlu0 %v3082_v47, %s7583_s23 }
0x1078   : > { %3767 = vrot.lane.b32.xlu0 %v7028_v16, %s7583_s23 }
0x10ab   : > { %v3183_v2 = vpop.trf.xlu1 }
0x10ac   : > { %5828 = vmatpush3.msra.mxu0 %v3183_v2 }
0x10ad   : > { %5830 = vmatmul.mubr.msk.f32.vlgmr.msra.gmra.mrb[38].mxu0 %vm991_vm3, %v3082_v47  ;;  %5849 = vmatprep.subr.mxu0 %v6299_v14 }
0x10ae   : > { %5832 = vmatprep.mubr.msk.f32.mxu0 %vm6300_vm2, %v6299_v14 }
0x10b1   : > { %5833 = vmatmul.mubr.msk.f32.gmra.mrb[40].mxu0 %vm991_vm3, %v3084_v48 }
0x10b2   : > { %5835 = vmatprep.mubr.msk.f32.mxu0 %vm6300_vm2, %v6299_v14 }
0x10b5   : > { %5836 = vmatmul.mubr.msk.f32.gmra.mrb[42].mxu0 %vm991_vm3, %v3086_v4 }
0x10b6   : > { %5851 = vmatprep.mubr.msk.f32.mxu0 %vm6300_vm2, %v6299_v14 }
0x10b7   : > { %v3215_v3 = vpop.trf.xlu0 }
0x10b8   : > { %5839 = vmatpush3.msra.mxu1 %v3215_v3 }
0x10b9   : > { %5841 = vmatmul.mubr.msk.f32.vlgmr.msra.gmra.mrb[24].mxu1 %vm991_vm3, %v7060_v40  ;;  %5959 = vmatprep.subr.bf16.mxu1 %v6303_v25 }
0x10ba   : > { %5843 = vmatprep.mubr.msk.f32.mxu1 %vm6300_vm2, %v6299_v14 }
0x10bd   : > { %5844 = vmatmul.mubr.msk.f32.gmra.mrb[26].mxu1 %vm991_vm3, %v7065_v6 }
0x10be   : > { %5846 = vmatprep.mubr.msk.f32.mxu1 %vm6300_vm2, %v6299_v14 }
0x10c1   : > { %5847 = vmatmul.mubr.msk.f32.gmra.mrb[28].mxu1 %vm991_vm3, %v7071_v11 }
0x10c2   : > { %5866 = vmatprep.mubr.msk.f32.mxu1 %vm6300_vm2, %v6299_v14 }
0x10c3   : > { %v3247_v19 = vpop.trf.xlu0 }
0x10c4   : > { %5850 = vmatpush3.msra.mxu0 %v3247_v19 }
0x10c5   : > { %5852 = vmatmul.mubr.msk.f32.vlgmr.msra.gmra.mrb[44].mxu0 %vm991_vm3, %v7067_v36  ;;  %5963 = vmatprep.subr.bf16.mxu0 %v6303_v25 }
0x10c6   : > { %5854 = vmatprep.mubr.msk.f32.mxu0 %vm6300_vm2, %v6299_v14 }
0x10c9   : > { %5855 = vmatmul.mubr.msk.f32.gmra.mrb[46].mxu0 %vm991_vm3, %v7075_v51 }
0x10ca   : > { %5857 = vmatprep.mubr.msk.f32.mxu0 %vm6300_vm2, %v6299_v14 }
0x10cd   : > { %5858 = vmatmul.mubr.msk.f32.gmra.mrb[48].mxu0 %vm991_vm3, %v7079_v44 }
0x10ce   : > { %5875 = vmatprep.mubr.msk.f32.mxu0 %vm6300_vm2, %v6299_v14 }
0x113b   : > { %v3335_v7 = vpop.f32.mrb[32].mxu0 }
0x113c   : > { %v3607_v1 = vmul.f32 0.35355338, %v3335_v7  ;;  %v5820_v49 = vpop.f32.mrb[33].mxu0 }
0x113e   : > { %v7144_v17 = vadd.f32 %v3607_v1, %v6644_v41 }
0x113f   : > { %v3340_v18 = vpop.f32.mrb[34].mxu0 }
0x1140   : > { %v3608_v20 = vmul.f32 0.35355338, %v3340_v18  ;;  %v5823_v13 = vpop.f32.mrb[35].mxu0  ;;  %v3631_v21 = vsel %vm1360_vm5, %v7144_v17, -inf }
0x1141   : > { %3632 = vmax.xlane.f32.xlu1 %v3631_v21  ;;  %v3764_v13 = vpop.permute.xlu1 %3763 }
0x1142   : > { %v7149_v57 = vadd.f32 %v3608_v20, %v6644_v41 }
0x1143   : > { %v3345_v62 = vpop.f32.mrb[36].mxu0 }
0x1144   : > { %v3609_v23 = vmul.f32 0.35355338, %v3345_v62  ;;  %v5826_v24 = vpop.f32.mrb[37].mxu0  ;;  %v3634_v59 = vsel %vm1360_vm5, %v7149_v57, -inf }
0x1145   : > { %3635 = vmax.xlane.f32.xlu0 %v3634_v59  ;;  %v3766_v21 = vpop.permute.xlu1 %3765 }
0x1146   : > { %v7154_v60 = vadd.f32 %v3609_v23, %v6644_v41  ;;  %v7197_v23 = vpop.permute.xlu0 %3769 }
0x1148   : > { %v3637_v26 = vsel %vm1360_vm5, %v7154_v60, -inf }
0x1149   : > { %3638 = vmax.xlane.f32.xlu1 %v3637_v26  ;;  %v7195_v62 = vpop.permute.xlu1 %3771 }
0x114d   : > { %v7199_v24 = vpop.permute.xlu1 %3773 }
0x1180   : > { %v3421_v0 = vpop.f32.mrb[38].mxu0 }
0x1181   : > { %v3610_v9 = vmul.f32 0.35355338, %v3421_v0  ;;  %v5831_v29 = vpop.f32.mrb[39].mxu0 }
0x1183   : > { %v7159_v30 = vadd.f32 %v3610_v9, %v6644_v41 }
0x1184   : > { %v3426_v28 = vpop.f32.mrb[40].mxu0 }
0x1185   : > { %v5834_v37 = vpop.f32.mrb[41].mxu0  ;;  %v3640_v31 = vsel %vm1360_vm5, %v7159_v30, -inf  ;;  %v3611_v34 = vmul.f32 0.35355338, %v3426_v28 }
0x1186   : > { %3641 = vmax.xlane.f32.xlu1 %v3640_v31 }
0x1187   : > { %v7167_v47 = vadd.f32 %v3611_v34, %v6644_v41 }
0x1188   : > { %v3431_v32 = vpop.f32.mrb[42].mxu0 }
0x1189   : > { %v5837_v5 = vpop.f32.mrb[43].mxu0  ;;  %v3612_v48 = vmul.f32 0.35355338, %v3431_v32  ;;  %v3643_v61 = vsel %vm1360_vm5, %v7167_v47, -inf }
0x118b   : > { %v3624_v52 = vadd.f32 %v3612_v48, %v6644_v41 }
0x118c   : > { %v3507_v38 = vpop.f32.mrb[24].mxu1 }
0x118d   : > { %v3613_v16 = vmul.f32 0.35355338, %v3507_v38  ;;  %v5842_v39 = vpop.f32.mrb[25].mxu1  ;;  %v3646_v2 = vsel %vm1360_vm5, %v3624_v52, -inf }
0x118f   : > { %v7164_v42 = vadd.f32 %v3613_v16, %v6644_v41 }
0x1190   : > { %v3512_v45 = vpop.f32.mrb[26].mxu1 }
0x1191   : > { %v3614_v4 = vmul.f32 0.35355338, %v3512_v45  ;;  %v5845_v63 = vpop.f32.mrb[27].mxu1  ;;  %v3649_v53 = vsel %vm1360_vm5, %v7164_v42, -inf }
0x1192   : > { %3650 = vmax.xlane.f32.xlu1 %v3649_v53 }
0x1193   : > { %v7172_v46 = vadd.f32 %v3614_v4, %v6644_v41 }
0x1194   : > { %v3517_v50 = vpop.f32.mrb[28].mxu1 }
0x1195   : > { %v3615_v55 = vmul.f32 0.35355338, %v3517_v50  ;;  %v5848_v56 = vpop.f32.mrb[29].mxu1  ;;  %v3652_v58 = vsel %vm1360_vm5, %v7172_v46, -inf }
0x1196   : > { %3653 = vmax.xlane.f32.xlu0 %v3652_v58  ;;  %3644 = vmax.xlane.f32.xlu1 %v3643_v61 }
0x1197   : > { %v7180_v35 = vadd.f32 %v3615_v55, %v6644_v41 }
0x1198   : > { %v3593_v54 = vpop.f32.mrb[44].mxu0 }
0x1199   : > { %v3616_v15 = vmul.f32 0.35355338, %v3593_v54  ;;  %v5853_v12 = vpop.f32.mrb[45].mxu0  ;;  %v3655_v1 = vsel %vm1360_vm5, %v7180_v35, -inf }
0x119a   : > { %3647 = vmax.xlane.f32.xlu1 %v3646_v2 }
0x119b   : > { %v3628_v19 = vadd.f32 %v3616_v15, %v6644_v41 }
0x119c   : > { %v3598_v3 = vpop.f32.mrb[46].mxu0 }
0x119d   : > { %v5856_v7 = vpop.f32.mrb[47].mxu0  ;;  %v3658_v20 = vsel %vm1360_vm5, %v3628_v19, -inf  ;;  %v3617_v0 = vmul.f32 0.35355338, %v3598_v3 }
0x119e   : > { %3656 = vmax.xlane.f32.xlu1 %v3655_v1 }
0x119f   : > { %v7207_v9 = vadd.f32 %v3617_v0, %v6644_v41 }
0x11a0   : > { %v3603_v49 = vpop.f32.mrb[48].mxu0 }
0x11a1   : > { %v5859_v18 = vpop.f32.mrb[49].mxu0  ;;  %v3661_v29 = vsel %vm1360_vm5, %v7207_v9, -inf  ;;  %v3618_v16 = vmul.f32 0.35355338, %v3603_v49 }
0x11a2   : > { %3659 = vmax.xlane.f32.xlu1 %v3658_v20 }
0x11a3   : > { %v7219_v45 = vadd.f32 %v3618_v16, %v6644_v41 }
0x11b3   : > { %3775 = vrot.lane.b32.xlu1 %v7060_v40, %s7583_s23  ;;  %v3768_v40 = vpop.permute.xlu0 %3767 }
0x11b7   : > { %3777 = vrot.lane.b32.xlu1 %v7065_v6, %s7583_s23 }
0x11bb   : > { %3783 = vrot.lane.b32.xlu1 %v7075_v51, %s7583_s23 }
0x11bf   : > { %3785 = vrot.lane.b32.xlu1 %v7079_v44, %s7583_s23 }
0x11c3   : > { %3799 = vxpose.xlu0.b32.start [1/3] (short) (narrow) %v3764_v13, 8 }
0x11c7   : > { %3800 = vxpose.xlu0.b32.cont [2/3] (short) (narrow) %v3766_v21, 8 }
0x11cb   : > { %3801 = vxpose.xlu0.b32.end [3/3] (short) (narrow) %v3768_v40, 8 }
0x11ce   : > { %v3633_v59 = vpop.xlane.xlu1 %3632 }
0x11cf   : > { %v3667_v6 = vsub.f32 %v7144_v17, %v3633_v59 }
0x11d1   : > { %v3679_v26 = vmul.f32 1.442695, %v3667_v6 }
0x11d2   : > { %v3636_v58 = vpop.xlane.xlu0 %3635 }
0x11d3   : > { %6169 = vpow2.f32 %v3679_v26  ;;  %v3668_v61 = vsub.f32 %v7149_v57, %v3636_v58 }
0x11d5   : > { %v3681_v54 = vmul.f32 1.442695, %v3668_v61 }
0x11d6   : > { %v3639_v17 = vpop.xlane.xlu1 %3638 }
0x11d7   : > { %v3669_v15 = vsub.f32 %v7154_v60, %v3639_v17 }
0x11d9   : > { %v3683_v12 = vmul.f32 1.442695, %v3669_v15 }
0x11dd   : > { %v7202_v51 = vpop.eup %6169 }
0x11de   : > { %v3703_v44 = vsel %vm1360_vm5, %v7202_v51, 0.0 }
0x11e3   : > { %3704 = vadd.xlane.f32.xlu1 %v3703_v44 }
0x11f8   : > { %3662 = vmax.xlane.f32.xlu0 %v3661_v29 }
0x120e   : > { %3781 = vrot.lane.b32.xlu0 %v7067_v36, %s7583_s23 }
0x1213   : > { %v3642_v28 = vpop.xlane.xlu1 %3641 }
0x1214   : > { %v3670_v37 = vsub.f32 %v7159_v30, %v3642_v28  ;;  %v3664_v30 = vsel %vm1360_vm5, %v7219_v45, -inf }
0x1216   : > { %v3685_v31 = vmul.f32 1.442695, %v3670_v37 }
0x1218   : > { %6171 = vpow2.f32 %v3685_v31 }
0x121f   : > { %v3651_v32 = vpop.xlane.xlu1 %3650 }
0x1220   : > { %v3673_v2 = vsub.f32 %v7164_v42, %v3651_v32 }
0x1222   : > { %v7214_v5 = vpop.eup %6171  ;;  %v3691_v3 = vmul.f32 1.442695, %v3673_v2 }
0x1223   : > { %v3645_v38 = vpop.xlane.xlu1 %3644  ;;  %v3712_v34 = vsel %vm1360_vm5, %v7214_v5, 0.0  ;;  %v3654_v7 = vpop.xlane.xlu0 %3653 }
0x1224   : > { %3713 = vadd.xlane.f32.xlu1 %v3712_v34  ;;  %v3674_v1 = vsub.f32 %v7172_v46, %v3654_v7 }
0x1226   : > { %v3693_v18 = vmul.f32 1.442695, %v3674_v1 }
0x1227   : > { %v3648_v39 = vpop.xlane.xlu1 %3647 }
0x1228   : > { %v3672_v36 = vsub.f32 %v3624_v52, %v3648_v39 }
0x122a   : > { %v3689_v48 = vmul.f32 1.442695, %v3672_v36 }
0x122b   : > { %v3657_v4 = vpop.xlane.xlu1 %3656 }
0x122c   : > { %6173 = vpow2.f32 %v3689_v48  ;;  %v3675_v57 = vsub.f32 %v7180_v35, %v3657_v4 }
0x122d   : > { %3665 = vmax.xlane.f32.xlu0 %v3664_v30 }
0x122e   : > { %v3695_v42 = vmul.f32 1.442695, %v3675_v57 }
0x122f   : > { %v3660_v63 = vpop.xlane.xlu1 %3659 }
0x1230   : > { %v3676_v53 = vsub.f32 %v3628_v19, %v3660_v63  ;;  %v3671_v19 = vsub.f32 %v7167_v47, %v3645_v38 }
0x1232   : > { %v3697_v50 = vmul.f32 1.442695, %v3676_v53  ;;  %v3687_v49 = vmul.f32 1.442695, %v3671_v19 }
0x1233   : > { %v3776_v16 = vpop.permute.xlu1 %3775 }
0x1234   : > { %6175 = vpow2.f32 %v3697_v50 }
0x1235   : > { %6177 = vpow2.f32 %v3681_v54 }
0x1236   : > { %v7223_v55 = vpop.eup %6173  ;;  %6179 = vpow2.f32 %v3683_v12 }
0x1237   : > { %v3718_v56 = vsel %vm1360_vm5, %v7223_v55, 0.0  ;;  %6181 = vpow2.f32 %v3691_v3  ;;  %v3778_v39 = vpop.permute.xlu1 %3777 }
0x1238   : > { %3719 = vadd.xlane.f32.xlu1 %v3718_v56  ;;  %6183 = vpow2.f32 %v3687_v49 }
0x1239   : > { %6185 = vpow2.f32 %v3693_v18 }
0x123a   : > { %6187 = vpow2.f32 %v3695_v42 }
0x123b   : > { %v3784_v4 = vpop.permute.xlu1 %3783 }
0x123e   : > { %v7227_v41 = vpop.eup %6175 }
0x123f   : > { %v3730_v52 = vsel %vm1360_vm5, %v7227_v41, 0.0  ;;  %v3786_v30 = vpop.permute.xlu1 %3785 }
0x1240   : > { %3731 = vadd.xlane.f32.xlu1 %v3730_v52 }
0x1243   : > { %3779 = vrot.lane.b32.xlu0 %v7071_v11, %s7583_s23  ;;  %v7238_v11 = vpop.eup %6177  ;;  %v7263_v44 = vpop.trf.xlu0 }
0x1244   : > { %v3706_v60 = vsel %vm1360_vm5, %v7238_v11, 0.0  ;;  %v7243_v20 = vpop.eup %6179 }
0x1245   : > { %v3709_v47 = vsel %vm1360_vm5, %v7243_v20, 0.0  ;;  %v7247_v13 = vpop.eup %6181 }
0x1246   : > { %v3721_v46 = vsel %vm1360_vm5, %v7247_v13, 0.0  ;;  %v7251_v21 = vpop.eup %6183 }
0x1247   : > { %v3715_v35 = vsel %vm1360_vm5, %v7251_v21, 0.0  ;;  %v7255_v40 = vpop.eup %6185 }
0x1248   : > { %v3724_v59 = vsel %vm1360_vm5, %v7255_v40, 0.0  ;;  %v7259_v6 = vpop.eup %6187 }
0x1249   : > { %v3727_v26 = vsel %vm1360_vm5, %v7259_v6, 0.0 }
0x1262   : > { %3707 = vadd.xlane.f32.xlu0 %v3706_v60 }
0x1266   : > { %3710 = vadd.xlane.f32.xlu0 %v3709_v47 }
0x126a   : > { %3722 = vadd.xlane.f32.xlu0 %v3721_v46 }
0x126e   : > { %3716 = vadd.xlane.f32.xlu0 %v3715_v35 }
0x1272   : > { %3725 = vadd.xlane.f32.xlu0 %v3724_v59 }
0x1276   : > { %3728 = vadd.xlane.f32.xlu0 %v3727_v26 }
0x1285   : > { %v3663_v0 = vpop.xlane.xlu0 %3662 }
0x1286   : > { %v3677_v29 = vsub.f32 %v7207_v9, %v3663_v0 }
0x1288   : > { %v3699_v17 = vmul.f32 1.442695, %v3677_v29 }
0x1289   : > { %v3782_v31 = vpop.permute.xlu0 %3781 }
0x128a   : > { %6189 = vpow2.f32 %v3699_v17 }
0x1294   : > { %v7266_v28 = vpop.eup %6189 }
0x1295   : > { %v3733_v37 = vsel %vm1360_vm5, %v7266_v28, 0.0 }
0x1296   : > { %3734 = vadd.xlane.f32.xlu0 %v3733_v37 }
0x12ba   : > { %v3666_v32 = vpop.xlane.xlu0 %3665 }
0x12bb   : > { %v3678_v38 = vsub.f32 %v7219_v45, %v3666_v32  ;;  %v3705_v45 = vpop.xlane.xlu1 %3704 }
0x12bd   : > { %v3701_v34 = vmul.f32 1.442695, %v3678_v38 }
0x12be   : > { %v3780_v9 = vpop.permute.xlu0 %3779 }
0x12bf   : > { %6191 = vpow2.f32 %v3701_v34  ;;  %v3714_v50 = vpop.xlane.xlu1 %3713 }
0x12c0   : > { %6193 = vrcp.f32 %v3705_v45 }
0x12c3   : > { %3863 = vxpose.xlu0.b32.start [1/3] (short) (narrow) %v3776_v16, 8 }
0x12c5   : > { %v3720_v3 = vpop.xlane.xlu1 %3719 }
0x12c7   : > { %3864 = vxpose.xlu0.b32.cont [2/3] (short) (narrow) %v3778_v39, 8 }
0x12c9   : > { %v7271_v36 = vpop.eup %6191 }
0x12ca   : > { %v3736_v48 = vsel %vm1360_vm5, %v7271_v36, 0.0  ;;  %v6194_v52 = vpop.eup %6193 }
0x12cb   : > { %3737 = vadd.xlane.f32.xlu1 %v3736_v48  ;;  %3865 = vxpose.xlu0.b32.end [3/3] (short) (narrow) %v3780_v9, 8  ;;  %v3751_v61 = vmul.f32 %v6194_v52, %v7202_v51 }
0x12cd   : > { %v3732_v35 = vpop.xlane.xlu1 %3731 }
0x12cf   : > { %3895 = vxpose.xlu0.b32.start [1/3] (short) (narrow) %v3782_v31, 8 }
0x12d3   : > { %3896 = vxpose.xlu0.b32.cont [2/3] (short) (narrow) %v3784_v4, 8 }
0x12d7   : > { %3897 = vxpose.xlu0.b32.end [3/3] (short) (narrow) %v3786_v30, 8 }
0x12ef   : > { %v3708_v63 = vpop.xlane.xlu0 %3707 }
0x12f0   : > { %6195 = vrcp.f32 %v3708_v63 }
0x12f3   : > { %v3711_v53 = vpop.xlane.xlu0 %3710 }
0x12f4   : > { %6197 = vrcp.f32 %v3711_v53 }
0x12f5   : > { %6199 = vrcp.f32 %v3714_v50 }
0x12f7   : > { %v3723_v56 = vpop.xlane.xlu0 %3722 }
0x12fa   : > { %v6196_v58 = vpop.eup %6195 }
0x12fb   : > { %v3752_v54 = vmul.f32 %v6196_v58, %v7238_v11  ;;  %v3717_v15 = vpop.xlane.xlu0 %3716 }
0x12fc   : > { %6201 = vrcp.f32 %v3717_v15 }
0x12fd   : > { %v5960_v12 = vpack.c.bf16 %v3752_v54, %v3751_v61  ;;  %6203 = vrcp.f32 %v3723_v56 }
0x12fe   : > { %3831 = vxpose.xlu1.b32.start [1/3] (short) (narrow) %v7197_v23, 8  ;;  %v6198_v19 = vpop.eup %6197 }
0x12ff   : > { %v3726_v2 = vpop.xlane.xlu0 %3725  ;;  %5962 = vmatpush3.bf16.xpose.msk.msra.mxu1 %vm6791_vm6, %v5960_v12  ;;  %v6200_v51 = vpop.eup %6199  ;;  %v3753_v7 = vmul.f32 %v6198_v19, %v7243_v20 }
0x1300   : > { %6205 = vrcp.f32 %v3726_v2  ;;  %5864 = vmatprep.subr.mxu1 %v6299_v14  ;;  %v3754_v23 = vmul.f32 %v6200_v51, %v7214_v5 }
0x1301   : > { %6207 = vrcp.f32 %v3720_v3 }
0x1302   : > { %3832 = vxpose.xlu1.b32.cont [2/3] (short) (narrow) %v7195_v62, 8 }
0x1303   : > { %v3729_v1 = vpop.xlane.xlu0 %3728 }
0x1304   : > { %6209 = vrcp.f32 %v3729_v1 }
0x1306   : > { %v6202_v49 = vpop.eup %6201  ;;  %3833 = vxpose.xlu1.b32.end [3/3] (short) (narrow) %v7199_v24, 8 }
0x1307   : > { %v3755_v11 = vmul.f32 %v6202_v49, %v7251_v21  ;;  %5865 = vmatpush3.xpose.msk.msra.mxu1 %vm1360_vm5, %v3753_v7  ;;  %v6204_v18 = vpop.eup %6203 }
0x1308   : > { %5967 = vmatprep.subr.bf16.mxu1 %v6303_v25  ;;  %v3757_v60 = vmul.f32 %v6204_v18, %v7247_v13 }
0x1309   : > { %v5964_v57 = vpack.c.bf16 %v3755_v11, %v3754_v23 }
0x130a   : > { %v6206_v62 = vpop.eup %6205  ;;  %5867 = vmatmul.mubr.msk.f32.vlgmr.msra.gmra.mrb[30].mxu1 %vm1360_vm5, %v7263_v44 }
0x130b   : > { %v3758_v20 = vmul.f32 %v6206_v62, %v7255_v40  ;;  %5966 = vmatpush3.bf16.xpose.msk.msra.mxu0 %vm6791_vm6, %v5964_v57  ;;  %5884 = vmatprep.mubr.msk.f32.mxu1 %vm6300_vm2, %v6299_v14  ;;  %v6208_v5 = vpop.eup %6207 }
0x130c   : > { %5873 = vmatprep.subr.mxu0 %v6299_v14  ;;  %v3756_v42 = vmul.f32 %v6208_v5, %v7223_v55 }
0x130d   : > { %v5968_v24 = vpack.c.bf16 %v3758_v20, %v3757_v60 }
0x130e   : > { %v6210_v47 = vpop.eup %6209 }
0x130f   : > { %5970 = vmatpush3.bf16.xpose.msk.msra.mxu1 %vm6791_vm6, %v5968_v24  ;;  %v3759_v13 = vmul.f32 %v6210_v47, %v7259_v6 }
0x1310   : > { %5882 = vmatprep.subr.mxu1 %v6299_v14 }
0x1313   : > { %5874 = vmatpush3.xpose.msk.msra.mxu0 %vm1360_vm5, %v3756_v42 }
0x1314   : > { %5971 = vmatprep.subr.bf16.mxu0 %v6303_v25 }
0x1317   : > { %5883 = vmatpush3.xpose.msk.msra.mxu1 %vm1360_vm5, %v3759_v13 }
0x1323   : > { %v3735_v46 = vpop.xlane.xlu0 %3734 }
0x1324   : > { %6211 = vrcp.f32 %v3735_v46 }
0x1325   : > { %6213 = vrcp.f32 %v3732_v35 }
0x132e   : > { %v6212_v59 = vpop.eup %6211 }
0x132f   : > { %v6214_v26 = vpop.eup %6213  ;;  %v3761_v55 = vmul.f32 %v6212_v59, %v7266_v28 }
0x1330   : > { %v3760_v44 = vmul.f32 %v6214_v26, %v7227_v41 }
0x1332   : > { %v5972_v29 = vpack.c.bf16 %v3761_v55, %v3760_v44 }
0x1343   : > { %v3879_v21 = vpop.trf.xlu0 }
0x1344   : > { %5885 = vmatmul.mubr.msk.f32.vlgmr.msra.gmra.mrb[32].mxu1 %vm1360_vm5, %v3879_v21 }
0x134f   : > { %v3911_v28 = vpop.trf.xlu0 }
0x1358   : > { %v3738_v40 = vpop.xlane.xlu1 %3737 }
0x1359   : > { %6215 = vrcp.f32 %v3738_v40 }
0x1363   : > { %v6216_v6 = vpop.eup %6215 }
0x1364   : > { %v3762_v17 = vmul.f32 %v6216_v6, %v7271_v36 }
0x137e   : > { %v3847_v0 = vpop.trf.xlu1 }
0x137f   : > { %5876 = vmatmul.mubr.msk.f32.vlgmr.msra.gmra.mrb[50].mxu0 %vm1360_vm5, %v3847_v0 }
0x1380   : > { %5974 = vmatpush3.bf16.xpose.msk.msra.mxu0 %vm6791_vm6, %v5972_v29  ;;  %5893 = vmatprep.mubr.msk.f32.mxu0 %vm6300_vm2, %v6299_v14 }
0x1381   : > { %5891 = vmatprep.subr.mxu0 %v6299_v14 }
0x1388   : > { %5892 = vmatpush3.xpose.msk.msra.mxu0 %vm1360_vm5, %v3762_v17 }
0x138b   : > { %5894 = vmatmul.mubr.msk.f32.vlgmr.msra.gmra.mrb[52].mxu0 %vm1360_vm5, %v3911_v28 }
0x13dd   : > { %v4005_v41 = vpop.f32.mrb[30].mxu1 }
0x13de   : > { %4255 = vxpose.xlu1.b32.start.end [1/1] (short) (narrow) %v4005_v41, 24  ;;  %v5868_v37 = vpop.f32.mrb[31].mxu1 }
0x1417   : > { %v4169_v31 = vpop.f32.mrb[32].mxu1 }
0x1418   : > { %4319 = vxpose.xlu0.b32.start.end [1/1] (short) (narrow) %v4169_v31, 24  ;;  %v5886_v8 = vpop.f32.mrb[33].mxu1 }
0x1452   : > { %v4087_v32 = vpop.f32.mrb[50].mxu0 }
0x1453   : > { %4287 = vxpose.xlu1.b32.start.end [1/1] (short) (narrow) %v4087_v32, 24  ;;  %v5877_v38 = vpop.f32.mrb[51].mxu0 }
0x145e   : > { %v4251_v34 = vpop.f32.mrb[52].mxu0  ;;  %v4271_v39 = vpop.trf.xlu1 }
0x145f   : > { %4351 = vxpose.xlu1.b32.start.end [1/1] (short) (narrow) %v4251_v34, 24  ;;  %v5895_v16 = vpop.f32.mrb[53].mxu0 }
0x1462   : > { %v4272_v9 = vpop.trf.xlu1 }
0x1466   : > { %v4273_v36 = vpop.trf.xlu1 }
0x1498   : > { %v4335_v4 = vpop.trf.xlu0 }
0x1499   : > { %v4383_v53 = vcombine.low %v4271_v39, %v4335_v4  ;;  %v4384_v50 = vcombine.high %v4271_v39, %v4335_v4 }
0x149b   : > { %v4391_v12 = vrot.slane %v4383_v53, %v6833_v22  ;;  %v4398_v2 = vrot.slane %v4384_v50, %v6833_v22 }
0x149c   : > { %v4336_v45 = vpop.trf.xlu0 }
0x149d   : > { %v4451_v54 = vcombine.low %v4272_v9, %v4336_v45  ;;  %v4452_v15 = vcombine.high %v4272_v9, %v4336_v45 }
0x149f   : > { %v4459_v57 = vrot.slane %v4451_v54, %v6833_v22  ;;  %v4466_v62 = vrot.slane %v4452_v15, %v6833_v22 }
0x14a0   : > { %v4337_v52 = vpop.trf.xlu0 }
0x14a1   : > { %v4519_v51 = vcombine.low %v4273_v36, %v4337_v52  ;;  %v4520_v7 = vcombine.high %v4273_v36, %v4337_v52 }
0x14a3   : > { %v4527_v13 = vrot.slane %v4519_v51, %v6833_v22  ;;  %v4534_v46 = vrot.slane %v4520_v7, %v6833_v22 }
0x14d3   : > { %v4303_v48 = vpop.trf.xlu1 }
0x14d7   : > { %v4304_v30 = vpop.trf.xlu1 }
0x14db   : > { %v4305_v63 = vpop.trf.xlu1 }
0x14df   : > { %v4367_v56 = vpop.trf.xlu1 }
0x14e0   : > { %v4399_v58 = vcombine.low %v4303_v48, %v4367_v56  ;;  %v4400_v61 = vcombine.high %v4303_v48, %v4367_v56 }
0x14e2   : > { %v4407_v3 = vrot.slane %v4399_v58, %v6833_v22  ;;  %v4414_v19 = vrot.slane %v4400_v61, %v6833_v22 }
0x14e3   : > { %v4368_v1 = vpop.trf.xlu1 }
0x14e4   : > { %v4415_v49 = vcombine.low %v4391_v12, %v4407_v3  ;;  %v4416_v23 = vcombine.high %v4391_v12, %v4407_v3  ;;  %v4431_v11 = vcombine.low %v4398_v2, %v4414_v19  ;;  %v4432_v18 = vcombine.high %v4398_v2, %v4414_v19 }
0x14e5   : > { %v4467_v60 = vcombine.low %v4304_v30, %v4368_v1  ;;  %v4468_v20 = vcombine.high %v4304_v30, %v4368_v1 }
0x14e6   : > { %v4423_v24 = vrot.slane %v4415_v49, %v6835_v27  ;;  %v4430_v5 = vrot.slane %v4416_v23, %v6835_v27  ;;  %v4439_v42 = vrot.slane %v4431_v11, %v6835_v27  ;;  %v4446_v47 = vrot.slane %v4432_v18, %v6835_v27 }
0x14e7   : > { %v4475_v21 = vrot.slane %v4467_v60, %v6833_v22  ;;  %v4482_v35 = vrot.slane %v4468_v20, %v6833_v22  ;;  %v4369_v17 = vpop.trf.xlu1 }
0x14e8   : > { %v4587_v40 = vcombine.low %v4423_v24, %v4430_v5  ;;  %v5493_v59 = vcombine.high %v4423_v24, %v4430_v5  ;;  %v4603_v26 = vcombine.low %v4439_v42, %v4446_v47  ;;  %v5494_v55 = vcombine.high %v4439_v42, %v4446_v47 }
0x14e9   : > { %v4483_v44 = vcombine.low %v4459_v57, %v4475_v21  ;;  %v4484_v0 = vcombine.high %v4459_v57, %v4475_v21  ;;  %v4499_v29 = vcombine.low %v4466_v62, %v4482_v35  ;;  %v4500_v6 = vcombine.high %v4466_v62, %v4482_v35 }
0x14ea   : > { %v4594_v28 = vrot.slane %v4587_v40, %v6833_v22  ;;  %v4602_v41 = vrot.slane %v5493_v59, %v6833_v22  ;;  %v4610_v37 = vrot.slane %v4603_v26, %v6833_v22  ;;  %v4618_v31 = vrot.slane %v5494_v55, %v6833_v22 }
0x14eb   : > { %v4491_v8 = vrot.slane %v4483_v44, %v6835_v27  ;;  %v4498_v32 = vrot.slane %v4484_v0, %v6835_v27  ;;  %v4507_v38 = vrot.slane %v4499_v29, %v6835_v27  ;;  %v4514_v34 = vrot.slane %v4500_v6, %v6835_v27  ;;  %v6085_v6 = vld [vmem:[%s7532_s6 + $0x10] sm:$0xff]  }
0x14ec   : > { %v4535_v16 = vcombine.low %v4305_v63, %v4369_v17  ;;  %v4536_v39 = vcombine.high %v4305_v63, %v4369_v17  ;;  %v4620_v9 = vcombine.high %v4594_v28, %v4602_v41  ;;  %v4636_v36 = vcombine.high %v4610_v37, %v4618_v31  ;;  %5896 = vmatprep.subr.bf16.mxu1 %v6085_v6 }
0x14ed   : > { %v4655_v48 = vcombine.low %v4491_v8, %v4498_v32  ;;  %v5495_v4 = vcombine.high %v4491_v8, %v4498_v32  ;;  %v4671_v30 = vcombine.low %v4507_v38, %v4514_v34  ;;  %v5496_v45 = vcombine.high %v4507_v38, %v4514_v34  ;;  %5897 = vmatpush3.bf16.msra.mxu1 %v6085_v6 }
0x14ee   : > { %v4543_v53 = vrot.slane %v4535_v16, %v6833_v22  ;;  %v4550_v50 = vrot.slane %v4536_v39, %v6833_v22  ;;  %v7342_v56 = vrot.slane %v4620_v9, %v6835_v27  ;;  %v4650_v52 = vrot.slane %v4636_v36, %v6835_v27 }
0x14ef   : > { %v4662_v58 = vrot.slane %v4655_v48, %v6833_v22  ;;  %v4670_v61 = vrot.slane %v5495_v4, %v6833_v22  ;;  %v4678_v63 = vrot.slane %v4671_v30, %v6833_v22  ;;  %v4686_v54 = vrot.slane %v5496_v45, %v6833_v22 }
0x14f0   : > { %v4551_v15 = vcombine.low %v4527_v13, %v4543_v53  ;;  %v4552_v12 = vcombine.high %v4527_v13, %v4543_v53  ;;  %v4567_v2 = vcombine.low %v4534_v46, %v4550_v50  ;;  %v4568_v3 = vcombine.high %v4534_v46, %v4550_v50 }
0x14f1   : > { %v4653_v19 = vcombine.low %v7342_v56, %v4650_v52  ;;  %v4688_v51 = vcombine.high %v4662_v58, %v4670_v61  ;;  %v4704_v7 = vcombine.high %v4678_v63, %v4686_v54  ;;  %v4619_v1 = vcombine.low %v4594_v28, %v4602_v41 }
0x14f2   : > { %v4559_v49 = vrot.slane %v4551_v15, %v6835_v27  ;;  %v4566_v23 = vrot.slane %v4552_v12, %v6835_v27  ;;  %v4575_v11 = vrot.slane %v4567_v2, %v6835_v27  ;;  %v4582_v18 = vrot.slane %v4568_v3, %v6835_v27 }
0x14f3   : > { %v4702_v57 = vrot.slane %v4688_v51, %v6835_v27  ;;  %v4718_v62 = vrot.slane %v4704_v7, %v6835_v27  ;;  %v4627_v60 = vrot.slane %v4619_v1, %v6835_v27  ;;  %v4635_v20 = vcombine.low %v4610_v37, %v4618_v31 }
0x14f4   : > { %v4723_v24 = vcombine.low %v4559_v49, %v4566_v23  ;;  %v5497_v5 = vcombine.high %v4559_v49, %v4566_v23  ;;  %v4739_v42 = vcombine.low %v4575_v11, %v4582_v18  ;;  %v5498_v47 = vcombine.high %v4575_v11, %v4582_v18 }
0x14f5   : > { %v4721_v13 = vcombine.low %v4702_v57, %v4718_v62  ;;  %v4643_v46 = vrot.slane %v4635_v20, %v6835_v27  ;;  %v4687_v21 = vcombine.low %v4662_v58, %v4670_v61  ;;  %v4703_v35 = vcombine.low %v4678_v63, %v4686_v54 }
0x14f6   : > { %v4730_v40 = vrot.slane %v4723_v24, %v6833_v22  ;;  %v4738_v59 = vrot.slane %v5497_v5, %v6833_v22  ;;  %v4746_v26 = vrot.slane %v4739_v42, %v6833_v22  ;;  %v4754_v55 = vrot.slane %v5498_v47, %v6833_v22  ;;  %v6086_v22 = vld [vmem:[%s7532_s6 + $0x18] sm:$0xff]   ;;  %v5508_v42 = vld [vmem:[%s7533_s7 + $0x1] ss:$0 sm:$0xff] }
0x14f7   : > { %v6055_v44 = vpack.i.bf16 %v4721_v13, %v4653_v19  ;;  %v4695_v0 = vrot.slane %v4687_v21, %v6835_v27  ;;  %v4711_v29 = vrot.slane %v4703_v35, %v6835_v27  ;;  %v4652_v17 = vcombine.high %v4627_v60, %v4643_v46  ;;  %5898 = vmatprep.subr.bf16.mxu1 %v6086_v22 }
0x14f8   : > { %v4755_v28 = vcombine.low %v4730_v40, %v4738_v59  ;;  %v4771_v41 = vcombine.low %v4746_v26, %v4754_v55  ;;  %v4756_v31 = vcombine.high %v4730_v40, %v4738_v59  ;;  %v4772_v8 = vcombine.high %v4746_v26, %v4754_v55  ;;  %5899 = vmatpush3.bf16.msra.mxu1 %v6086_v22 }
0x14f9   : > { %6056 = vrot.lane.b32.xlu1 %v6055_v44, %s7584_s22  ;;  %v4720_v37 = vcombine.high %v4695_v0, %v4711_v29  ;;  %v4651_v32 = vcombine.low %v4627_v60, %v4643_v46  ;;  %v4719_v16 = vcombine.low %v4695_v0, %v4711_v29  ;;  %v4722_v9 = vcombine.high %v4702_v57, %v4718_v62 }
0x14fa   : > { %v4763_v38 = vrot.slane %v4755_v28, %v6835_v27  ;;  %v4779_v34 = vrot.slane %v4771_v41, %v6835_v27  ;;  %v4770_v48 = vrot.slane %v4756_v31, %v6835_v27  ;;  %v4786_v4 = vrot.slane %v4772_v8, %v6835_v27 }
0x14fb   : > { %v6050_v39 = vpack.i.bf16 %v4720_v37, %v4652_v17  ;;  %v4654_v45 = vcombine.high %v7342_v56, %v4650_v52 }
0x14fc   : > { %v4788_v36 = vcombine.high %v4763_v38, %v4779_v34  ;;  %v4787_v30 = vcombine.low %v4763_v38, %v4779_v34  ;;  %v4789_v50 = vcombine.low %v4770_v48, %v4786_v4  ;;  %v4790_v58 = vcombine.high %v4770_v48, %v4786_v4 }
0x14fd   : > { %6051 = vrot.lane.b32.xlu0 %v6050_v39, %s7585_s27  ;;  %v6060_v53 = vpack.i.bf16 %v4722_v9, %v4654_v45  ;;  %v6087_v39 = vld [vmem:[%s7536_s10 + $0x10] sm:$0xff]   ;;  %v6088_v9 = vld [vmem:[%s7536_s10 + $0x18] sm:$0xff]  }
0x14fe   : > { %4798 = vrot.lane.b32.xlu1 %v4788_v36, %s7585_s27  ;;  %5904 = vmatprep.subr.bf16.mxu0 %v6087_v39  ;;  %s566_s27 = sand.u32 1, %s6285_s28  }
0x14ff   : > { %5905 = vmatpush3.bf16.msra.mxu0 %v6087_v39  ;;  %s567_s25 = scalar_lea.vmem [#allocation2], %s566_s27  ;;  %s5314_s20 = scalar_lea.sflag [#allocation3], %s566_s27 }
0x1500   : > { %5906 = vmatprep.subr.bf16.mxu0 %v6088_v9  ;;  %s5326_s23 = sshll.u32 %s567_s25, 4  ;;  %s7486_s23 = int_to_ptr.vmem [resolvable:$true] %s5326_s23 }
0x1501   : > { %6061 = vrot.lane.b32.xlu0 %v6060_v53, %s7586_s21  ;;  %p6238_p0 = scmp.lt.s32.totalorder %s7486_s23, %s6236_s24 }
0x1502   : > { %4810 = vrot.lane.b32.xlu1 %v4789_v50, %s7584_s22  ;;  %s7587_s22 = sld [smem:[#allocation14_spill]] }
0x1503   : > { %5907 = vmatpush3.bf16.msra.mxu0 %v6088_v9 }
0x1504   : > { %5975 = vmatprep.subr.bf16.mxu0 %v6303_v25 }
0x1506   : > { %4822 = vrot.lane.b32.xlu1 %v4790_v58, %s7586_s21  ;;  %s6231_s21 = scalar_lea.vmem %s7486_s23, 16 }
0x1507   : > { %p6232_p11 = scmp.ne.s32.totalorder %s7486_s23, %s6231_s21  ;;  %p6239_p1 = scmp.lt.s32.totalorder %s6237_s1, %s6231_s21 }
0x1508   : > { %s7484_s19 = scalar_lea.hbm %s7587_s22, %s5550_s29 }
0x1509   : > { %p6233_p12 = pnand %p6232_p11, %p6443_p5  ;;  %p6240_p2 = por %p6239_p1, %p6238_p0 }
0x150b   : > { %p6234_p13 = pneg %p6233_p12 }
0x150d   : > { %p6241_p3 = pnand %p6240_p2, %p6234_p13 }
0x156b   : > { %v6057_v61 = vpop.permute.xlu1 %6056 }
0x156c   : > { %v6059_v12 = vunpack.i.h.bf16 %v6057_v61  ;;  %v6058_v2 = vunpack.i.l.bf16 %v6057_v61 }
0x156f   : > { %v6052_v27 = vpop.permute.xlu0 %6051 }
0x1570   : > { %v6054_v63 = vunpack.i.h.bf16 %v6052_v27  ;;  %v6053_v54 = vunpack.i.l.bf16 %v6052_v27  ;;  %v4799_v15 = vpop.permute.xlu1 %4798 }
0x1571   : > { %v4829_v57 = vsel %vm991_vm3, %v4787_v30, %v4799_v15 }
0x1572   : > { %v4827_v56 = vsel %vm991_vm3, %v4651_v32, %v6053_v54  ;;  %v4828_v52 = vsel %vm991_vm3, %v4719_v16, %v6054_v63  ;;  %v5511_v54 = vld [vmem:[%s7534_s8 + $0x1] ss:$0 sm:$0xff] }
0x1573   : > { %v6062_v3 = vpop.permute.xlu0 %6061  ;;  %v4831_v1 = vsel %vm2560_vm7, %v4828_v52, %v6059_v12  ;;  %v4830_v49 = vsel %vm2560_vm7, %v4827_v56, %v6058_v2 }
0x1574   : > { %v6064_v19 = vunpack.i.h.bf16 %v6062_v3  ;;  %v6063_v51 = vunpack.i.l.bf16 %v6062_v3  ;;  %v4811_v7 = vpop.permute.xlu1 %4810  ;;  %v5512_v3 = vld [vmem:[%s7535_s9 + $0x1] ss:$0 sm:$0xff] }
0x1575   : > { %v4832_v62 = vsel %vm2560_vm7, %v4829_v57, %v4811_v7  ;;  %v6090_v57 = vld [vmem:[%s7538_s12 + $0x48] sm:$0xff]  }
0x1576   : > { %v4833_v23 = vsel %vm1360_vm5, %v4830_v49, %v6063_v51  ;;  %v4834_v11 = vsel %vm1360_vm5, %v4831_v1, %v6064_v19 }
0x1577   : > { %v4836_v18 = vpack.c.bf16 %v4834_v11, %v4833_v23 }
0x1578   : > { %v4823_v60 = vpop.permute.xlu1 %4822 }
0x1579   : > { %5900 = vmatprep.mubr.msk.bf16.mxu1 %vm675_vm1, %v4836_v18  ;;  %v4835_v20 = vsel %vm1360_vm5, %v4832_v62, %v4823_v60  ;;  %v6089_v18 = vld [vmem:[%s7538_s12 + $0x40] sm:$0xff]   ;;  %v6091_v62 = vld [vmem:[%s7538_s12 + $0x50] sm:$0xff]  }
0x157a   : > { %v4837_v24 = vpack.c.bf16 %v4835_v20, %v4835_v20  ;;  %5912 = vmatprep.subr.bf16.mxu1 %v6089_v18  ;;  %v6093_v60 = vld [vmem:[%s7538_s12 + $0x60] sm:$0xff]   ;;  %v6094_v20 = vld [vmem:[%s7538_s12 + $0x68] sm:$0xff]  }
0x157c   : > { %5901 = vmatmul.mubr.msk.bf16.vlgmr.msra.gmra.mrb[36].mxu1 %vm675_vm1, %v4837_v24  ;;  %v6095_v24 = vld [vmem:[%s7538_s12 + $0x70] sm:$0xff]  }
0x157d   : > { %5913 = vmatpush3.bf16.msra.mxu1 %v6089_v18 }
0x157e   : > { %5914 = vmatprep.subr.bf16.mxu1 %v6090_v57 }
0x1581   : > { %5915 = vmatpush3.bf16.msra.mxu1 %v6090_v57 }
0x1582   : > { %5916 = vmatprep.subr.bf16.mxu1 %v6091_v62 }
0x1585   : > { %5917 = vmatpush3.bf16.msra.mxu1 %v6091_v62 }
0x164f   : > { %v5902_v5 = vpop.f32.mrb[36].mxu1 }
0x1650   : > { %v4895_v47 = vpop.f32.mrb[37].mxu1  ;;  %v4911_v13 = vadd.f32 %v5902_v5, %v6995_v33  ;;  %v6096_v5 = vld [vmem:[%s7538_s12 + $0x78] sm:$0xff]  }
0x1651   : > { %v4909_v46 = vadd.f32 %v4895_v47, %v6992_v10  ;;  %v5903_v21 = vpop.f32.mrb[38].mxu1 }
0x1652   : > { %v4898_v35 = vpop.f32.mrb[39].mxu1  ;;  %v4922_v26 = vadd.f32 %v5508_v42, %v4911_v13 }
0x1653   : > { %v7397_v40 = vadd.f32 %v5508_v42, %v4909_v46  ;;  %v4910_v59 = vadd.f32 %v4898_v35, %v6997_v43 }
0x1654   : > { %v4933_v29 = vsel %vm675_vm1, %v4922_v26, 0.0 }
0x1655   : > { %v4921_v55 = vadd.f32 %v5508_v42, %v4910_v59  ;;  %v4927_v44 = vsel %vm675_vm1, %v7397_v40, 0.0  ;;  %v5518_v42 = vld [vmem:[%s7537_s11 + $0x1] ss:$0 sm:$0xff] }
0x1656   : > { %4928 = vadd.xlane.f32.xlu0 %v4927_v44 }
0x1657   : > { %v4930_v0 = vsel %vm675_vm1, %v4921_v55, 0.0 }
0x1658   : > { %4931 = vadd.xlane.f32.xlu1 %v4930_v0 }
0x165a   : > { %4934 = vadd.xlane.f32.xlu0 %v4933_v29 }
0x16e3   : > { %v4929_v33 = vpop.xlane.xlu0 %4928 }
0x16e4   : > { %v4936_v10 = vmul.f32 0.03125, %v4929_v33 }
0x16e5   : > { %v4932_v6 = vpop.xlane.xlu1 %4931 }
0x16e6   : > { %v4939_v17 = vsub.f32 %v7397_v40, %v4936_v10  ;;  %v4937_v28 = vmul.f32 0.03125, %v4932_v6 }
0x16e7   : > { %v4935_v41 = vpop.xlane.xlu0 %4934 }
0x16e8   : > { %v4940_v43 = vsub.f32 %v4921_v55, %v4937_v28  ;;  %v4938_v37 = vmul.f32 0.03125, %v4935_v41  ;;  %v4942_v31 = vmul.f32 %v4939_v17, %v4939_v17 }
0x16ea   : > { %v4941_v8 = vsub.f32 %v4922_v26, %v4938_v37  ;;  %v4945_v32 = vsel %vm675_vm1, %v4942_v31, 0.0  ;;  %v4943_v22 = vmul.f32 %v4940_v43, %v4940_v43 }
0x16eb   : > { %4946 = vadd.xlane.f32.xlu0 %v4945_v32 }
0x16ec   : > { %v4944_v38 = vmul.f32 %v4941_v8, %v4941_v8  ;;  %v4948_v16 = vsel %vm675_vm1, %v4943_v22, 0.0 }
0x16ee   : > { %v4951_v34 = vsel %vm675_vm1, %v4944_v38, 0.0 }
0x16ef   : > { %4952 = vadd.xlane.f32.xlu1 %v4951_v34  ;;  %4949 = vadd.xlane.f32.xlu0 %v4948_v16 }
0x1778   : > { %v4947_v36 = vpop.xlane.xlu0 %4946 }
0x1779   : > { %v4954_v48 = vmul.f32 0.03125, %v4947_v36 }
0x177b   : > { %v4957_v4 = vadd.f32 1e-06, %v4954_v48 }
0x177c   : > { %v4950_v30 = vpop.xlane.xlu0 %4949  ;;  %v4953_v45 = vpop.xlane.xlu1 %4952 }
0x177d   : > { %6217 = vrsqrt.f32 %v4957_v4  ;;  %v4955_v53 = vmul.f32 0.03125, %v4950_v30  ;;  %v4956_v50 = vmul.f32 0.03125, %v4953_v45 }
0x177f   : > { %v4958_v58 = vadd.f32 1e-06, %v4955_v53  ;;  %v4959_v61 = vadd.f32 1e-06, %v4956_v50 }
0x1781   : > { %6219 = vrsqrt.f32 %v4958_v58 }
0x1782   : > { %6221 = vrsqrt.f32 %v4959_v61 }
0x1787   : > { %v6218_v27 = vpop.eup %6217 }
0x1788   : > { %v4963_v63 = vmul.f32 %v6218_v27, %v4939_v17 }
0x178a   : > { %v4972_v56 = vmul.f32 %v5511_v54, %v4963_v63  ;;  %v5548_v63 = vld [vmem:[%s7539_s13 + $0x1] ss:$0 sm:$0xff] }
0x178b   : > { %v6220_v15 = vpop.eup %6219 }
0x178c   : > { %v6222_v12 = vpop.eup %6221  ;;  %v4964_v2 = vmul.f32 %v6220_v15, %v4940_v43  ;;  %v4981_v7 = vadd.f32 %v5512_v3, %v4972_v56 }
0x178d   : > { %v4965_v52 = vmul.f32 %v6222_v12, %v4941_v8 }
0x178e   : > { %v4973_v19 = vmul.f32 %v5511_v54, %v4964_v2 }
0x178f   : > { %v4974_v51 = vmul.f32 %v5511_v54, %v4965_v52 }
0x1790   : > { %v4982_v1 = vadd.f32 %v5512_v3, %v4973_v19 }
0x1791   : > { %v4983_v49 = vadd.f32 %v5512_v3, %v4974_v51 }
0x1792   : > { %v4984_v23 = vpack.c.bf16 %v4982_v1, %v4981_v7  ;;  %v5233_v1 = vld [vmem:[%s7542_s16] sm:$0xff] }
0x1793   : > { %v4985_v11 = vpack.c.bf16 %v4983_v49, %v4983_v49  ;;  %v5235_v49 = vld [vmem:[%s7542_s16 + $0x10] sm:$0xff] }
0x1794   : > { %5908 = vmatprep.mubr.msk.bf16.mxu0 %vm675_vm1, %v4984_v23 }
0x1795   : > { %5909 = vmatmul.mubr.msk.bf16.vlgmr.msra.gmra.mrb[56].mxu0 %vm675_vm1, %v4985_v11  ;;  %v5236_v11 = vld [vmem:[%s7542_s16 + $0x18] sm:$0xff] }
0x1796   : > { %5940 = vmatprep.mubr.msk.f32.mxu0 %vm6300_vm2, %v6299_v14  ;;  %v6092_v14 = vld [vmem:[%s7538_s12 + $0x58] sm:$0xff]   ;;  %v5979_v18 = vpack.c.bf16 %v5236_v11, %v5235_v49 }
0x1797   : > { %5918 = vmatprep.subr.bf16.mxu1 %v6092_v14 }
0x1798   : > { %5919 = vmatpush3.bf16.msra.mxu1 %v6092_v14 }
0x1799   : > { %5920 = vmatprep.subr.bf16.mxu1 %v6093_v60 }
0x179c   : > { %5921 = vmatpush3.bf16.msra.mxu1 %v6093_v60 }
0x179d   : > { %5922 = vmatprep.subr.bf16.mxu1 %v6094_v20 }
0x17a0   : > { %5923 = vmatpush3.bf16.msra.mxu1 %v6094_v20  ;;  %v5215_v20 = vld [vmem:[%s7540_s14] sm:$0x1] }
0x17a1   : > { %5924 = vmatprep.subr.bf16.mxu1 %v6095_v24 }
0x17a4   : > { %5925 = vmatpush3.bf16.msra.mxu1 %v6095_v24 }
0x17a5   : > { %5926 = vmatprep.subr.bf16.mxu1 %v6096_v5 }
0x17a8   : > { %5927 = vmatpush3.bf16.msra.mxu1 %v6096_v5  ;;  %v5216_v5 = vld [vmem:[%s7541_s15] sm:$0x1] }
0x1868   : > { %v5910_v47 = vpop.f32.mrb[56].mxu0 }
0x1869   : > { %v5060_v13 = vadd.f32 %v5910_v47, %v5518_v42  ;;  %v5051_v46 = vpop.f32.mrb[57].mxu0 }
0x186a   : > { %v5052_v21 = vadd.f32 %v5518_v42, %v5051_v46  ;;  %v5911_v35 = vpop.f32.mrb[58].mxu0 }
0x186b   : > { %v5070_v59 = vmul.f32 0.044715, %v5060_v13  ;;  %v5054_v26 = vpop.f32.mrb[59].mxu0  ;;  %v5067_v9 = vmul.f32 0.5, %v5060_v13 }
0x186c   : > { %v5068_v55 = vmul.f32 0.044715, %v5052_v21  ;;  %v5055_v44 = vadd.f32 %v5518_v42, %v5054_v26  ;;  %v5065_v36 = vmul.f32 0.5, %v5052_v21 }
0x186d   : > { %v5073_v0 = vmul.f32 %v5070_v59, %v5060_v13 }
0x186e   : > { %v5071_v29 = vmul.f32 %v5068_v55, %v5052_v21  ;;  %v5069_v33 = vmul.f32 0.044715, %v5055_v44  ;;  %v5066_v48 = vmul.f32 0.5, %v5055_v44 }
0x186f   : > { %v5076_v10 = vmul.f32 %v5073_v0, %v5060_v13 }
0x1870   : > { %v5074_v6 = vmul.f32 %v5071_v29, %v5052_v21  ;;  %v5072_v17 = vmul.f32 %v5069_v33, %v5055_v44 }
0x1871   : > { %v5079_v28 = vadd.f32 %v5076_v10, %v5060_v13 }
0x1872   : > { %v5075_v41 = vmul.f32 %v5072_v17, %v5055_v44  ;;  %v5077_v43 = vadd.f32 %v5074_v6, %v5052_v21 }
0x1873   : > { %v5082_v37 = vmul.f32 0.7978845, %v5079_v28 }
0x1874   : > { %v5078_v31 = vadd.f32 %v5075_v41, %v5055_v44  ;;  %v5080_v8 = vmul.f32 0.7978845, %v5077_v43 }
0x1875   : > { %6223 = vtanh.f32 %v5082_v37 }
0x1876   : > { %v5081_v32 = vmul.f32 0.7978845, %v5078_v31  ;;  %6225 = vtanh.f32 %v5080_v8 }
0x1878   : > { %6227 = vtanh.f32 %v5081_v32 }
0x187f   : > { %v6224_v22 = vpop.eup %6223 }
0x1880   : > { %v6226_v38 = vpop.eup %6225  ;;  %v5088_v34 = vadd.f32 1.0, %v6224_v22 }
0x1881   : > { %v5086_v16 = vadd.f32 1.0, %v6226_v38 }
0x1882   : > { %v6228_v39 = vpop.eup %6227  ;;  %v5091_v30 = vmul.f32 %v5088_v34, %v5067_v9 }
0x1883   : > { %v5087_v4 = vadd.f32 1.0, %v6228_v39  ;;  %v5089_v45 = vmul.f32 %v5086_v16, %v5065_v36 }
0x1884   : > { %v5093_v58 = vpack.c.bf16 %v5091_v30, %v5091_v30 }
0x1885   : > { %v5090_v53 = vmul.f32 %v5087_v4, %v5066_v48 }
0x1887   : > { %v5092_v50 = vpack.c.bf16 %v5090_v53, %v5089_v45 }
0x1889   : > { %5928 = vmatprep.mubr.bf16.mxu1 %v5092_v50 }
0x188a   : > { %5929 = vmatmul.mubr.bf16.vlgmr.msra.gmra.mrb[40].mxu1 %v5093_v58 }
0x195d   : > { %v5930_v61 = vpop.f32.mrb[40].mxu1 }
0x195e   : > { %v5193_v27 = vpop.f32.mrb[41].mxu1 }
0x195f   : > { %v5205_v54 = vadd.f32 %v5193_v27, %v7397_v40  ;;  %v5931_v15 = vpop.f32.mrb[42].mxu1  ;;  %v5234_v40 = vld [vmem:[%s7542_s16 + $0x8] sm:$0xff] }
0x1960   : > { %v5196_v12 = vpop.f32.mrb[43].mxu1  ;;  %v5976_v23 = vpack.c.bf16 %v5234_v40, %v5233_v1 }
0x1961   : > { %v5214_v2 = vadd.f32 %v5548_v63, %v5205_v54 }
0x1962   : > { %5977 = vmatpush3.bf16.msra.mxu0 %v5976_v23 }
0x1963   : > { %v5218_v56 = vsel %vm5217_vm8, %v5214_v2, 0.0  ;;  %5978 = vmatprep.subr.bf16.mxu0 %v6303_v25  ;;  %v5237_v25 = vld [vmem:[%s7543_s17] sm:$0x1] }
0x1964   : > { %5219 = vadd.xlane.f32.xlu0 %v5218_v56 }
0x1966   : > { %5980 = vmatpush3.bf16.msra.mxu0 %v5979_v18 }
0x19f1   : > { %v5220_v52 = vpop.xlane.xlu0 %5219 }
0x19f2   : > { %v5221_v3 = vmul.f32 0.03125, %v5220_v52 }
0x19f4   : > { %v5222_v19 = vsub.f32 %v5214_v2, %v5221_v3 }
0x19f6   : > { %v5223_v51 = vmul.f32 %v5222_v19, %v5222_v19 }
0x19f8   : > { %v5224_v7 = vsel %vm5217_vm8, %v5223_v51, 0.0 }
0x19f9   : > { %5225 = vadd.xlane.f32.xlu1 %v5224_v7 }
0x1a86   : > { %v5226_v57 = vpop.xlane.xlu1 %5225 }
0x1a87   : > { %v5227_v62 = vmul.f32 0.03125, %v5226_v57 }
0x1a89   : > { %v5228_v14 = vadd.f32 1e-05, %v5227_v62 }
0x1a8b   : > { %6229 = vrsqrt.f32 %v5228_v14 }
0x1a95   : > { %v6230_v60 = vpop.eup %6229 }
0x1a96   : > { %v5230_v24 = vmul.f32 %v6230_v60, %v5222_v19 }
0x1a98   : > { %v5231_v42 = vmul.f32 %v5230_v24, %v5215_v20 }
0x1a9a   : > { %v5232_v47 = vadd.f32 %v5231_v42, %v5216_v5 }
0x1a9c   : > { %5941 = vmatmul.mubr.msk.f32.vlgmr.msra.gmra.mrb[54].mxu0 %vm675_vm1, %v5232_v47 }
0x1b6f   : > { %v5307_v13 = vpop.f32.mrb[54].mxu0 }
0x1b70   : > { %v5308_v46 = vadd.f32 %v5307_v13, %v5237_v25  ;;  %v5942_v21 = vpop.f32.mrb[55].mxu0 }
0x1b72   : > { %5312 = vst.msk [vmem:[%s567_s25] sm:$0x1] %vm5311_vm9, %v5308_v46 }
0x1b73   : > { %6244 = shalt.err (!%p6241_p3)
}
0x1b74   : > { %s6245_s27 = scalar_lea.hbm %s7484_s19, 16  ;;  %s6249_s18 = scalar_lea.hbm %s7587_s22, 32 }
0x1b75   : > { %p6246_p4 = scmp.ne.s32.totalorder %s7484_s19, %s6245_s27  ;;  %p6250_p9 = scmp.lt.u32.totalorder %s7484_s19, %s7587_s22 }
0x1b76   : > { %p6251_p10 = scmp.lt.u32.totalorder %s6249_s18, %s6245_s27  ;;  %p6253_p12 = scmp.lt.u32.totalorder %s6245_s27, %s7484_s19 }
0x1b77   : > { %p6247_p7 = pnand %p6246_p4, %p6443_p5 }
0x1b78   : > { %p6252_p11 = por %p6251_p10, %p6250_p9 }
0x1b79   : > { %p6248_p8 = pneg %p6247_p7 }
0x1b7a   : > { %p6254_p13 = por %p6253_p12, %p6252_p11 }
0x1b7c   : > { %p6255_p0 = pnand %p6254_p13, %p6248_p8 }
0x1b7e   : > { %6258 = shalt.err (!%p6255_p0)
}
0x1b7f   : > { %5982 = dma.vmem_to_hbm [thread:$0]  (%p6443_p5), %s7486_s23, 16, %s7484_s19, %s5314_s20  }
0x1b80 PF: > { %s7588_s1 = sld [smem:[#allocation7_spill]]  ;;  %s7589_s21 = sld [smem:[#allocation5_spill]] }
0x1b86   : > { %p5988_p1 = scmp.ge.s32.totalorder %s7588_s1, 2  ;;  %s5338_s29 = sand.u32 1, %s7589_s21  }
0x1b87   : > { %s5339_s25 = scalar_lea.sflag [#allocation3], %s5338_s29 }
0x1b88   : > { %p5985_p2 = pnand %p5988_p1, %p6447_p6 }
0x1b8a   : > { %6276 = dma.done.wait (!%p5985_p2), %s5339_s25, 16  }
0x1b8b   : > { %6278 = vsyncadd (!%p5985_p2), %s5339_s25, 4294967280  ;;  %s7591_s30 = sld [smem:[#allocation8_spill]]  ;;  %s7592_s18 = sld [smem:[#allocation6_spill]] }
0x1b8c   : > { %s7593_s29 = sld [smem:[#allocation9_spill]]  ;;  %s7594_s27 = smov %s6285_s28 }
0x1b91   : > { %p28_p3 = scmp.ge.s32.totalorder %s7591_s30, 4   ;;  %s7595_s28 = smov %s7592_s18 }
0x1b93   :  { %30 = sbr.rel (!%p28_p3) target bundleno = 8 (0x8), region = 138 }
0x1b9a   :  { %5343 = vsyncpa [#allocation3], 1 }
0x1b9b   :  { %5345 = vsyncpa [#allocation3 + $0x1], 1 }

</bundles_post_ra>
